<compile_context>
chip_gen: v6e
topology: v6e:2x2x1
jax: 0.10.0
libtpu: 0.0.40
codegen_flags: <defaults>
</compile_context>

<pallas_src>
import functools

import jax
import jax.numpy as jnp
from jax.experimental import pallas as pl
from jax.experimental.pallas import tpu as pltpu


# ---------------------------------------------------------------------------
# Pallas kernels
# ---------------------------------------------------------------------------

def _conv3x3_kernel(x_ref, w_ref, b_ref, m_ref, o_ref, *, wp, npix, group, relu):
    """Reflect-padded 3x3 conv on one (batch, row-block) tile.

    x_ref: (1, 1, Cin, win)            bf16  flattened padded row window (+2 tail)
    w_ref: (9//group, Cout, group*Cin) bf16  tap weights stacked on contraction axis
    b_ref: (Cout, 1)                   f32
    m_ref: (1, npix)                   f32   1 on valid cols, 0 on the 2 junk cols/row
    o_ref: (1, Cout, npix)                   npix = Ht*Wp (lane-dense Wp-stride layout)
    """
    x = x_ref[0, 0]                                          # (Cin, win)
    cout = o_ref.shape[1]
    acc = jnp.zeros((cout, npix), jnp.float32)
    for g in range(9 // group):
        taps = []
        for t in range(group):
            k = g * group + t
            ky, kx = divmod(k, 3)
            off = ky * wp + kx                               # static lane shift
            taps.append(jax.lax.slice_in_dim(x, off, off + npix, axis=1))
        xg = taps[0] if group == 1 else jnp.concatenate(taps, axis=0)
        acc = acc + jnp.dot(w_ref[g], xg, preferred_element_type=jnp.float32)
    acc = acc + b_ref[...]
    if relu:
        acc = jnp.maximum(acc, 0.0)
    acc = acc * m_ref[...]              # zero junk columns so stats can use this layout
    o_ref[0] = acc.astype(o_ref.dtype)


def _stats_kernel(f_ref, mean_ref, cov_ref, sx_ref, sxx_ref, *,
                  count, thw, hwp, needs_mask, eps):
    """Accumulate sum(x), sum(x x^T) over HW tiles (bf16 MXU, f32 acc); finalize."""
    j = pl.program_id(1)

    @pl.when(j == 0)
    def _():
        sx_ref[...] = jnp.zeros_like(sx_ref)
        sxx_ref[...] = jnp.zeros_like(sxx_ref)

    x = f_ref[0]                                             # (C, thw) bf16
    if needs_mask:                    # cdiv remainder tile: zero out-of-bounds lanes
        pos = j * thw + jax.lax.broadcasted_iota(jnp.int32, (1, thw), 1)
        x = jnp.where(pos < hwp, x, 0)
    sx_ref[...] += jnp.sum(x.astype(jnp.float32), axis=1, keepdims=True)
    sxx_ref[...] += jax.lax.dot_general(
        x, x, (((1,), (1,)), ((), ())), preferred_element_type=jnp.float32)

    @pl.when(j == pl.num_programs(1) - 1)
    def _():
        mu = sx_ref[...] / count                             # (C, 1)
        outer = jax.lax.dot_general(
            mu, mu, (((1,), (1,)), ((), ())), preferred_element_type=jnp.float32)
        cov = (sxx_ref[...] - count * outer) / (count - 1.0)
        ri = jax.lax.broadcasted_iota(jnp.int32, cov.shape, 0)
        ci = jax.lax.broadcasted_iota(jnp.int32, cov.shape, 1)
        cov = cov + jnp.where(ri == ci, jnp.float32(eps), jnp.float32(0.0))
        mean_ref[0] = mu
        cov_ref[0] = cov


def _apply_kernel(t_ref, bp_ref, fc_ref, o_ref):
    """o = T' @ fc + b'   (alpha and the means are pre-folded into T', b')."""
    res = jnp.dot(t_ref[0], fc_ref[0], preferred_element_type=jnp.float32)
    o_ref[0] = (res + bp_ref[0]).astype(o_ref.dtype)


# ---------------------------------------------------------------------------
# Tiling / VMEM helpers
# ---------------------------------------------------------------------------

def _pick_h_tile(h, wp, cin, cout, out_itemsize, group, budget=36 * 2 ** 20):
    """Largest Ht dividing H with (Ht*Wp) % 128 == 0 (or Ht == H) under the budget."""
    def est(ht):
        npix = ht * wp
        win = (ht + 2) * wp + 2
        return (2 * cin * win * 2                 # double-buffered input window (bf16)
                + 2 * cout * npix * out_itemsize  # double-buffered output block
                + 2 * cout * npix * 4             # f32 accumulator temporaries
                + group * cin * npix * 2          # stacked tap operand (bf16)
                + 2 * 9 * cout * cin * 2)         # weights
    divisors = [d for d in range(h, 0, -1) if h % d == 0]
    valid = [d for d in divisors if (d * wp) % 128 == 0 or d == h]
    fitting = [d for d in valid if est(d) <= budget]
    # TODO(synk): if no legal Ht fits the budget (odd H at huge resolution) the
    # whole-image block is used and may exceed v7x's 64 MiB VMEM; a manual-DMA
    # halo window would be needed there.
    ht = max(fitting) if fitting else min(valid)
    return ht, est(ht)


def _pick_hw_tile(hw, cap=16384):
    """HW tile that is a multiple of 128 (or the full axis); returns (tile, needs_mask)."""
    cap = max(128, cap - cap % 128)
    if hw <= cap:
        return hw, False
    for t in range(cap, 127, -128):
        if hw % t == 0:
            return t, False
    return cap, True                              # cdiv grid with masked remainder tile


def _vmem_limit(estimate_bytes):
    return int(min(max(estimate_bytes * 5 // 4, 32 * 2 ** 20), 96 * 2 ** 20))


# ---------------------------------------------------------------------------
# Pallas wrappers
# ---------------------------------------------------------------------------

def conv3x3_reflect(x, w, b, *, relu, out_dtype):
    """ReflectionPad2d(1) + Conv2d(k=3) + bias (+ReLU), NCHW in.

    Returns the lane-dense flat layout (B, Cout, H*(W+2)); each row of W valid
    pixels is followed by 2 zeroed junk columns (Wp-stride layout that stats /
    apply consume directly, no crop copy needed on the feature path)."""
    B, Cin, H, W = x.shape
    Cout = w.shape[0]
    Wp = W + 2
    group = 9 if 9 * Cin <= 128 else 3            # full 9-tap stack for small Cin
    out_item = jnp.dtype(out_dtype).itemsize
    Ht, est = _pick_h_tile(H, Wp, Cin, Cout, out_item, group)
    nH = H // Ht
    npix = Ht * Wp
    win = (Ht + 2) * Wp + 2

    # Reflect pad in bf16, then gather overlapping (Ht+2)-row windows so every
    # tap in the kernel is a static lane slice of the resident block.
    # TODO(synk): fusing the reflect pad into the kernel would remove this copy.
    xp = jnp.pad(x.astype(jnp.bfloat16), ((0, 0), (0, 0), (1, 1), (1, 1)),
                 mode='reflect')                                   # (B,Cin,H+2,Wp)
    rows = (jnp.arange(nH) * Ht)[:, None] + jnp.arange(Ht + 2)[None, :]
    xw = jnp.moveaxis(xp[:, :, rows, :], 2, 1)                     # (B,nH,Cin,Ht+2,Wp)
    xw = xw.reshape(B, nH, Cin, (Ht + 2) * Wp)
    xw = jnp.pad(xw, ((0, 0), (0, 0), (0, 0), (0, 2)))             # tail pad -> win

    # Tap weights stacked along the contraction axis, grouped for the kernel.
    w_stack = jnp.transpose(w, (0, 2, 3, 1)).reshape(Cout, 9 * Cin)
    w_stack = jnp.transpose(w_stack.reshape(Cout, 9 // group, group * Cin),
                            (1, 0, 2)).astype(jnp.bfloat16)
    bias = b.reshape(Cout, 1).astype(jnp.float32)
    mask = jnp.tile(jnp.arange(Wp) < W, (Ht,)).astype(jnp.float32)[None, :]

    flops = 2 * B * 9 * Cout * Cin * H * Wp
    bytes_accessed = (B * nH * Cin * win * 2 + 9 * Cout * Cin * 2 + Cout * 4
                      + B * Cout * H * Wp * out_item)

    out = pl.pallas_call(
        functools.partial(_conv3x3_kernel, wp=Wp, npix=npix, group=group, relu=relu),
        out_shape=jax.ShapeDtypeStruct((B, Cout, H * Wp), out_dtype),
        grid=(B, nH),
        in_specs=[
            pl.BlockSpec((1, 1, Cin, win), lambda bi, hi: (bi, hi, 0, 0)),
            pl.BlockSpec((9 // group, Cout, group * Cin), lambda bi, hi: (0, 0, 0)),
            pl.BlockSpec((Cout, 1), lambda bi, hi: (0, 0)),
            pl.BlockSpec((1, npix), lambda bi, hi: (0, 0)),
        ],
        out_specs=pl.BlockSpec((1, Cout, npix), lambda bi, hi: (bi, 0, hi)),
        compiler_params=pltpu.CompilerParams(
            dimension_semantics=("parallel", "parallel"),
            vmem_limit_bytes=_vmem_limit(est)),
        cost_estimate=pl.CostEstimate(flops=flops, transcendentals=0,
                                      bytes_accessed=bytes_accessed),
    )(xw, w_stack, bias, mask)
    return out


def batched_stats(f, valid_count, eps=1e-5):
    """f: (Bc, C, HWp) bf16 (junk lanes zero) -> mean (Bc,C,1), cov (Bc,C,C) f32."""
    Bc, C, HWp = f.shape
    thw, needs_mask = _pick_hw_tile(HWp)
    est = 2 * C * thw * 2 + 4 * C * C * 4 + 4 * C * 4
    return pl.pallas_call(
        functools.partial(_stats_kernel, count=float(valid_count), thw=thw,
                          hwp=HWp, needs_mask=needs_mask, eps=eps),
        out_shape=(jax.ShapeDtypeStruct((Bc, C, 1), jnp.float32),
                   jax.ShapeDtypeStruct((Bc, C, C), jnp.float32)),
        grid=(Bc, pl.cdiv(HWp, thw)),
        in_specs=[pl.BlockSpec((1, C, thw), lambda b, j: (b, 0, j))],
        out_specs=(pl.BlockSpec((1, C, 1), lambda b, j: (b, 0, 0)),
                   pl.BlockSpec((1, C, C), lambda b, j: (b, 0, 0))),
        scratch_shapes=[pltpu.VMEM((C, 1), jnp.float32),
                        pltpu.VMEM((C, C), jnp.float32)],
        compiler_params=pltpu.CompilerParams(
            dimension_semantics=("parallel", "arbitrary"),
            vmem_limit_bytes=_vmem_limit(est)),
    )(f)


def apply_transform(t_prime, b_prime, feats, n_content):
    """o = T' @ fc + b' over the content half of the batch-concatenated features."""
    _, C, HWp = feats.shape
    thw, _ = _pick_hw_tile(HWp)
    est = 4 * C * thw * 2 + 2 * C * C * 2 + 2 * C * 4 + C * thw * 4
    return pl.pallas_call(
        _apply_kernel,
        out_shape=jax.ShapeDtypeStruct((n_content, C, HWp), jnp.bfloat16),
        grid=(n_content, pl.cdiv(HWp, thw)),
        in_specs=[
            pl.BlockSpec((1, C, C), lambda b, j: (b, 0, 0)),      # T' (bf16)
            pl.BlockSpec((1, C, 1), lambda b, j: (b, 0, 0)),      # b' (f32)
            # feats holds [content; style]; the index_map reads only the content half.
            pl.BlockSpec((1, C, thw), lambda b, j: (b, 0, j)),
        ],
        out_specs=pl.BlockSpec((1, C, thw), lambda b, j: (b, 0, j)),
        compiler_params=pltpu.CompilerParams(
            dimension_semantics=("parallel", "parallel"),
            vmem_limit_bytes=_vmem_limit(est)),
    )(t_prime, b_prime, feats)


# ---------------------------------------------------------------------------
# Model glue
# ---------------------------------------------------------------------------

def _fuse_conv0_into_conv1(params):
    """conv0 (1x1, linear) folded exactly into conv1_1 (commutes with reflect pad)."""
    w0 = params['enc_w0'][:, :, 0, 0]          # (3, 3)  [out0, in0]
    b0 = params['enc_b0']                      # (3,)
    w1 = params['enc_w1']                      # (C1, 3, 3, 3)
    b1 = params['enc_b1']                      # (C1,)
    w_fused = jnp.einsum('oikl,ij->ojkl', w1, w0)
    b_fused = b1 + jnp.einsum('oikl,i->o', w1, b0)
    return w_fused, b_fused


def _sqrt_and_isqrt_psd(a):
    w, v = jnp.linalg.eigh(a)
    w = jnp.maximum(w, 1e-8)
    s = jnp.sqrt(w)
    return (v * s) @ v.T, (v / s) @ v.T


def feature_transform(feats, n_content, valid_count, alpha):
    """OST closed form T = Cc^-1/2 (Cc^1/2 Cs Cc^1/2)^1/2 Cc^-1/2, folded with the
    blend:  T' = alpha*T + (1-alpha)*I,  b' = alpha*(mu_s - T mu_c)."""
    B = n_content
    C = feats.shape[1]

    # One stats pass over the batch-concatenated [content; style] features.
    mean, cov = batched_stats(feats, valid_count)
    c_mean, s_mean = mean[:B], mean[B:]
    c_cov, s_cov = cov[:B], cov[B:]

    # TODO(synk): symmetric eigendecompositions (matrix square roots) have no
    # Pallas equivalent; computed with jnp.linalg.eigh on small (C, C) matrices.
    def build_t(cc, cs):
        cc_sqrt, cc_isqrt = _sqrt_and_isqrt_psd(cc)
        inner_sqrt, _ = _sqrt_and_isqrt_psd(cc_sqrt @ cs @ cc_sqrt)
        return cc_isqrt @ inner_sqrt @ cc_isqrt

    t = jax.vmap(build_t)(c_cov, s_cov)                                 # (B, C, C)
    alpha = jnp.asarray(alpha, jnp.float32)
    t_prime = alpha * t + (1.0 - alpha) * jnp.eye(C, dtype=jnp.float32)
    b_prime = alpha * (s_mean - jnp.matmul(t, c_mean))                  # (B, C, 1)
    return apply_transform(t_prime.astype(jnp.bfloat16), b_prime, feats, B)


def single_level_ae_ost_forward(params, content_image, style_image, alpha):
    B, _, H, W = content_image.shape
    Wp = W + 2
    w_enc, b_enc = _fuse_conv0_into_conv1(params)

    # One encoder pass for content + style (batch concat); output stays in the
    # lane-dense Wp-stride layout (bf16, junk columns zeroed) for stats/apply.
    # TODO(synk): deeper encoder taps (relu2_1..relu5_1) follow the same fused
    # conv pattern and are omitted for this level=1 instantiation.
    x = jnp.concatenate([content_image, style_image], axis=0)
    feats = conv3x3_reflect(x, w_enc, b_enc, relu=True, out_dtype=jnp.bfloat16)

    res = feature_transform(feats, B, H * W, alpha)        # (B, C1, H*Wp) bf16

    # dec1_1: ReflectionPad2d(1) + Conv2d(C1 -> 3, k=3), no activation.
    # TODO(synk): the junk-column crop + re-pad before the decoder is one bf16
    # copy; fusing the reflect pad into the conv kernel would remove it.
    C1 = feats.shape[1]
    dec_in = res.reshape(B, C1, H, Wp)[:, :, :, :W]
    out = conv3x3_reflect(dec_in, params['dec_w'], params['dec_b'],
                          relu=False, out_dtype=jnp.float32)
    return out.reshape(B, 3, H, Wp)[:, :, :, :W]


def init_params(key, c1=64):
    # Deterministic synthetic weights (original module loads pretrained VGG .pth files).
    k = jax.random.split(key, 6)
    return {
        'enc_w0': jax.random.normal(k[0], (3, 3, 1, 1), jnp.float32) * 0.5,
        'enc_b0': jax.random.normal(k[1], (3,), jnp.float32) * 0.05,
        'enc_w1': jax.random.normal(k[2], (c1, 3, 3, 3), jnp.float32) * (1.0 / (3 * 9) ** 0.5),
        'enc_b1': jax.random.normal(k[3], (c1,), jnp.float32) * 0.05,
        'dec_w': jax.random.normal(k[4], (3, c1, 3, 3), jnp.float32) * (1.0 / (c1 * 9) ** 0.5),
        'dec_b': jax.random.normal(k[5], (3,), jnp.float32) * 0.05,
    }


if __name__ == "__main__":
    key = jax.random.PRNGKey(0)
    kp, kc, ks = jax.random.split(key, 3)
    params = init_params(kp, c1=64)

    content = jax.random.normal(kc, (2, 3, 16, 16), jnp.float32)
    style = jax.random.normal(ks, (2, 3, 16, 16), jnp.float32)
    alpha = 0.6

    fwd = jax.jit(single_level_ae_ost_forward)
    out = fwd(params, content, style, alpha)
    out = jax.block_until_ready(out)

    assert out.shape == (2, 3, 16, 16), out.shape
    assert bool(jnp.all(jnp.isfinite(out)))
    print("KERNEL_OK")
</pallas_src>

<mosaic_0001>
module attributes {stable_mosaic.version = 11 : i64} {
  func.func @_conv3x3_kernel(%arg0: i32, %arg1: i32, %arg2: memref<1x1x3x326xbf16, #tpu.memory_space<vmem>>, %arg3: memref<1x64x27xbf16, #tpu.memory_space<vmem>>, %arg4: memref<64x1xf32, #tpu.memory_space<vmem>>, %arg5: memref<1x288xf32, #tpu.memory_space<vmem>>, %arg6: memref<1x64x288xbf16, #tpu.memory_space<vmem>>) attributes {dimension_semantics = [#tpu.dimension_semantics<parallel>, #tpu.dimension_semantics<parallel>], iteration_bounds = array<i64: 4, 1>, scalar_prefetch = 0 : i64, scratch_operands = 0 : i64, tpu.core_type = #tpu.core_type<tc>, window_params = [{transform_indices = @transform_0, window_bounds = array<i64: 1, 1, 3, 326>}, {pipeline_mode = #tpu.pipeline_mode<synchronous>, transform_indices = @transform_1, window_bounds = array<i64: 1, 64, 27>}, {pipeline_mode = #tpu.pipeline_mode<synchronous>, transform_indices = @transform_2, window_bounds = array<i64: 64, 1>}, {pipeline_mode = #tpu.pipeline_mode<synchronous>, transform_indices = @transform_3, window_bounds = array<i64: 1, 288>}, {transform_indices = @transform_4, window_bounds = array<i64: 1, 64, 288>}]} {
    %c0 = arith.constant 0 : index
    %c0_0 = arith.constant 0 : index
    %c0_1 = arith.constant 0 : index
    %c0_2 = arith.constant 0 : index
    %0 = vector.load %arg2[%c0, %c0_0, %c0_1, %c0_2] : memref<1x1x3x326xbf16, #tpu.memory_space<vmem>>, vector<1x1x3x326xbf16>
    %1 = vector.shape_cast %0 : vector<1x1x3x326xbf16> to vector<3x326xbf16>
    %cst = arith.constant 0.000000e+00 : f32
    %2 = vector.broadcast %cst : f32 to vector<64x288xf32>
    %3 = vector.extract_strided_slice %1 {offsets = [0, 0], sizes = [3, 288], strides = [1, 1]} : vector<3x326xbf16> to vector<3x288xbf16>
    %4 = vector.extract_strided_slice %1 {offsets = [0, 1], sizes = [3, 288], strides = [1, 1]} : vector<3x326xbf16> to vector<3x288xbf16>
    %5 = vector.extract_strided_slice %1 {offsets = [0, 2], sizes = [3, 288], strides = [1, 1]} : vector<3x326xbf16> to vector<3x288xbf16>
    %6 = vector.extract_strided_slice %1 {offsets = [0, 18], sizes = [3, 288], strides = [1, 1]} : vector<3x326xbf16> to vector<3x288xbf16>
    %7 = vector.extract_strided_slice %1 {offsets = [0, 19], sizes = [3, 288], strides = [1, 1]} : vector<3x326xbf16> to vector<3x288xbf16>
    %8 = vector.extract_strided_slice %1 {offsets = [0, 20], sizes = [3, 288], strides = [1, 1]} : vector<3x326xbf16> to vector<3x288xbf16>
    %9 = vector.extract_strided_slice %1 {offsets = [0, 36], sizes = [3, 288], strides = [1, 1]} : vector<3x326xbf16> to vector<3x288xbf16>
    %10 = vector.extract_strided_slice %1 {offsets = [0, 37], sizes = [3, 288], strides = [1, 1]} : vector<3x326xbf16> to vector<3x288xbf16>
    %11 = vector.extract_strided_slice %1 {offsets = [0, 38], sizes = [3, 288], strides = [1, 1]} : vector<3x326xbf16> to vector<3x288xbf16>
    %12 = tpu.concatenate %3, %4, %5, %6, %7, %8, %9, %10, %11 in 0 : vector<3x288xbf16>, vector<3x288xbf16>, vector<3x288xbf16>, vector<3x288xbf16>, vector<3x288xbf16>, vector<3x288xbf16>, vector<3x288xbf16>, vector<3x288xbf16>, vector<3x288xbf16> -> vector<27x288xbf16>
    %c0_3 = arith.constant 0 : index
    %c0_4 = arith.constant 0 : index
    %c0_5 = arith.constant 0 : index
    %13 = vector.load %arg3[%c0_3, %c0_4, %c0_5] : memref<1x64x27xbf16, #tpu.memory_space<vmem>>, vector<1x64x27xbf16>
    %14 = vector.shape_cast %13 : vector<1x64x27xbf16> to vector<64x27xbf16>
    %cst_6 = arith.constant dense<0.000000e+00> : vector<64x288xf32>
    %15 = tpu.matmul %14, %12, %cst_6 {dimension_numbers = #tpu.dot_dimension_numbers<[1], [0], [0], [1], [0, 0, 1, 1], [], []>} : vector<64x27xbf16>, vector<27x288xbf16>, vector<64x288xf32> -> vector<64x288xf32>
    %16 = arith.addf %2, %15 : vector<64x288xf32>
    %c0_7 = arith.constant 0 : index
    %c0_8 = arith.constant 0 : index
    %17 = vector.load %arg4[%c0_7, %c0_8] : memref<64x1xf32, #tpu.memory_space<vmem>>, vector<64x1xf32>
    %18 = vector.broadcast %17 : vector<64x1xf32> to vector<64x288xf32>
    %19 = arith.addf %16, %18 : vector<64x288xf32>
    %cst_9 = arith.constant 0.000000e+00 : f32
    %20 = vector.broadcast %cst_9 : f32 to vector<64x288xf32>
    %21 = arith.maximumf %19, %20 : vector<64x288xf32>
    %c0_10 = arith.constant 0 : index
    %c0_11 = arith.constant 0 : index
    %22 = vector.load %arg5[%c0_10, %c0_11] : memref<1x288xf32, #tpu.memory_space<vmem>>, vector<1x288xf32>
    %23 = vector.broadcast %22 : vector<1x288xf32> to vector<64x288xf32>
    %24 = arith.mulf %21, %23 : vector<64x288xf32>
    %25 = arith.truncf %24 : vector<64x288xf32> to vector<64x288xbf16>
    %c0_12 = arith.constant 0 : index
    %c0_13 = arith.constant 0 : index
    %c0_14 = arith.constant 0 : index
    %26 = vector.load %arg6[%c0_12, %c0_13, %c0_14] : memref<1x64x288xbf16, #tpu.memory_space<vmem>>, vector<1x64x288xbf16>
    %27 = vector.shape_cast %26 : vector<1x64x288xbf16> to vector<64x288xbf16>
    %28 = vector.shape_cast %25 : vector<64x288xbf16> to vector<1x64x288xbf16>
    tpu.vector_store %arg6[%c0_12, %c0_13, %c0_14], %28 {strides = array<i32>} : memref<1x64x288xbf16, #tpu.memory_space<vmem>>, vector<1x64x288xbf16>,
    return
  }
  func.func @transform_0(%arg0: i32, %arg1: i32) -> (i32, i32, i32, i32) {
    %c0_i32 = arith.constant 0 : i32
    %c0_i32_0 = arith.constant 0 : i32
    %c0_i32_1 = arith.constant 0 : i32
    return %arg0, %arg1, %c0_i32, %c0_i32_0 : i32, i32, i32, i32
  }
  func.func @transform_1(%arg0: i32, %arg1: i32) -> (i32, i32, i32) {
    %c0_i32 = arith.constant 0 : i32
    %c0_i32_0 = arith.constant 0 : i32
    %c0_i32_1 = arith.constant 0 : i32
    %c0_i32_2 = arith.constant 0 : i32
    return %c0_i32, %c0_i32_0, %c0_i32_1 : i32, i32, i32
  }
  func.func @transform_2(%arg0: i32, %arg1: i32) -> (i32, i32) {
    %c0_i32 = arith.constant 0 : i32
    %c0_i32_0 = arith.constant 0 : i32
    %c0_i32_1 = arith.constant 0 : i32
    return %c0_i32, %c0_i32_0 : i32, i32
  }
  func.func @transform_3(%arg0: i32, %arg1: i32) -> (i32, i32) {
    %c0_i32 = arith.constant 0 : i32
    %c0_i32_0 = arith.constant 0 : i32
    %c0_i32_1 = arith.constant 0 : i32
    return %c0_i32, %c0_i32_0 : i32, i32
  }
  func.func @transform_4(%arg0: i32, %arg1: i32) -> (i32, i32, i32) {
    %c0_i32 = arith.constant 0 : i32
    %c0_i32_0 = arith.constant 0 : i32
    return %arg0, %c0_i32, %arg1 : i32, i32, i32
  }
}

module attributes {stable_mosaic.version = 11 : i64} {
  func.func @_stats_kernel(%arg0: i32, %arg1: i32, %arg2: memref<1x64x288xbf16, #tpu.memory_space<vmem>>, %arg3: memref<1x64x1xf32, #tpu.memory_space<vmem>>, %arg4: memref<1x64x64xf32, #tpu.memory_space<vmem>>, %arg5: memref<64x1xf32, #tpu.memory_space<vmem>>, %arg6: memref<64x64xf32, #tpu.memory_space<vmem>>) attributes {dimension_semantics = [#tpu.dimension_semantics<parallel>, #tpu.dimension_semantics<arbitrary>], iteration_bounds = array<i64: 4, 1>, scalar_prefetch = 0 : i64, scratch_operands = 2 : i64, tpu.core_type = #tpu.core_type<tc>, window_params = [{transform_indices = @transform_0, window_bounds = array<i64: 1, 64, 288>}, {transform_indices = @transform_1, window_bounds = array<i64: 1, 64, 1>}, {transform_indices = @transform_2, window_bounds = array<i64: 1, 64, 64>}]} {
    %c0_i32 = arith.constant 0 : i32
    %0 = arith.cmpi eq, %arg1, %c0_i32 : i32
    %1 = arith.extui %0 : i1 to i32
    %c0_i32_0 = arith.constant 0 : i32
    %2 = arith.cmpi ne, %1, %c0_i32_0 : i32
    scf.if %2 {
      %cst_14 = arith.constant 0.000000e+00 : f32
      %18 = vector.broadcast %cst_14 : f32 to vector<64x1xf32>
      %c0_15 = arith.constant 0 : index
      %c0_16 = arith.constant 0 : index
      %19 = vector.load %arg5[%c0_15, %c0_16] : memref<64x1xf32, #tpu.memory_space<vmem>>, vector<64x1xf32>
      tpu.vector_store %arg5[%c0_15, %c0_16], %18 {strides = array<i32>} : memref<64x1xf32, #tpu.memory_space<vmem>>, vector<64x1xf32>,
      %cst_17 = arith.constant 0.000000e+00 : f32
      %20 = vector.broadcast %cst_17 : f32 to vector<64x64xf32>
      %c0_18 = arith.constant 0 : index
      %c0_19 = arith.constant 0 : index
      %21 = vector.load %arg6[%c0_18, %c0_19] : memref<64x64xf32, #tpu.memory_space<vmem>>, vector<64x64xf32>
      tpu.vector_store %arg6[%c0_18, %c0_19], %20 {strides = array<i32>} : memref<64x64xf32, #tpu.memory_space<vmem>>, vector<64x64xf32>,
    } else {
    }
    %c0 = arith.constant 0 : index
    %c0_1 = arith.constant 0 : index
    %c0_2 = arith.constant 0 : index
    %3 = vector.load %arg2[%c0, %c0_1, %c0_2] : memref<1x64x288xbf16, #tpu.memory_space<vmem>>, vector<1x64x288xbf16>
    %4 = vector.shape_cast %3 : vector<1x64x288xbf16> to vector<64x288xbf16>
    %c0_3 = arith.constant 0 : index
    %c0_4 = arith.constant 0 : index
    %5 = vector.load %arg5[%c0_3, %c0_4] : memref<64x1xf32, #tpu.memory_space<vmem>>, vector<64x1xf32>
    %6 = arith.extf %4 : vector<64x288xbf16> to vector<64x288xf32>
    %cst = arith.constant dense<0.000000e+00> : vector<64xf32>
    %7 = vector.multi_reduction <add>, %6, %cst [1] : vector<64x288xf32> to vector<64xf32>
    %8 = vector.shape_cast %7 : vector<64xf32> to vector<64x1xf32>
    %9 = arith.addf %5, %8 : vector<64x1xf32>
    %c0_5 = arith.constant 0 : index
    %c0_6 = arith.constant 0 : index
    %10 = vector.load %arg5[%c0_5, %c0_6] : memref<64x1xf32, #tpu.memory_space<vmem>>, vector<64x1xf32>
    tpu.vector_store %arg5[%c0_5, %c0_6], %9 {strides = array<i32>} : memref<64x1xf32, #tpu.memory_space<vmem>>, vector<64x1xf32>,
    %c0_7 = arith.constant 0 : index
    %c0_8 = arith.constant 0 : index
    %11 = vector.load %arg6[%c0_7, %c0_8] : memref<64x64xf32, #tpu.memory_space<vmem>>, vector<64x64xf32>
    %cst_9 = arith.constant dense<0.000000e+00> : vector<64x64xf32>
    %12 = tpu.matmul %4, %4, %cst_9 {dimension_numbers = #tpu.dot_dimension_numbers<[1], [1], [0], [0], [0, 0, 1, 0], [], []>} : vector<64x288xbf16>, vector<64x288xbf16>, vector<64x64xf32> -> vector<64x64xf32>
    %13 = arith.addf %11, %12 : vector<64x64xf32>
    %c0_10 = arith.constant 0 : index
    %c0_11 = arith.constant 0 : index
    %14 = vector.load %arg6[%c0_10, %c0_11] : memref<64x64xf32, #tpu.memory_space<vmem>>, vector<64x64xf32>
    tpu.vector_store %arg6[%c0_10, %c0_11], %13 {strides = array<i32>} : memref<64x64xf32, #tpu.memory_space<vmem>>, vector<64x64xf32>,
    %c0_i32_12 = arith.constant 0 : i32
    %15 = arith.cmpi eq, %arg1, %c0_i32_12 : i32
    %16 = arith.extui %15 : i1 to i32
    %c0_i32_13 = arith.constant 0 : i32
    %17 = arith.cmpi ne, %16, %c0_i32_13 : i32
    scf.if %17 {
      %c0_14 = arith.constant 0 : index
      %c0_15 = arith.constant 0 : index
      %18 = vector.load %arg5[%c0_14, %c0_15] : memref<64x1xf32, #tpu.memory_space<vmem>>, vector<64x1xf32>
      %cst_16 = arith.constant 2.560000e+02 : f32
      %19 = vector.broadcast %cst_16 : f32 to vector<64x1xf32>
      %20 = arith.divf %18, %19 : vector<64x1xf32>
      %cst_17 = arith.constant dense<0.000000e+00> : vector<64x64xf32>
      %21 = tpu.matmul %20, %20, %cst_17 {dimension_numbers = #tpu.dot_dimension_numbers<[1], [1], [0], [0], [0, 0, 1, 0], [], []>} : vector<64x1xf32>, vector<64x1xf32>, vector<64x64xf32> -> vector<64x64xf32>
      %c0_18 = arith.constant 0 : index
      %c0_19 = arith.constant 0 : index
      %22 = vector.load %arg6[%c0_18, %c0_19] : memref<64x64xf32, #tpu.memory_space<vmem>>, vector<64x64xf32>
      %cst_20 = arith.constant 2.560000e+02 : f32
      %23 = vector.broadcast %cst_20 : f32 to vector<64x64xf32>
      %24 = arith.mulf %23, %21 : vector<64x64xf32>
      %25 = arith.subf %22, %24 : vector<64x64xf32>
      %cst_21 = arith.constant 2.550000e+02 : f32
      %26 = vector.broadcast %cst_21 : f32 to vector<64x64xf32>
      %27 = arith.divf %25, %26 : vector<64x64xf32>
      %28 = tpu.iota {dimensions = array<i32: 0>} : vector<64x64xi32>
      %29 = tpu.iota {dimensions = array<i32: 1>} : vector<64x64xi32>
      %30 = arith.cmpi eq, %28, %29 : vector<64x64xi32>
      %cst_22 = arith.constant 9.99999974E-6 : f32
      %cst_23 = arith.constant 0.000000e+00 : f32
      %31 = vector.broadcast %cst_22 : f32 to vector<64x64xf32>
      %32 = vector.broadcast %cst_23 : f32 to vector<64x64xf32>
      %33 = arith.select %30, %31, %32 : vector<64x64xi1>, vector<64x64xf32>
      %34 = arith.addf %27, %33 : vector<64x64xf32>
      %c0_24 = arith.constant 0 : index
      %c0_25 = arith.constant 0 : index
      %c0_26 = arith.constant 0 : index
      %35 = vector.load %arg3[%c0_24, %c0_25, %c0_26] : memref<1x64x1xf32, #tpu.memory_space<vmem>>, vector<1x64x1xf32>
      %36 = vector.shape_cast %35 : vector<1x64x1xf32> to vector<64x1xf32>
      %37 = vector.shape_cast %20 : vector<64x1xf32> to vector<1x64x1xf32>
      tpu.vector_store %arg3[%c0_24, %c0_25, %c0_26], %37 {strides = array<i32>} : memref<1x64x1xf32, #tpu.memory_space<vmem>>, vector<1x64x1xf32>,
      %c0_27 = arith.constant 0 : index
      %c0_28 = arith.constant 0 : index
      %c0_29 = arith.constant 0 : index
      %38 = vector.load %arg4[%c0_27, %c0_28, %c0_29] : memref<1x64x64xf32, #tpu.memory_space<vmem>>, vector<1x64x64xf32>
      %39 = vector.shape_cast %38 : vector<1x64x64xf32> to vector<64x64xf32>
      %40 = vector.shape_cast %34 : vector<64x64xf32> to vector<1x64x64xf32>
      tpu.vector_store %arg4[%c0_27, %c0_28, %c0_29], %40 {strides = array<i32>} : memref<1x64x64xf32, #tpu.memory_space<vmem>>, vector<1x64x64xf32>,
    } else {
    }
    return
  }
  func.func @transform_0(%arg0: i32, %arg1: i32) -> (i32, i32, i32) {
    %c0_i32 = arith.constant 0 : i32
    %c0_i32_0 = arith.constant 0 : i32
    return %arg0, %c0_i32, %arg1 : i32, i32, i32
  }
  func.func @transform_1(%arg0: i32, %arg1: i32) -> (i32, i32, i32) {
    %c0_i32 = arith.constant 0 : i32
    %c0_i32_0 = arith.constant 0 : i32
    %c0_i32_1 = arith.constant 0 : i32
    return %arg0, %c0_i32, %c0_i32_0 : i32, i32, i32
  }
  func.func @transform_2(%arg0: i32, %arg1: i32) -> (i32, i32, i32) {
    %c0_i32 = arith.constant 0 : i32
    %c0_i32_0 = arith.constant 0 : i32
    %c0_i32_1 = arith.constant 0 : i32
    return %arg0, %c0_i32, %c0_i32_0 : i32, i32, i32
  }
}

module attributes {stable_mosaic.version = 11 : i64} {
  func.func @_apply_kernel(%arg0: i32, %arg1: i32, %arg2: memref<1x64x64xbf16, #tpu.memory_space<vmem>>, %arg3: memref<1x64x1xf32, #tpu.memory_space<vmem>>, %arg4: memref<1x64x288xbf16, #tpu.memory_space<vmem>>, %arg5: memref<1x64x288xbf16, #tpu.memory_space<vmem>>) attributes {dimension_semantics = [#tpu.dimension_semantics<parallel>, #tpu.dimension_semantics<parallel>], iteration_bounds = array<i64: 2, 1>, scalar_prefetch = 0 : i64, scratch_operands = 0 : i64, tpu.core_type = #tpu.core_type<tc>, window_params = [{transform_indices = @transform_0, window_bounds = array<i64: 1, 64, 64>}, {transform_indices = @transform_1, window_bounds = array<i64: 1, 64, 1>}, {transform_indices = @transform_2, window_bounds = array<i64: 1, 64, 288>}, {transform_indices = @transform_3, window_bounds = array<i64: 1, 64, 288>}]} {
    %c0 = arith.constant 0 : index
    %c0_0 = arith.constant 0 : index
    %c0_1 = arith.constant 0 : index
    %0 = vector.load %arg2[%c0, %c0_0, %c0_1] : memref<1x64x64xbf16, #tpu.memory_space<vmem>>, vector<1x64x64xbf16>
    %1 = vector.shape_cast %0 : vector<1x64x64xbf16> to vector<64x64xbf16>
    %c0_2 = arith.constant 0 : index
    %c0_3 = arith.constant 0 : index
    %c0_4 = arith.constant 0 : index
    %2 = vector.load %arg4[%c0_2, %c0_3, %c0_4] : memref<1x64x288xbf16, #tpu.memory_space<vmem>>, vector<1x64x288xbf16>
    %3 = vector.shape_cast %2 : vector<1x64x288xbf16> to vector<64x288xbf16>
    %cst = arith.constant dense<0.000000e+00> : vector<64x288xf32>
    %4 = tpu.matmul %1, %3, %cst {dimension_numbers = #tpu.dot_dimension_numbers<[1], [0], [0], [1], [0, 0, 1, 1], [], []>} : vector<64x64xbf16>, vector<64x288xbf16>, vector<64x288xf32> -> vector<64x288xf32>
    %c0_5 = arith.constant 0 : index
    %c0_6 = arith.constant 0 : index
    %c0_7 = arith.constant 0 : index
    %5 = vector.load %arg3[%c0_5, %c0_6, %c0_7] : memref<1x64x1xf32, #tpu.memory_space<vmem>>, vector<1x64x1xf32>
    %6 = vector.shape_cast %5 : vector<1x64x1xf32> to vector<64x1xf32>
    %7 = vector.broadcast %6 : vector<64x1xf32> to vector<64x288xf32>
    %8 = arith.addf %4, %7 : vector<64x288xf32>
    %9 = arith.truncf %8 : vector<64x288xf32> to vector<64x288xbf16>
    %c0_8 = arith.constant 0 : index
    %c0_9 = arith.constant 0 : index
    %c0_10 = arith.constant 0 : index
    %10 = vector.load %arg5[%c0_8, %c0_9, %c0_10] : memref<1x64x288xbf16, #tpu.memory_space<vmem>>, vector<1x64x288xbf16>
    %11 = vector.shape_cast %10 : vector<1x64x288xbf16> to vector<64x288xbf16>
    %12 = vector.shape_cast %9 : vector<64x288xbf16> to vector<1x64x288xbf16>
    tpu.vector_store %arg5[%c0_8, %c0_9, %c0_10], %12 {strides = array<i32>} : memref<1x64x288xbf16, #tpu.memory_space<vmem>>, vector<1x64x288xbf16>,
    return
  }
  func.func @transform_0(%arg0: i32, %arg1: i32) -> (i32, i32, i32) {
    %c0_i32 = arith.constant 0 : i32
    %c0_i32_0 = arith.constant 0 : i32
    %c0_i32_1 = arith.constant 0 : i32
    return %arg0, %c0_i32, %c0_i32_0 : i32, i32, i32
  }
  func.func @transform_1(%arg0: i32, %arg1: i32) -> (i32, i32, i32) {
    %c0_i32 = arith.constant 0 : i32
    %c0_i32_0 = arith.constant 0 : i32
    %c0_i32_1 = arith.constant 0 : i32
    return %arg0, %c0_i32, %c0_i32_0 : i32, i32, i32
  }
  func.func @transform_2(%arg0: i32, %arg1: i32) -> (i32, i32, i32) {
    %c0_i32 = arith.constant 0 : i32
    %c0_i32_0 = arith.constant 0 : i32
    return %arg0, %c0_i32, %arg1 : i32, i32, i32
  }
  func.func @transform_3(%arg0: i32, %arg1: i32) -> (i32, i32, i32) {
    %c0_i32 = arith.constant 0 : i32
    %c0_i32_0 = arith.constant 0 : i32
    return %arg0, %c0_i32, %arg1 : i32, i32, i32
  }
}

module attributes {stable_mosaic.version = 11 : i64} {
  func.func @_conv3x3_kernel(%arg0: i32, %arg1: i32, %arg2: memref<1x1x64x326xbf16, #tpu.memory_space<vmem>>, %arg3: memref<3x3x192xbf16, #tpu.memory_space<vmem>>, %arg4: memref<3x1xf32, #tpu.memory_space<vmem>>, %arg5: memref<1x288xf32, #tpu.memory_space<vmem>>, %arg6: memref<1x3x288xf32, #tpu.memory_space<vmem>>) attributes {dimension_semantics = [#tpu.dimension_semantics<parallel>, #tpu.dimension_semantics<parallel>], iteration_bounds = array<i64: 2, 1>, scalar_prefetch = 0 : i64, scratch_operands = 0 : i64, tpu.core_type = #tpu.core_type<tc>, window_params = [{transform_indices = @transform_0, window_bounds = array<i64: 1, 1, 64, 326>}, {pipeline_mode = #tpu.pipeline_mode<synchronous>, transform_indices = @transform_1, window_bounds = array<i64: 3, 3, 192>}, {pipeline_mode = #tpu.pipeline_mode<synchronous>, transform_indices = @transform_2, window_bounds = array<i64: 3, 1>}, {pipeline_mode = #tpu.pipeline_mode<synchronous>, transform_indices = @transform_3, window_bounds = array<i64: 1, 288>}, {transform_indices = @transform_4, window_bounds = array<i64: 1, 3, 288>}]} {
    %c0 = arith.constant 0 : index
    %c0_0 = arith.constant 0 : index
    %c0_1 = arith.constant 0 : index
    %c0_2 = arith.constant 0 : index
    %0 = vector.load %arg2[%c0, %c0_0, %c0_1, %c0_2] : memref<1x1x64x326xbf16, #tpu.memory_space<vmem>>, vector<1x1x64x326xbf16>
    %1 = vector.shape_cast %0 : vector<1x1x64x326xbf16> to vector<64x326xbf16>
    %cst = arith.constant 0.000000e+00 : f32
    %2 = vector.broadcast %cst : f32 to vector<3x288xf32>
    %3 = vector.extract_strided_slice %1 {offsets = [0, 0], sizes = [64, 288], strides = [1, 1]} : vector<64x326xbf16> to vector<64x288xbf16>
    %4 = vector.extract_strided_slice %1 {offsets = [0, 1], sizes = [64, 288], strides = [1, 1]} : vector<64x326xbf16> to vector<64x288xbf16>
    %5 = vector.extract_strided_slice %1 {offsets = [0, 2], sizes = [64, 288], strides = [1, 1]} : vector<64x326xbf16> to vector<64x288xbf16>
    %6 = tpu.concatenate %3, %4, %5 in 0 : vector<64x288xbf16>, vector<64x288xbf16>, vector<64x288xbf16> -> vector<192x288xbf16>
    %c0_3 = arith.constant 0 : index
    %c0_4 = arith.constant 0 : index
    %c0_5 = arith.constant 0 : index
    %7 = vector.load %arg3[%c0_3, %c0_4, %c0_5] : memref<3x3x192xbf16, #tpu.memory_space<vmem>>, vector<1x3x192xbf16>
    %8 = vector.shape_cast %7 : vector<1x3x192xbf16> to vector<3x192xbf16>
    %cst_6 = arith.constant dense<0.000000e+00> : vector<3x288xf32>
    %9 = tpu.matmul %8, %6, %cst_6 {dimension_numbers = #tpu.dot_dimension_numbers<[1], [0], [0], [1], [0, 0, 1, 1], [], []>} : vector<3x192xbf16>, vector<192x288xbf16>, vector<3x288xf32> -> vector<3x288xf32>
    %10 = arith.addf %2, %9 : vector<3x288xf32>
    %11 = vector.extract_strided_slice %1 {offsets = [0, 18], sizes = [64, 288], strides = [1, 1]} : vector<64x326xbf16> to vector<64x288xbf16>
    %12 = vector.extract_strided_slice %1 {offsets = [0, 19], sizes = [64, 288], strides = [1, 1]} : vector<64x326xbf16> to vector<64x288xbf16>
    %13 = vector.extract_strided_slice %1 {offsets = [0, 20], sizes = [64, 288], strides = [1, 1]} : vector<64x326xbf16> to vector<64x288xbf16>
    %14 = tpu.concatenate %11, %12, %13 in 0 : vector<64x288xbf16>, vector<64x288xbf16>, vector<64x288xbf16> -> vector<192x288xbf16>
    %c1 = arith.constant 1 : index
    %c0_7 = arith.constant 0 : index
    %c0_8 = arith.constant 0 : index
    %15 = vector.load %arg3[%c1, %c0_7, %c0_8] : memref<3x3x192xbf16, #tpu.memory_space<vmem>>, vector<1x3x192xbf16>
    %16 = vector.shape_cast %15 : vector<1x3x192xbf16> to vector<3x192xbf16>
    %cst_9 = arith.constant dense<0.000000e+00> : vector<3x288xf32>
    %17 = tpu.matmul %16, %14, %cst_9 {dimension_numbers = #tpu.dot_dimension_numbers<[1], [0], [0], [1], [0, 0, 1, 1], [], []>} : vector<3x192xbf16>, vector<192x288xbf16>, vector<3x288xf32> -> vector<3x288xf32>
    %18 = arith.addf %10, %17 : vector<3x288xf32>
    %19 = vector.extract_strided_slice %1 {offsets = [0, 36], sizes = [64, 288], strides = [1, 1]} : vector<64x326xbf16> to vector<64x288xbf16>
    %20 = vector.extract_strided_slice %1 {offsets = [0, 37], sizes = [64, 288], strides = [1, 1]} : vector<64x326xbf16> to vector<64x288xbf16>
    %21 = vector.extract_strided_slice %1 {offsets = [0, 38], sizes = [64, 288], strides = [1, 1]} : vector<64x326xbf16> to vector<64x288xbf16>
    %22 = tpu.concatenate %19, %20, %21 in 0 : vector<64x288xbf16>, vector<64x288xbf16>, vector<64x288xbf16> -> vector<192x288xbf16>
    %c2 = arith.constant 2 : index
    %c0_10 = arith.constant 0 : index
    %c0_11 = arith.constant 0 : index
    %23 = vector.load %arg3[%c2, %c0_10, %c0_11] : memref<3x3x192xbf16, #tpu.memory_space<vmem>>, vector<1x3x192xbf16>
    %24 = vector.shape_cast %23 : vector<1x3x192xbf16> to vector<3x192xbf16>
    %cst_12 = arith.constant dense<0.000000e+00> : vector<3x288xf32>
    %25 = tpu.matmul %24, %22, %cst_12 {dimension_numbers = #tpu.dot_dimension_numbers<[1], [0], [0], [1], [0, 0, 1, 1], [], []>} : vector<3x192xbf16>, vector<192x288xbf16>, vector<3x288xf32> -> vector<3x288xf32>
    %26 = arith.addf %18, %25 : vector<3x288xf32>
    %c0_13 = arith.constant 0 : index
    %c0_14 = arith.constant 0 : index
    %27 = vector.load %arg4[%c0_13, %c0_14] : memref<3x1xf32, #tpu.memory_space<vmem>>, vector<3x1xf32>
    %28 = vector.broadcast %27 : vector<3x1xf32> to vector<3x288xf32>
    %29 = arith.addf %26, %28 : vector<3x288xf32>
    %c0_15 = arith.constant 0 : index
    %c0_16 = arith.constant 0 : index
    %30 = vector.load %arg5[%c0_15, %c0_16] : memref<1x288xf32, #tpu.memory_space<vmem>>, vector<1x288xf32>
    %31 = vector.broadcast %30 : vector<1x288xf32> to vector<3x288xf32>
    %32 = arith.mulf %29, %31 : vector<3x288xf32>
    %c0_17 = arith.constant 0 : index
    %c0_18 = arith.constant 0 : index
    %c0_19 = arith.constant 0 : index
    %33 = vector.load %arg6[%c0_17, %c0_18, %c0_19] : memref<1x3x288xf32, #tpu.memory_space<vmem>>, vector<1x3x288xf32>
    %34 = vector.shape_cast %33 : vector<1x3x288xf32> to vector<3x288xf32>
    %35 = vector.shape_cast %32 : vector<3x288xf32> to vector<1x3x288xf32>
    tpu.vector_store %arg6[%c0_17, %c0_18, %c0_19], %35 {strides = array<i32>} : memref<1x3x288xf32, #tpu.memory_space<vmem>>, vector<1x3x288xf32>,
    return
  }
  func.func @transform_0(%arg0: i32, %arg1: i32) -> (i32, i32, i32, i32) {
    %c0_i32 = arith.constant 0 : i32
    %c0_i32_0 = arith.constant 0 : i32
    %c0_i32_1 = arith.constant 0 : i32
    return %arg0, %arg1, %c0_i32, %c0_i32_0 : i32, i32, i32, i32
  }
  func.func @transform_1(%arg0: i32, %arg1: i32) -> (i32, i32, i32) {
    %c0_i32 = arith.constant 0 : i32
    %c0_i32_0 = arith.constant 0 : i32
    %c0_i32_1 = arith.constant 0 : i32
    %c0_i32_2 = arith.constant 0 : i32
    return %c0_i32, %c0_i32_0, %c0_i32_1 : i32, i32, i32
  }
  func.func @transform_2(%arg0: i32, %arg1: i32) -> (i32, i32) {
    %c0_i32 = arith.constant 0 : i32
    %c0_i32_0 = arith.constant 0 : i32
    %c0_i32_1 = arith.constant 0 : i32
    return %c0_i32, %c0_i32_0 : i32, i32
  }
  func.func @transform_3(%arg0: i32, %arg1: i32) -> (i32, i32) {
    %c0_i32 = arith.constant 0 : i32
    %c0_i32_0 = arith.constant 0 : i32
    %c0_i32_1 = arith.constant 0 : i32
    return %c0_i32, %c0_i32_0 : i32, i32
  }
  func.func @transform_4(%arg0: i32, %arg1: i32) -> (i32, i32, i32) {
    %c0_i32 = arith.constant 0 : i32
    %c0_i32_0 = arith.constant 0 : i32
    return %arg0, %c0_i32, %arg1 : i32, i32, i32
  }
}

</mosaic_0001>

<bundles_post_ra>
// kernel: custom-call.3
= control target key start
LH: loop header
LB: loop body
LE: loop exit
PB: predicated region body
PF: predicated region fallthrough
CT: control target
= control target key end

     0   :  { %s4280_s0 = inlined_call_operand.vmem [shape: f32[2,32,32], index: 0, kind: input, shape index: {}]   ;;  %s4281_s1 = inlined_call_operand.vmem [shape: f32[2,32,32], index: 1, kind: input, shape index: {}]   ;;  %s4282_s2 = inlined_call_operand.vmem [shape: f32[2,32,32], index: 2, kind: input, shape index: {}]   ;;  %s4283_s3 = inlined_call_operand.vmem [shape: f32[2,32,32], index: 3, kind: input, shape index: {}]   ;;  %s4284_s4 = inlined_call_operand.vmem [shape: f32[2,32], index: 4, kind: output, shape index: {0}]   ;;  %s4285_s5 = inlined_call_operand.vmem [shape: f32[2,32], index: 5, kind: output, shape index: {1}]   ;;  %s4286_s6 = inlined_call_operand.vmem [shape: f32[2,32,32], index: 6, kind: output, shape index: {2}]   ;;  %s4287_s7 = inlined_call_operand.vmem [shape: f32[2,32,32], index: 7, kind: output, shape index: {3}]   ;;  %s4288_s8 = inlined_call_operand.vmem [shape: f32[2,32,32], index: 8, kind: output, shape index: {4}]   ;;  %s4289_s9 = inlined_call_operand.vmem [shape: f32[2,32,32], index: 9, kind: output, shape index: {5}]  }
   0x1   :  { %4296 = sst [smem:[#allocation28_spill]] %s4280_s0 }
   0x2   :  { %4297 = sst [smem:[#allocation29_spill]] %s4281_s1 }
   0x3   :  { %4298 = sst [smem:[#allocation30_spill]] %s4282_s2 }
   0x4   :  { %4299 = sst [smem:[#allocation31_spill]] %s4283_s3 }
   0x5   :  { %4300 = sst [smem:[#allocation32_spill]] %s4288_s8 }
   0x6   :  { %4301 = sst [smem:[#allocation33_spill]] %s4289_s9 }
   0x7   :  { %s3261_s30 = smov 0   ;;  %s3263_s10 = smov 0  }
   0x8   :  { %s3265_s11 = smov 0  }
   0x9 LB: > { %4302 = sst [smem:[#allocation25_spill]] %s3194_s10  ;;  %s3277_s12 = sadd.s32 4294967295, %s3198_s11   ;;  %s3198_s11 = sphi %s3265_s11, %s4326_s11   ;;  %s3194_s10 = sphi %s3263_s10, %s4328_s10   ;;  %s3190_s30 = sphi %s3261_s30, %s4327_s30  }
   0xa   : > { %s3280_s13 = sadd.s32 1, %s3198_s11   ;;  %s20_s14 = sshrl.u32 %s3198_s11, 3 }
   0xb   : > { %4303 = sst [smem:[#allocation26_spill]] %s3280_s13  ;;  %s21_s15 = sshrl.u32 %s3280_s13, 3 }
   0xc   : > { %s22_s16 = ssub.s32 %s20_s14, %s21_s15  ;;  %s25_s17 = sadd.s32 1, %s3194_s10 }
   0xd   : > { %p23_p0 = scmp.eq.s32.totalorder %s22_s16, 0  ;;  %p35_p1 = scmp.ne.s32.totalorder %s3194_s10, %s3190_s30 }
   0xe   : > { %p36_p2 = scmp.eq.s32.totalorder %s3277_s12, 1  ;;  %p2750_p4 = scmp.ge.s32.totalorder %s3198_s11, 2 }
   0xf   : > { %s3289_s18 = scalar_select %p23_p0, %s3194_s10, %s25_s17  }
  0x10   : > { %p3291_p3 = por %p36_p2, %p35_p1  ;;  %86 = sbr.rel (%p2750_p4) target bundleno = 35 (0x23), region = 16 }
  0x11   : > { %4304 = sst [smem:[#allocation27_spill]] %s3289_s18  ;;  %s88_s20 = sand.u32 (!%p2750_p4), 1, %s3198_s11  }
  0x12   : > { %s2752_s21 = sshll.u32 (!%p2750_p4), %s3198_s11, 5  ;;  %s3298_s22 = sshll.u32 (!%p2750_p4), %s88_s20, 5 }
  0x13   : > { %s4306_s0 = sld [smem:[#allocation28_spill]] (!%p2750_p4)  ;;  %s90_s26 = scalar_lea.vmem (!%p2750_p4), [#allocation0], %s3298_s22 }
  0x14   : > { %s4307_s1 = sld [smem:[#allocation29_spill]] (!%p2750_p4)  ;;  %s119_s17 = scalar_lea.vmem (!%p2750_p4), [#allocation1], %s3298_s22 }
  0x15   : > { %s4308_s2 = sld [smem:[#allocation30_spill]] }
  0x16   : > { %s4309_s3 = sld [smem:[#allocation31_spill]] }
  0x19   : > { %s92_s25 = scalar_lea.vmem %s4306_s0, %s2752_s21 }
  0x1a   : > { %v105_v0 = vld [vmem:[%s92_s25] sm:$0xff]  ;;  %v107_v1 = vld [vmem:[%s92_s25 + $0x8] sm:$0xff]  ;;  %v109_v2 = vld [vmem:[%s92_s25 + $0x10] sm:$0xff]  ;;  %s121_s29 = scalar_lea.vmem %s4307_s1, %s2752_s21 }
  0x1b   : > { %106 = vst [vmem:[%s90_s26] sm:$0xff] %v105_v0  ;;  %108 = vst [vmem:[%s90_s26 + $0x8] sm:$0xff] %v107_v1  ;;  %v111_v3 = vld [vmem:[%s92_s25 + $0x18] sm:$0xff]  ;;  %v134_v4 = vld [vmem:[%s121_s29] sm:$0xff]  ;;  %s150_s16 = scalar_lea.vmem %s4308_s2, %s2752_s21  ;;  %s148_s25 = scalar_lea.vmem [#allocation2], %s3298_s22 }
  0x1c   : > { %110 = vst [vmem:[%s90_s26 + $0x10] sm:$0xff] %v109_v2  ;;  %112 = vst [vmem:[%s90_s26 + $0x18] sm:$0xff] %v111_v3  ;;  %v136_v5 = vld [vmem:[%s121_s29 + $0x8] sm:$0xff]  ;;  %v138_v6 = vld [vmem:[%s121_s29 + $0x10] sm:$0xff]  ;;  %s179_s24 = scalar_lea.vmem %s4309_s3, %s2752_s21  ;;  %s177_s26 = scalar_lea.vmem [#allocation3], %s3298_s22 }
  0x1d   : > { %135 = vst [vmem:[%s119_s17] sm:$0xff] %v134_v4  ;;  %137 = vst [vmem:[%s119_s17 + $0x8] sm:$0xff] %v136_v5  ;;  %v140_v7 = vld [vmem:[%s121_s29 + $0x18] sm:$0xff]  ;;  %v163_v8 = vld [vmem:[%s150_s16] sm:$0xff] }
  0x1e   : > { %139 = vst [vmem:[%s119_s17 + $0x10] sm:$0xff] %v138_v6  ;;  %v165_v9 = vld [vmem:[%s150_s16 + $0x8] sm:$0xff]  ;;  %141 = vst [vmem:[%s119_s17 + $0x18] sm:$0xff] %v140_v7  ;;  %v167_v10 = vld [vmem:[%s150_s16 + $0x10] sm:$0xff] }
  0x1f   : > { %164 = vst [vmem:[%s148_s25] sm:$0xff] %v163_v8  ;;  %166 = vst [vmem:[%s148_s25 + $0x8] sm:$0xff] %v165_v9  ;;  %v169_v11 = vld [vmem:[%s150_s16 + $0x18] sm:$0xff]  ;;  %v192_v12 = vld [vmem:[%s179_s24] sm:$0xff] }
  0x20   : > { %168 = vst [vmem:[%s148_s25 + $0x10] sm:$0xff] %v167_v10  ;;  %170 = vst [vmem:[%s148_s25 + $0x18] sm:$0xff] %v169_v11  ;;  %v194_v13 = vld [vmem:[%s179_s24 + $0x8] sm:$0xff]  ;;  %v196_v14 = vld [vmem:[%s179_s24 + $0x10] sm:$0xff] }
  0x21   : > { %193 = vst [vmem:[%s177_s26] sm:$0xff] %v192_v12  ;;  %v198_v15 = vld [vmem:[%s179_s24 + $0x18] sm:$0xff]  ;;  %195 = vst [vmem:[%s177_s26 + $0x8] sm:$0xff] %v194_v13 }
  0x22   : > { %197 = vst [vmem:[%s177_s26 + $0x10] sm:$0xff] %v196_v14  ;;  %199 = vst [vmem:[%s177_s26 + $0x18] sm:$0xff] %v198_v15 }
  0x23 PF: > { %p2759_p5 = scmp.ge.s32.totalorder %s3198_s11, 1  ;;  %p204_p6 = scmp.lt.s32.totalorder %s3198_s11, 3 }
  0x25   : > { %p205_p7 = pnand %p2759_p5, %p204_p6 }
  0x27   : > { %208 = sbr.rel (%p205_p7) target bundleno = 1194 (0x4aa), region = 96 }
  0x2c   : > { %s211_s21 = sand.u32 1, %s3277_s12   ;;  %s245_s27 = sand.u32 1, %s3190_s30   ;;  %v361_v16 = vlaneseq  ;;  %v3208_v31 = vmov 0.0  }
  0x2d   : > { %s3320_s22 = sshll.u32 %s211_s21, 5  ;;  %s3322_s28 = sshll.u32 %s245_s27, 1 }
  0x2e   : > { %v3324_v17 = vshrl.u32 %v361_v16, 7  ;;  %s213_s29 = scalar_lea.vmem [#allocation0], %s3320_s22  ;;  %s217_s11 = scalar_lea.vmem [#allocation1], %s3320_s22  ;;  %v3328_v24 = vand.u32 127, %v361_v16 }
  0x2f   : > { %v273_v18 = vld [vmem:[%s213_s29] sm:$0xff]  ;;  %v2770_v19 = vld [vmem:[%s213_s29 + $0x8] sm:$0xff]  ;;  %v2772_v20 = vld [vmem:[%s213_s29 + $0x10] sm:$0xff]  ;;  %s221_s30 = scalar_lea.vmem [#allocation2], %s3320_s22  ;;  %s3338_s14 = scalar_lea.vmem [#allocation8], %s3320_s22 }
  0x30   : > { %v2774_v21 = vld [vmem:[%s213_s29 + $0x18] sm:$0xff]  ;;  %v288_v22 = vld [vmem:[%s217_s11] sm:$0xff]  ;;  %v2776_v23 = vld [vmem:[%s217_s11 + $0x8] sm:$0xff]  ;;  %v3331_v17 = vmov %v3324_v17  ;;  %332 = vst [vmem:[%s3338_s14] sm:$0xff] %v3208_v31  ;;  %s3345_s15 = scalar_lea.vmem [#allocation9], %s3320_s22  ;;  %s272_s16 = smov [#allocation12]  ;;  %v363_v24 = vmov %v3328_v24  ;;  %vm2549_vm8 = vcmp.lt.s32.totalorder %v3328_v24, 32 }
  0x31   : > { %v2778_v25 = vld [vmem:[%s217_s11 + $0x10] sm:$0xff]  ;;  %v2780_v26 = vld [vmem:[%s217_s11 + $0x18] sm:$0xff]  ;;  %v303_v27 = vld [vmem:[%s221_s30] sm:$0xff]  ;;  %v3335_v17 = vmov %v3324_v17  ;;  %2794 = vst [vmem:[%s3338_s14 + $0x8] sm:$0xff] %v3208_v31  ;;  %v376_v32 = vadd.s32 8, %v3331_v17  ;;  %s287_s17 = smov [#allocation13]  ;;  %v397_v24 = vmov %v3328_v24  ;;  %vm370_vm0 = vcmp.eq.s32.totalorder %v3331_v17, %v363_v24 }
  0x32   : > { %v2782_v28 = vld [vmem:[%s221_s30 + $0x8] sm:$0xff]  ;;  %v2784_v29 = vld [vmem:[%s221_s30 + $0x10] sm:$0xff]  ;;  %v2786_v30 = vld [vmem:[%s221_s30 + $0x18] sm:$0xff]  ;;  %2795 = vst [vmem:[%s3338_s14 + $0x10] sm:$0xff] %v3208_v31  ;;  %s225_s20 = scalar_lea.vmem [#allocation3], %s3320_s22  ;;  %s3354_s23 = scalar_lea.vmem [#allocation10], %s3320_s22  ;;  %vm404_vm4 = vcmp.eq.s32.totalorder %v3335_v17, %v397_v24 }
  0x33   : > { %2796 = vst [vmem:[%s3338_s14 + $0x18] sm:$0xff] %v3208_v31  ;;  %339 = vst [vmem:[%s3345_s15] sm:$0xff] %v3208_v31  ;;  %v318_v33 = vld [vmem:[%s225_s20] sm:$0xff]  ;;  %v2788_v34 = vld [vmem:[%s225_s20 + $0x8] sm:$0xff]  ;;  %s3361_s24 = scalar_lea.vmem [#allocation11], %s3320_s22  ;;  %v383_v36 = vadd.s32 16, %v3331_v17  ;;  %s302_s25 = smov [#allocation14]  ;;  %vm377_vm1 = vcmp.eq.s32.totalorder %v376_v32, %v363_v24 }
  0x34   : > { %2797 = vst [vmem:[%s3345_s15 + $0x8] sm:$0xff] %v3208_v31  ;;  %2798 = vst [vmem:[%s3345_s15 + $0x10] sm:$0xff] %v3208_v31  ;;  %v2790_v35 = vld [vmem:[%s225_s20 + $0x10] sm:$0xff]  ;;  %s317_s26 = smov [#allocation15]  ;;  %v2792_v37 = vld [vmem:[%s225_s20 + $0x18] sm:$0xff]  ;;  %v390_v38 = vadd.s32 24, %v3331_v17  ;;  %s360_s14 = smov %s3338_s14 }
  0x35   : > { %2799 = vst [vmem:[%s3345_s15 + $0x18] sm:$0xff] %v3208_v31  ;;  %346 = vst [vmem:[%s3354_s23] sm:$0xff] %v3208_v31  ;;  %v410_v39 = vadd.s32 8, %v3335_v17  ;;  %v417_v40 = vadd.s32 16, %v3335_v17  ;;  %v424_v41 = vadd.s32 24, %v3335_v17  ;;  %vm384_vm2 = vcmp.eq.s32.totalorder %v383_v36, %v363_v24  ;;  %s2545_s22 = smov [#allocation12]  ;;  %s2589_s29 = smov [#allocation13] }
  0x36   : > { %2800 = vst [vmem:[%s3354_s23 + $0x8] sm:$0xff] %v3208_v31  ;;  %2801 = vst [vmem:[%s3354_s23 + $0x10] sm:$0xff] %v3208_v31  ;;  %vm391_vm3 = vcmp.eq.s32.totalorder %v390_v38, %v363_v24  ;;  %v2544_v17 = vmov %v3324_v17  ;;  %s3402_s11 = smov [#allocation14]  ;;  %s2659_s30 = smov [#allocation15] }
  0x37   : > { %2802 = vst [vmem:[%s3354_s23 + $0x18] sm:$0xff] %v3208_v31  ;;  %353 = vst [vmem:[%s3361_s24] sm:$0xff] %v3208_v31  ;;  %vm411_vm5 = vcmp.eq.s32.totalorder %v410_v39, %v397_v24  ;;  %vm418_vm6 = vcmp.eq.s32.totalorder %v417_v40, %v397_v24  ;;  %vm425_vm7 = vcmp.eq.s32.totalorder %v424_v41, %v397_v24  ;;  %v2585_v24 = vmov %v3328_v24 }
  0x38   : > { %2803 = vst [vmem:[%s3361_s24 + $0x8] sm:$0xff] %v3208_v31  ;;  %2804 = vst [vmem:[%s3361_s24 + $0x10] sm:$0xff] %v3208_v31  ;;  %v2541_v24 = vmov %v3328_v24  ;;  %v2560_v12 = vadd.s32 8, %v2544_v17 }
  0x39   : > { %2805 = vst [vmem:[%s3361_s24 + $0x18] sm:$0xff] %v3208_v31  ;;  %274 = vst [vmem:[%s272_s16] sm:$0xff] %v273_v18  ;;  %s394_s24 = smov %s3361_s24  ;;  %vm2554_vm9 = vcmp.eq.s32.totalorder %v2544_v17, %v2541_v24  ;;  %v2578_v31 = vadd.s32 24, %v2544_v17 }
  0x3a   : > { %2771 = vst [vmem:[%s272_s16 + $0x8] sm:$0xff] %v2770_v19  ;;  %2773 = vst [vmem:[%s272_s16 + $0x10] sm:$0xff] %v2772_v20  ;;  %v367_v42 = vld [vmem:[%s360_s14] sm:$0xff]  ;;  %v2806_v43 = vld [vmem:[%s360_s14 + $0x8] sm:$0xff]  ;;  %vm2561_vm10 = vcmp.eq.s32.totalorder %v2560_v12, %v2541_v24 }
  0x3b   : > { %2775 = vst [vmem:[%s272_s16 + $0x18] sm:$0xff] %v2774_v21  ;;  %289 = vst [vmem:[%s287_s17] sm:$0xff] %v288_v22  ;;  %v2808_v44 = vld [vmem:[%s360_s14 + $0x10] sm:$0xff]  ;;  %v371_v45 = vsel %vm370_vm0, 1.0, %v367_v42  ;;  %v378_v46 = vsel %vm377_vm1, 1.0, %v2806_v43  ;;  %v2810_v48 = vld [vmem:[%s360_s14 + $0x18] sm:$0xff]  ;;  %vm2579_vm12 = vcmp.eq.s32.totalorder %v2578_v31, %v2541_v24 }
  0x3c   : > { %2777 = vst [vmem:[%s287_s17 + $0x8] sm:$0xff] %v2776_v23  ;;  %2779 = vst [vmem:[%s287_s17 + $0x10] sm:$0xff] %v2778_v25  ;;  %v385_v47 = vsel %vm384_vm2, 1.0, %v2808_v44  ;;  %v392_v51 = vsel %vm391_vm3, 1.0, %v2810_v48 }
  0x3d   : > { %2781 = vst [vmem:[%s287_s17 + $0x18] sm:$0xff] %v2780_v26  ;;  %304 = vst [vmem:[%s302_s25] sm:$0xff] %v303_v27 }
  0x3e   : > { %2783 = vst [vmem:[%s302_s25 + $0x8] sm:$0xff] %v2782_v28  ;;  %2785 = vst [vmem:[%s302_s25 + $0x10] sm:$0xff] %v2784_v29 }
  0x3f   : > { %2787 = vst [vmem:[%s302_s25 + $0x18] sm:$0xff] %v2786_v30  ;;  %319 = vst [vmem:[%s317_s26] sm:$0xff] %v318_v33  ;;  %v2569_v30 = vadd.s32 16, %v2544_v17  ;;  %v2588_v17 = vmov %v3324_v17 }
  0x40   : > { %2789 = vst [vmem:[%s317_s26 + $0x8] sm:$0xff] %v2788_v34  ;;  %2791 = vst [vmem:[%s317_s26 + $0x10] sm:$0xff] %v2790_v35  ;;  %v401_v49 = vld [vmem:[%s394_s24] sm:$0xff]  ;;  %v2812_v50 = vld [vmem:[%s394_s24 + $0x8] sm:$0xff]  ;;  %v2623_v17 = vmov %v3324_v17 }
  0x41   : > { %2793 = vst [vmem:[%s317_s26 + $0x18] sm:$0xff] %v2792_v37  ;;  %372 = vst [vmem:[%s360_s14] sm:$0xff] %v371_v45  ;;  %v405_v52 = vsel %vm404_vm4, 1.0, %v401_v49  ;;  %v412_v53 = vsel %vm411_vm5, 1.0, %v2812_v50  ;;  %v2814_v54 = vld [vmem:[%s394_s24 + $0x10] sm:$0xff]  ;;  %v2816_v55 = vld [vmem:[%s394_s24 + $0x18] sm:$0xff]  ;;  %vm2570_vm11 = vcmp.eq.s32.totalorder %v2569_v30, %v2541_v24  ;;  %v2620_v24 = vmov %v3328_v24 }
  0x42   : > { %2807 = vst [vmem:[%s360_s14 + $0x8] sm:$0xff] %v378_v46  ;;  %2809 = vst [vmem:[%s360_s14 + $0x10] sm:$0xff] %v385_v47  ;;  %v419_v56 = vsel %vm418_vm6, 1.0, %v2814_v54  ;;  %v426_v57 = vsel %vm425_vm7, 1.0, %v2816_v55  ;;  %v2551_v58 = vld [vmem:[%s2545_s22] sm:$0xff]  ;;  %v2818_v59 = vld [vmem:[%s2545_s22 + $0x8] sm:$0xff]  ;;  %v2658_v17 = vmov %v3324_v17  ;;  %v2655_v24 = vmov %v3328_v24 }
  0x43   : > { %2811 = vst [vmem:[%s360_s14 + $0x18] sm:$0xff] %v392_v51  ;;  %406 = vst [vmem:[%s394_s24] sm:$0xff] %v405_v52  ;;  %v2819_v60 = vld [vmem:[%s2545_s22 + $0x10] sm:$0xff]  ;;  %v2552_v61 = vsel %vm2549_vm8, %v2551_v58, 0.0  ;;  %v2558_v62 = vsel %vm2549_vm8, %v2818_v59, 0.0  ;;  %v2820_v0 = vld [vmem:[%s2545_s22 + $0x18] sm:$0xff]  ;;  %vm2668_vm13 = vcmp.eq.s32.totalorder %v2658_v17, %v2655_v24 }
  0x44   : > { %2813 = vst [vmem:[%s394_s24 + $0x8] sm:$0xff] %v412_v53  ;;  %2815 = vst [vmem:[%s394_s24 + $0x10] sm:$0xff] %v419_v56  ;;  %v2567_v63 = vsel %vm2549_vm8, %v2819_v60, 0.0  ;;  %v2595_v1 = vld [vmem:[%s2589_s29] sm:$0xff]  ;;  %v2553_v2 = vmul.f32 %v2552_v61, %v2552_v61  ;;  %v2559_v3 = vmul.f32 %v2558_v62, %v2558_v62  ;;  %v2576_v5 = vsel %vm2549_vm8, %v2820_v0, 0.0  ;;  %v2821_v6 = vld [vmem:[%s2589_s29 + $0x8] sm:$0xff] }
  0x45   : > { %2817 = vst [vmem:[%s394_s24 + $0x18] sm:$0xff] %v426_v57  ;;  %v2568_v4 = vmul.f32 %v2567_v63, %v2567_v63  ;;  %v2596_v7 = vsel %vm2549_vm8, %v2595_v1, 0.0  ;;  %v2577_v9 = vmul.f32 %v2576_v5, %v2576_v5  ;;  %v2822_v10 = vld [vmem:[%s2589_s29 + $0x10] sm:$0xff]  ;;  %v2602_v11 = vsel %vm2549_vm8, %v2821_v6, 0.0  ;;  %v2823_v15 = vld [vmem:[%s2589_s29 + $0x18] sm:$0xff] }
  0x46   : > { %v2564_v8 = vadd.f32 %v2559_v3, %v2553_v2  ;;  %v2597_v14 = vmul.f32 %v2596_v7, %v2596_v7  ;;  %v2608_v16 = vsel %vm2549_vm8, %v2822_v10, 0.0  ;;  %v2603_v19 = vmul.f32 %v2602_v11, %v2602_v11  ;;  %v2630_v20 = vld [vmem:[%s3402_s11] sm:$0xff]  ;;  %v2824_v22 = vld [vmem:[%s3402_s11 + $0x8] sm:$0xff]  ;;  %v2825_v35 = vld [vmem:[%s3402_s11 + $0x10] sm:$0xff] }
  0x47   : > { %v2614_v21 = vsel %vm2549_vm8, %v2823_v15, 0.0  ;;  %v2555_v23 = vsel %vm2554_vm9, 0.0, %v2553_v2  ;;  %v2609_v26 = vmul.f32 %v2608_v16, %v2608_v16  ;;  %v2562_v27 = vsel %vm2561_vm10, 0.0, %v2559_v3  ;;  %v2826_v38 = vld [vmem:[%s3402_s11 + $0x18] sm:$0xff] }
  0x48   : > { %v2573_v13 = vadd.f32 %v2568_v4, %v2564_v8  ;;  %v2631_v28 = vsel %vm2549_vm8, %v2630_v20, 0.0  ;;  %v2563_v29 = vadd.f32 %v2562_v27, %v2555_v23  ;;  %v2615_v33 = vmul.f32 %v2614_v21, %v2614_v21  ;;  %v2665_v45 = vld [vmem:[%s2659_s30] sm:$0xff]  ;;  %v2827_v50 = vld [vmem:[%s2659_s30 + $0x8] sm:$0xff]  ;;  %v2828_v55 = vld [vmem:[%s2659_s30 + $0x10] sm:$0xff] }
  0x49   : > { %v2637_v34 = vsel %vm2549_vm8, %v2824_v22, 0.0  ;;  %v2632_v37 = vmul.f32 %v2631_v28, %v2631_v28  ;;  %v2571_v39 = vsel %vm2570_vm11, 0.0, %v2568_v4  ;;  %v2580_v40 = vsel %vm2579_vm12, 0.0, %v2577_v9  ;;  %v2829_v60 = vld [vmem:[%s2659_s30 + $0x18] sm:$0xff] }
  0x4a   : > { %v2582_v18 = vadd.f32 %v2577_v9, %v2573_v13  ;;  %v2643_v41 = vsel %vm2549_vm8, %v2825_v35, 0.0  ;;  %v2572_v42 = vadd.f32 %v2571_v39, %v2563_v29  ;;  %v2638_v44 = vmul.f32 %v2637_v34, %v2637_v34 }
  0x4b   : > { %v2649_v46 = vsel %vm2549_vm8, %v2826_v38, 0.0  ;;  %v2644_v49 = vmul.f32 %v2643_v41, %v2643_v41  ;;  %v2666_v51 = vsel %vm2549_vm8, %v2665_v45, 0.0  ;;  %v2674_v56 = vsel %vm2549_vm8, %v2827_v50, 0.0 }
  0x4c   : > { %v2599_v25 = vadd.f32 %v2597_v14, %v2582_v18  ;;  %v2581_v47 = vadd.f32 %v2580_v40, %v2572_v42  ;;  %v2650_v54 = vmul.f32 %v2649_v46, %v2649_v46  ;;  %v2667_v59 = vmul.f32 %v2666_v51, %v2666_v51 }
  0x4d   : > { %v2683_v61 = vsel %vm2549_vm8, %v2828_v55, 0.0  ;;  %v2675_v0 = vmul.f32 %v2674_v56, %v2674_v56  ;;  %v2692_v1 = vsel %vm2549_vm8, %v2829_v60, 0.0  ;;  %v2676_v6 = vadd.s32 8, %v2658_v17 }
  0x4e   : > { %v2605_v32 = vadd.f32 %v2603_v19, %v2599_v25  ;;  %v2598_v52 = vadd.f32 %v2597_v14, %v2581_v47  ;;  %v2684_v4 = vmul.f32 %v2683_v61, %v2683_v61  ;;  %v2693_v8 = vmul.f32 %v2692_v1, %v2692_v1 }
  0x4f   : > { %v2685_v10 = vadd.s32 16, %v2658_v17  ;;  %vm2677_vm14 = vcmp.eq.s32.totalorder %v2676_v6, %v2655_v24  ;;  %v2694_v13 = vadd.s32 24, %v2658_v17  ;;  %v2669_v15 = vsel %vm2668_vm13, 0.0, %v2667_v59 }
  0x50   : > { %v2611_v36 = vadd.f32 %v2609_v26, %v2605_v32  ;;  %v2604_v57 = vadd.f32 %v2603_v19, %v2598_v52  ;;  %v2678_v18 = vsel %vm2677_vm14, 0.0, %v2675_v0 }
  0x51   : > { %vm2686_vm15 = vcmp.eq.s32.totalorder %v2685_v10, %v2655_v24  ;;  %vm2695_vm0 = vcmp.eq.s32.totalorder %v2694_v13, %v2655_v24 }
  0x52   : > { %v2617_v43 = vadd.f32 %v2615_v33, %v2611_v36  ;;  %v2610_v62 = vadd.f32 %v2609_v26, %v2604_v57  ;;  %v2687_v20 = vsel %vm2686_vm15, 0.0, %v2684_v4  ;;  %v2696_v22 = vsel %vm2695_vm0, 0.0, %v2693_v8 }
  0x54   : > { %v2634_v48 = vadd.f32 %v2632_v37, %v2617_v43  ;;  %v2616_v2 = vadd.f32 %v2615_v33, %v2610_v62 }
  0x56   : > { %v2640_v53 = vadd.f32 %v2638_v44, %v2634_v48  ;;  %v2633_v5 = vadd.f32 %v2632_v37, %v2616_v2 }
  0x58   : > { %v2646_v58 = vadd.f32 %v2644_v49, %v2640_v53  ;;  %v2639_v9 = vadd.f32 %v2638_v44, %v2633_v5 }
  0x5a   : > { %v2652_v63 = vadd.f32 %v2650_v54, %v2646_v58  ;;  %v2645_v12 = vadd.f32 %v2644_v49, %v2639_v9 }
  0x5c   : > { %v2671_v3 = vadd.f32 %v2667_v59, %v2652_v63  ;;  %v2651_v16 = vadd.f32 %v2650_v54, %v2645_v12 }
  0x5e   : > { %v2680_v7 = vadd.f32 %v2675_v0, %v2671_v3  ;;  %v2670_v19 = vadd.f32 %v2669_v15, %v2651_v16 }
  0x60   : > { %v2689_v11 = vadd.f32 %v2684_v4, %v2680_v7  ;;  %v2679_v21 = vadd.f32 %v2678_v18, %v2670_v19 }
  0x62   : > { %v2698_v14 = vadd.f32 %v2693_v8, %v2689_v11  ;;  %v2688_v23 = vadd.f32 %v2687_v20, %v2679_v21 }
  0x64   : > { %2699 = vadd.xlane.f32.xlu0 %v2698_v14  ;;  %v2697_v25 = vadd.f32 %v2696_v22, %v2688_v23 }
  0x68   : > { %2707 = vadd.xlane.f32.xlu0 %v2697_v25 }
  0xed   : > { %v2700_v26 = vpop.xlane.xlu0 %2699 }
  0xee   : > { %v2701_v27 = vrot.slane %v2700_v26, 4 }
  0xf0   : > { %v2702_v28 = vadd.f32 %v2701_v27, %v2700_v26 }
  0xf1   : > { %v2708_v30 = vpop.xlane.xlu0 %2707 }
  0xf2   : > { %v2703_v29 = vrot.slane %v2702_v28, 2  ;;  %v2709_v31 = vrot.slane %v2708_v30, 4 }
  0xf4   : > { %v2710_v32 = vadd.f32 %v2709_v31, %v2708_v30  ;;  %v2704_v33 = vadd.f32 %v2703_v29, %v2702_v28 }
  0xf6   : > { %v2711_v34 = vrot.slane %v2710_v32, 2  ;;  %v2705_v36 = vrot.slane %v2704_v33, 1 }
  0xf8   : > { %v2712_v35 = vadd.f32 %v2711_v34, %v2710_v32  ;;  %v2706_v39 = vadd.f32 %v2705_v36, %v2704_v33 }
  0xfa   : > { %v2713_v37 = vrot.slane %v2712_v35, 1 }
  0xfc   : > { %v2714_v38 = vadd.f32 %v2713_v37, %v2712_v35 }
  0xfe   : > { %3109 = vpush %v2714_v38 }
  0xff   : > { %3111 = vpush %v2706_v39 }
 0x12f   : > { %s3110_s16 = spop %3109 }
 0x130   : > { %s3112_s17 = spop %3111 }
 0x131   : > { %s2717_s20 = smul.f32 1e-10, %s3112_s17 }
 0x133   : > { %p2718_p8 = scmp.le.f32.partialorder %s3110_s16, %s2717_s20 }
 0x134   : > { %s3433_s25 = smov (!%p2718_p8), 0  }
 0x135   : > { %2721 = sbr.rel (%p2718_p8) target bundleno = 1139 (0x473), region = 586 }
 0x13a LB: >> { %s3438_s26 = smov 0   ;;  %s3202_s25 = sphi %s3433_s25, %s4319_s25  }
 0x13b LB: >>> { %s628_s22 = smov [#allocation12]  ;;  %v632_v24 = vmov %v3328_v24  ;;  %v635_v17 = vmov %v3324_v17  ;;  %s666_s29 = smov [#allocation13]  ;;  %s3206_s26 = sphi %s3438_s26, %s627_s26  }
 0x13c   : >>> { %v670_v24 = vmov %v3328_v24  ;;  %v673_v17 = vmov %v3324_v17  ;;  %v636_v40 = vld [vmem:[%s628_s22] sm:$0xff]  ;;  %vm639_vm1 = vcmp.eq.s32.totalorder %v635_v17, %v632_v24  ;;  %v2830_v41 = vld [vmem:[%s628_s22 + $0x8] sm:$0xff]  ;;  %v644_v42 = vadd.s32 8, %v635_v17  ;;  %v2831_v46 = vld [vmem:[%s628_s22 + $0x10] sm:$0xff]  ;;  %s704_s11 = smov [#allocation15]  ;;  %s629_s30 = smov [#allocation16] }
 0x13d   : >>> { %v650_v43 = vadd.s32 16, %v635_v17  ;;  %v656_v44 = vadd.s32 24, %v635_v17  ;;  %v640_v45 = vsel %vm639_vm1, %v636_v40, 0.0  ;;  %v2832_v47 = vld [vmem:[%s628_s22 + $0x18] sm:$0xff]  ;;  %vm677_vm2 = vcmp.eq.s32.totalorder %v673_v17, %v670_v24  ;;  %v674_v50 = vld [vmem:[%s666_s29] sm:$0xff]  ;;  %v2833_v51 = vld [vmem:[%s666_s29 + $0x8] sm:$0xff]  ;;  %s3477_s14 = smov %s3338_s14  ;;  %s3480_s15 = smov %s3345_s15 }
 0x13e   : >>> { %v682_v48 = vadd.s32 8, %v673_v17  ;;  %v688_v49 = vadd.s32 16, %v673_v17  ;;  %vm645_vm3 = vcmp.eq.s32.totalorder %v644_v42, %v632_v24  ;;  %v2834_v52 = vld [vmem:[%s666_s29 + $0x10] sm:$0xff]  ;;  %v694_v53 = vadd.s32 24, %v673_v17  ;;  %v2835_v56 = vld [vmem:[%s666_s29 + $0x18] sm:$0xff]  ;;  %v712_v59 = vld [vmem:[%s704_s11] sm:$0xff]  ;;  %s3486_s23 = smov %s3354_s23  ;;  %s3489_s24 = smov %s3361_s24 }
 0x13f   : >>> { %vm651_vm4 = vcmp.eq.s32.totalorder %v650_v43, %v632_v24  ;;  %vm657_vm5 = vcmp.eq.s32.totalorder %v656_v44, %v632_v24  ;;  %v646_v54 = vsel %vm645_vm3, %v2830_v41, %v640_v45  ;;  %v678_v55 = vsel %vm677_vm2, %v674_v50, 0.0  ;;  %v2836_v0 = vld [vmem:[%s704_s11 + $0x8] sm:$0xff]  ;;  %v2837_v4 = vld [vmem:[%s704_s11 + $0x10] sm:$0xff]  ;;  %v2838_v8 = vld [vmem:[%s704_s11 + $0x18] sm:$0xff]  ;;  %s667_s16 = smov [#allocation17]  ;;  %s705_s17 = smov [#allocation18] }
 0x140   : >>> { %vm683_vm6 = vcmp.eq.s32.totalorder %v682_v48, %v670_v24  ;;  %vm689_vm7 = vcmp.eq.s32.totalorder %v688_v49, %v670_v24  ;;  %v652_v57 = vsel %vm651_vm4, %v2831_v46, %v646_v54  ;;  %vm695_vm9 = vcmp.eq.s32.totalorder %v694_v53, %v670_v24  ;;  %s746_s20 = smov [#allocation17]  ;;  %s744_s22 = smov [#allocation16] }
 0x141   : >>> { %v684_v58 = vsel %vm683_vm6, %v2833_v51, %v678_v55  ;;  %v708_v24 = vmov %v3328_v24  ;;  %v658_v60 = vsel %vm657_vm5, %v2832_v47, %v652_v57  ;;  %v711_v17 = vmov %v3324_v17  ;;  %s748_s29 = smov [#allocation18]  ;;  %s783_s11 = smov [#allocation19] }
 0x142   : >>> { %v690_v61 = vsel %vm689_vm7, %v2834_v52, %v684_v58  ;;  %v659_v62 = vrot.slane %v658_v60, 4  ;;  %vm715_vm10 = vcmp.eq.s32.totalorder %v711_v17, %v708_v24  ;;  %v720_v1 = vadd.s32 8, %v711_v17  ;;  %s851_s27 = smov [#allocation23]  ;;  %s3921_s21 = smov [#allocation14] }
 0x143   : >>> { %v696_v63 = vsel %vm695_vm9, %v2835_v56, %v690_v61  ;;  %v716_v3 = vsel %vm715_vm10, %v712_v59, 0.0  ;;  %v726_v5 = vadd.s32 16, %v711_v17  ;;  %v732_v6 = vadd.s32 24, %v711_v17  ;;  %s3932_s0 = smov [#allocation13]  ;;  %s4310_s1 = smov 127  }
 0x144   : >>> { %v697_v2 = vrot.slane %v696_v63, 4  ;;  %v660_v7 = vadd.f32 %v659_v62, %v658_v60  ;;  %vm721_vm11 = vcmp.eq.s32.totalorder %v720_v1, %v708_v24  ;;  %v813_v17 = vmov %v3324_v17  ;;  %s3939_s2 = smov [#allocation12]  ;;  %s3942_s3 = smov [#allocation14] }
 0x145   : >>> { %v722_v10 = vsel %vm721_vm11, %v2836_v0, %v716_v3  ;;  %vm727_vm12 = vcmp.eq.s32.totalorder %v726_v5, %v708_v24  ;;  %vm733_vm13 = vcmp.eq.s32.totalorder %v732_v6, %v708_v24  ;;  %v829_v17 = vmov %v3324_v17  ;;  %s3952_s18 = smov [#allocation15]  ;;  %s3956_s10 = smov [#allocation13] }
 0x146   : >>> { %v698_v9 = vadd.f32 %v697_v2, %v696_v63  ;;  %v661_v11 = vrot.slane %v660_v7, 2  ;;  %v728_v12 = vsel %vm727_vm12, %v2837_v4, %v722_v10  ;;  %v876_v17 = vmov %v3324_v17  ;;  %s3962_s13 = smov [#allocation15]  ;;  %s3968_s9 = smov [#allocation14] }
 0x147   : >>> { %v734_v14 = vsel %vm733_vm13, %v2838_v8, %v728_v12  ;;  %v814_v60 = vadd.s32 8, %v813_v17  ;;  %v810_v24 = vmov %v3328_v24  ;;  %v798_v17 = vmov %v3324_v17  ;;  %s3971_s8 = smov [#allocation15]  ;;  %s627_s26 = sadd.s32 1, %s3206_s26  }
 0x148   : >>> { %v699_v13 = vrot.slane %v698_v9, 2  ;;  %v662_v15 = vadd.f32 %v661_v11, %v660_v7  ;;  %v735_v16 = vrot.slane %v734_v14, 4  ;;  %v795_v24 = vmov %v3328_v24  ;;  %p624_p9 = scmp.ge.s32.totalorder %s627_s26, 63  }
 0x149   : >>> { %v830_v61 = vadd.s32 16, %v829_v17  ;;  %v826_v24 = vmov %v3328_v24  ;;  %v877_v62 = vadd.s32 8, %v876_v17  ;;  %v892_v17 = vmov %v3324_v17 }
 0x14a   : >>> { %v700_v18 = vadd.f32 %v699_v13, %v698_v9  ;;  %v663_v19 = vrot.slane %v662_v15, 1  ;;  %v736_v20 = vadd.f32 %v735_v16, %v734_v14  ;;  %v873_v24 = vmov %v3328_v24 }
 0x14b   : >>> { %vm815_vm2 = vcmp.eq.s32.totalorder %v814_v60, %v810_v24  ;;  %vm800_vm3 = vcmp.eq.s32.totalorder %v798_v17, %v795_v24  ;;  %vm831_vm4 = vcmp.eq.s32.totalorder %v830_v61, %v826_v24  ;;  %v889_v24 = vmov %v3328_v24 }
 0x14c   : >>> { %v701_v21 = vrot.slane %v700_v18, 1  ;;  %v664_v22 = vadd.f32 %v663_v19, %v662_v15  ;;  %v737_v23 = vrot.slane %v736_v20, 2  ;;  %vm878_vm5 = vcmp.eq.s32.totalorder %v877_v62, %v873_v24 }
 0x14d   : >>> { %v893_v1 = vadd.s32 16, %v892_v17  ;;  %v858_v24 = vmov %v3328_v24  ;;  %v861_v17 = vmov %v3324_v17  ;;  %vm1581_vm11 = vcmp.eq.s32.totalorder %v3324_v17, 0 }
 0x14e   : >>> { %v702_v25 = vadd.f32 %v701_v21, %v700_v18  ;;  %665 = vst [vmem:[%s629_s30] sm:$0x1] %v664_v22  ;;  %v738_v26 = vadd.f32 %v737_v23, %v736_v20  ;;  %s785_s30 = smov [#allocation20]  ;;  %v908_v17 = vmov %v3324_v17  ;;  %vm863_vm7 = vcmp.eq.s32.totalorder %v861_v17, %v858_v24 }
 0x14f   : >>> { %v845_v17 = vmov %v3324_v17  ;;  %vm894_vm6 = vcmp.eq.s32.totalorder %v893_v1, %v889_v24  ;;  %v909_v10 = vadd.s32 24, %v908_v17  ;;  %v905_v24 = vmov %v3328_v24 }
 0x150   : >>> { %703 = vst [vmem:[%s667_s16] sm:$0x1] %v702_v25  ;;  %v739_v27 = vrot.slane %v738_v26, 1  ;;  %s742_s16 = smov [#allocation21]  ;;  %v846_v11 = vadd.s32 24, %v845_v17  ;;  %v842_v24 = vmov %v3328_v24  ;;  %vm4290_vm12 = vcmp.eq.s32.totalorder %v3324_v17, 7 }
 0x151   : >>> { %s787_s16 = smov %s742_s16  ;;  %vm910_vm9 = vcmp.eq.s32.totalorder %v909_v10, %v905_v24  ;;  %v3770_v17 = vmov %v3324_v17 }
 0x152   : >>> { %v740_v28 = vadd.f32 %v739_v27, %v738_v26  ;;  %vm847_vm10 = vcmp.eq.s32.totalorder %v846_v11, %v842_v24  ;;  %v1166_v17 = vmov %v3324_v17  ;;  %v1201_v24 = vmov %v3328_v24 }
 0x153   : >>> { %vm1208_vm13 = vcmp.eq.s32.totalorder %v3770_v17, %v1201_v24  ;;  %v1163_v24 = vmov %v3328_v24 }
 0x154   : >>> { %741 = vst [vmem:[%s705_s17] sm:$0x1] %v740_v28  ;;  %s743_s17 = smov [#allocation22]  ;;  %v3794_v24 = vmov %v3328_v24 }
 0x155   : >>> { %v745_v31 = vld [vmem:[%s744_s22] sm:$0xff]  ;;  %s789_s17 = smov %s743_s17  ;;  %s791_s22 = smov [#allocation21] }
 0x156   : >>> { %v768_v46 = vand.u32 2147483647, %v745_v31 }
 0x157   : >>> { %v747_v29 = vld [vmem:[%s746_s20] sm:$0xff]  ;;  %s806_s20 = smov [#allocation21] }
 0x158   : >>> { %v751_v30 = vmul.f32 2.0, %v747_v29  ;;  %v769_v49 = vand.u32 2147483647, %v747_v29 }
 0x15a   : >>> { %3160 = vrcp.f32 %v751_v30 }
 0x15b   : >>> { %v749_v32 = vld [vmem:[%s748_s29] sm:$0xff]  ;;  %s822_s29 = smov [#allocation21] }
 0x15c   : >>> { %v750_v33 = vsub.f32 %v749_v32, %v745_v31  ;;  %v770_v47 = vand.u32 2147483647, %v749_v32 }
 0x15e   : >>> { %v771_v48 = vmin.f32 %v768_v46, %v770_v47 }
 0x160   : >>> { %v772_v50 = vmul.f32 1.1920929e-08, %v771_v48 }
 0x162   : >>> { %vm773_vm1 = vcmp.le.f32.partialorder %v769_v49, %v772_v50 }
 0x167   : >>> { %v3161_v34 = vpop.eup %3160 }
 0x168   : >>> { %v753_v35 = vmul.f32 %v3161_v34, %v750_v33  ;;  %v1750_v33 = vld [vmem:[%s3480_s15] sm:$0xff] }
 0x16a   : >>> { %v755_v36 = vmul.f32 %v753_v35, %v753_v35  ;;  %vm754_vm0 = vcmp.ge.f32.partialorder %v753_v35, 0.0 }
 0x16c   : >>> { %v756_v37 = vadd.f32 1.0, %v755_v36  ;;  %v1752_v36 = vld [vmem:[%s3489_s24] sm:$0xff] }
 0x16e   : >>> { %3162 = vrsqrt.f32 %v756_v37  ;;  %vm759_vm14 = vcmp.eq.f32.partialorder %v756_v37, inf  ;;  %v762_v39 = vand.u32 2147483648, %v756_v37  ;;  %vm761_vm15 = vcmp.eq.f32.partialorder %v756_v37, 0.0 }
 0x17b   : >>> { %v3163_v38 = vpop.eup %3162 }
 0x17c   : >>> { %v758_v40 = vmul.f32 %v3163_v38, %v756_v37 }
 0x17e   : >>> { %v760_v41 = vsel %vm759_vm14, %v756_v37, %v758_v40 }
 0x17f   : >>> { %v763_v42 = vsel %vm761_vm15, %v762_v39, %v760_v41 }
 0x180   : >>> { %v764_v43 = vxor.u32 2147483648, %v763_v42 }
 0x182   : >>> { %v765_v44 = vsel %vm754_vm0, %v763_v42, %v764_v43 }
 0x183   : >>> { %v766_v45 = vadd.f32 %v765_v44, %v753_v35  ;;  %v1751_v35 = vld [vmem:[%s3486_s23] sm:$0xff] }
 0x185   : >>> { %3164 = vrcp.f32 %v766_v45 }
 0x192   : >>> { %v3165_v51 = vpop.eup %3164 }
 0x193   : >>> { %v774_v52 = vsel %vm773_vm1, 0.0, %v3165_v51  ;;  %vm1171_vm1 = vcmp.eq.s32.totalorder %v1166_v17, %v1163_v24 }
 0x194   : >>> { %v775_v53 = vmul.f32 %v774_v52, %v774_v52  ;;  %v779_v54 = vmul.f32 %v774_v52, %v747_v29 }
 0x196   : >>> { %v776_v55 = vadd.f32 1.0, %v775_v53  ;;  %v780_v56 = vsub.f32 %v745_v31, %v779_v54  ;;  %v782_v57 = vadd.f32 %v779_v54, %v749_v32  ;;  %v1749_v32 = vld [vmem:[%s3477_s14] sm:$0xff] }
 0x198   : >>> { %3166 = vrsqrt.f32 %v776_v55  ;;  %784 = vst [vmem:[%s783_s11] sm:$0xff] %v780_v56  ;;  %786 = vst [vmem:[%s785_s30] sm:$0xff] %v782_v57  ;;  %s869_s11 = smov [#allocation22]  ;;  %s885_s30 = smov [#allocation22] }
 0x1a5   : >>> { %v3167_v58 = vpop.eup %3166 }
 0x1a6   : >>> { %788 = vst [vmem:[%s787_s16] sm:$0xff] %v3167_v58  ;;  %v778_v59 = vmul.f32 %v3167_v58, %v774_v52  ;;  %s854_s16 = smov [#allocation22] }
 0x1a8   : >>> { %790 = vst [vmem:[%s789_s17] sm:$0xff] %v778_v59  ;;  %s901_s17 = smov [#allocation22] }
 0x1ad   : >>> { %v807_v63 = vld [vmem:[%s806_s20] ss:$0 sm:$0xff]  ;;  %s838_s20 = smov [#allocation21] }
 0x1ae   : >>> { %v792_v0 = vld [vmem:[%s791_s22] ss:$0 sm:$0xff]  ;;  %v816_v2 = vsel %vm815_vm2, %v807_v63, 0.0  ;;  %s804_s22 = smov [#allocation23] }
 0x1af   : >>> { %v801_v3 = vsel %vm800_vm3, %v792_v0, 0.0  ;;  %v823_v4 = vld [vmem:[%s822_s29] ss:$0 sm:$0xff]  ;;  %817 = vadd.xlane.f32.xlu1 %v816_v2  ;;  %s819_s29 = smov [#allocation23] }
 0x1b0   : >>> { %802 = vadd.xlane.f32.xlu0 %v801_v3  ;;  %v870_v5 = vld [vmem:[%s869_s11] ss:$0 sm:$0xff]  ;;  %v832_v6 = vsel %vm831_vm4, %v823_v4, 0.0  ;;  %s835_s11 = smov [#allocation23] }
 0x1b1   : >>> { %v879_v7 = vsel %vm878_vm5, %v870_v5, 0.0  ;;  %v886_v8 = vld [vmem:[%s885_s30] ss:$0 sm:$0xff]  ;;  %s867_s30 = smov [#allocation24] }
 0x1b2   : >>> { %v855_v9 = vld [vmem:[%s854_s16] ss:$0 sm:$0xff]  ;;  %v895_v12 = vsel %vm894_vm6, %v886_v8, 0.0  ;;  %s882_s16 = smov [#allocation24] }
 0x1b3   : >>> { %880 = vadd.xlane.f32.xlu1 %v879_v7  ;;  %v864_v13 = vsel %vm863_vm7, %v855_v9, 0.0  ;;  %v902_v14 = vld [vmem:[%s901_s17] ss:$0 sm:$0xff]  ;;  %s898_s17 = smov [#allocation24] }
 0x1b4   : >>> { %833 = vadd.xlane.f32.xlu0 %v832_v6  ;;  %v839_v15 = vld [vmem:[%s838_s20] ss:$0 sm:$0xff]  ;;  %v911_v16 = vsel %vm910_vm9, %v902_v14, 0.0  ;;  %s914_s20 = smov [#allocation24] }
 0x1b5   : >>> { %v848_v18 = vsel %vm847_vm10, %v839_v15, 0.0 }
 0x1b7   : >>> { %896 = vadd.xlane.f32.xlu1 %v895_v12 }
 0x1b8   : >>> { %865 = vadd.xlane.f32.xlu0 %v864_v13 }
 0x1bb   : >>> { %912 = vadd.xlane.f32.xlu1 %v911_v16 }
 0x1bc   : >>> { %849 = vadd.xlane.f32.xlu0 %v848_v18 }
 0x238   : >>> { %v818_v19 = vpop.xlane.xlu1 %817 }
 0x239   : >>> { %v803_v20 = vpop.xlane.xlu0 %802 }
 0x23a   : >>> { %805 = vst [vmem:[%s804_s22] sm:$0xff] %v803_v20  ;;  %s3467_s22 = smov [#allocation12] }
 0x23b   : >>> { %2839 = vst [vmem:[%s819_s29 + $0x8] sm:$0xff] %v818_v19  ;;  %s3469_s29 = smov [#allocation13]  ;;  %v925_v28 = vld [vmem:[%s3467_s22] sm:$0xff] }
 0x23c   : >>> { %v881_v22 = vpop.xlane.xlu1 %880  ;;  %v926_v29 = vld [vmem:[%s3469_s29] sm:$0xff] }
 0x23d   : >>> { %v834_v21 = vpop.xlane.xlu0 %833 }
 0x23e   : >>> { %2840 = vst [vmem:[%s835_s11 + $0x10] sm:$0xff] %v834_v21  ;;  %s3471_s11 = smov [#allocation14] }
 0x23f   : >>> { %v927_v30 = vld [vmem:[%s3471_s11] sm:$0xff] }
 0x240   : >>> { %v897_v23 = vpop.xlane.xlu1 %896 }
 0x241   : >>> { %v866_v25 = vpop.xlane.xlu0 %865 }
 0x242   : >>> { %868 = vst [vmem:[%s867_s30] sm:$0xff] %v866_v25  ;;  %s3473_s30 = smov [#allocation15] }
 0x243   : >>> { %2842 = vst [vmem:[%s882_s16 + $0x8] sm:$0xff] %v881_v22  ;;  %s919_s16 = smov [#allocation24]  ;;  %v928_v31 = vld [vmem:[%s3473_s30] sm:$0xff] }
 0x244   : >>> { %2843 = vst [vmem:[%s898_s17 + $0x10] sm:$0xff] %v897_v23  ;;  %v913_v26 = vpop.xlane.xlu1 %912  ;;  %s1743_s17 = smov [#allocation24] }
 0x245   : >>> { %v850_v27 = vpop.xlane.xlu0 %849  ;;  %2844 = vst [vmem:[%s914_s20 + $0x18] sm:$0xff] %v913_v26  ;;  %s1741_s20 = smov [#allocation23] }
 0x246   : >>> { %2841 = vst [vmem:[%s851_s27 + $0x18] sm:$0xff] %v850_v27  ;;  %s917_s27 = smov [#allocation23] }
 0x24c   : >>> { %v920_v34 = vld [vmem:[%s919_s16] sm:$0xff]  ;;  %s948_s16 = smov [#allocation24] }
 0x24d   : >>> { %v930_v37 = vmul.f32 %v927_v30, %v920_v34  ;;  %v933_v38 = vmul.f32 %v928_v31, %v920_v34  ;;  %v935_v39 = vmul.f32 %v925_v28, %v920_v34  ;;  %v938_v40 = vmul.f32 %v926_v29, %v920_v34  ;;  %v1744_v41 = vld [vmem:[%s1743_s17] sm:$0xff]  ;;  %s945_s17 = smov [#allocation23]  ;;  %v2846_v0 = vld [vmem:[%s948_s16 + $0x8] sm:$0xff]  ;;  %s982_s16 = smov [#allocation24] }
 0x24e   : >>> { %v918_v42 = vld [vmem:[%s917_s27] sm:$0xff]  ;;  %v1754_v47 = vmul.f32 %v1751_v35, %v1744_v41  ;;  %v1757_v48 = vmul.f32 %v1752_v36, %v1744_v41  ;;  %v1759_v49 = vmul.f32 %v1749_v32, %v1744_v41  ;;  %v1762_v50 = vmul.f32 %v1750_v33, %v1744_v41  ;;  %s3499_s27 = smov [#allocation12]  ;;  %v2845_v1 = vld [vmem:[%s945_s17 + $0x8] sm:$0xff]  ;;  %s979_s17 = smov [#allocation23] }
 0x24f   : >>> { %v929_v43 = vmul.f32 %v925_v28, %v918_v42  ;;  %v932_v44 = vmul.f32 %v926_v29, %v918_v42  ;;  %v936_v45 = vmul.f32 %v927_v30, %v918_v42  ;;  %v939_v46 = vmul.f32 %v928_v31, %v918_v42  ;;  %v1742_v51 = vld [vmem:[%s1741_s20] sm:$0xff]  ;;  %s1772_s20 = smov [#allocation24] }
 0x250   : >>> { %v1753_v56 = vmul.f32 %v1749_v32, %v1742_v51  ;;  %v1756_v57 = vmul.f32 %v1750_v33, %v1742_v51  ;;  %v1760_v58 = vmul.f32 %v1751_v35, %v1742_v51  ;;  %v1763_v59 = vmul.f32 %v1752_v36, %v1742_v51  ;;  %v3004_v20 = vld [vmem:[%s1772_s20 + $0x8] sm:$0xff]  ;;  %s1803_s20 = smov [#allocation23] }
 0x251   : >>> { %v931_v52 = vsub.f32 %v929_v43, %v930_v37  ;;  %v934_v53 = vsub.f32 %v932_v44, %v933_v38  ;;  %v937_v54 = vadd.f32 %v936_v45, %v935_v39  ;;  %v940_v55 = vadd.f32 %v939_v46, %v938_v40  ;;  %v2856_v38 = vld [vmem:[%s982_s16 + $0x10] sm:$0xff]  ;;  %s1016_s16 = smov [#allocation24] }
 0x252   : >>> { %v1755_v60 = vsub.f32 %v1753_v56, %v1754_v47  ;;  %v1758_v61 = vsub.f32 %v1756_v57, %v1757_v48  ;;  %v1761_v62 = vadd.f32 %v1760_v58, %v1759_v49  ;;  %v1764_v63 = vadd.f32 %v1763_v59, %v1762_v50  ;;  %v2855_v39 = vld [vmem:[%s979_s17 + $0x10] sm:$0xff]  ;;  %s1013_s17 = smov [#allocation23] }
 0x253   : >>> { %941 = vst [vmem:[%s3467_s22] sm:$0xff] %v931_v52  ;;  %942 = vst [vmem:[%s3469_s29] sm:$0xff] %v934_v53  ;;  %s3505_s22 = smov [#allocation13]  ;;  %s3507_s29 = smov [#allocation14]  ;;  %v3013_v56 = vld [vmem:[%s1803_s20 + $0x10] sm:$0xff] }
 0x254   : >>> { %943 = vst [vmem:[%s3471_s11] sm:$0xff] %v937_v54  ;;  %944 = vst [vmem:[%s3473_s30] sm:$0xff] %v940_v55  ;;  %s3509_s11 = smov [#allocation15]  ;;  %s1769_s30 = smov [#allocation23] }
 0x255   : >>> { %1765 = vst [vmem:[%s3477_s14] sm:$0xff] %v1755_v60  ;;  %1766 = vst [vmem:[%s3480_s15] sm:$0xff] %v1758_v61  ;;  %s3512_s14 = smov %s3338_s14  ;;  %s3515_s15 = smov %s3345_s15  ;;  %v3003_v14 = vld [vmem:[%s1769_s30 + $0x8] sm:$0xff] }
 0x256   : >>> { %1767 = vst [vmem:[%s3486_s23] sm:$0xff] %v1761_v62  ;;  %1768 = vst [vmem:[%s3489_s24] sm:$0xff] %v1764_v63  ;;  %s3518_s23 = smov %s3354_s23  ;;  %s3524_s24 = smov %s3361_s24 }
 0x257   : >>> { %s3537_s30 = smov [#allocation13]  ;;  %s1837_s20 = smov [#allocation23] }
 0x25a   : >>> { %v2847_v2 = vld [vmem:[%s3499_s27 + $0x8] sm:$0xff] }
 0x25b   : >>> { %v2848_v3 = vld [vmem:[%s3505_s22 + $0x8] sm:$0xff]  ;;  %v963_v6 = vmul.f32 %v2847_v2, %v2845_v1  ;;  %v969_v9 = vmul.f32 %v2847_v2, %v2846_v0 }
 0x25c   : >>> { %v2849_v4 = vld [vmem:[%s3507_s29 + $0x8] sm:$0xff]  ;;  %v966_v8 = vmul.f32 %v2848_v3, %v2845_v1  ;;  %v972_v12 = vmul.f32 %v2848_v3, %v2846_v0 }
 0x25d   : >>> { %v2850_v5 = vld [vmem:[%s3509_s11 + $0x8] sm:$0xff]  ;;  %v964_v7 = vmul.f32 %v2849_v4, %v2846_v0  ;;  %v970_v11 = vmul.f32 %v2849_v4, %v2845_v1 }
 0x25e   : >>> { %v967_v10 = vmul.f32 %v2850_v5, %v2846_v0  ;;  %v973_v13 = vmul.f32 %v2850_v5, %v2845_v1  ;;  %v3005_v16 = vld [vmem:[%s3512_s14 + $0x8] sm:$0xff] }
 0x25f   : >>> { %v965_v15 = vsub.f32 %v963_v6, %v964_v7  ;;  %v3006_v18 = vld [vmem:[%s3515_s15 + $0x8] sm:$0xff]  ;;  %v971_v22 = vadd.f32 %v970_v11, %v969_v9  ;;  %v1787_v26 = vmul.f32 %v3005_v16, %v3003_v14  ;;  %v1793_v30 = vmul.f32 %v3005_v16, %v3004_v20  ;;  %v2865_v11 = vld [vmem:[%s1013_s17 + $0x18] sm:$0xff]  ;;  %s1049_s17 = smov [#allocation22] }
 0x260   : >>> { %v3007_v19 = vld [vmem:[%s3518_s23 + $0x8] sm:$0xff]  ;;  %v968_v21 = vsub.f32 %v966_v8, %v967_v10  ;;  %v974_v23 = vadd.f32 %v973_v13, %v972_v12  ;;  %v1790_v28 = vmul.f32 %v3006_v18, %v3003_v14  ;;  %v1796_v32 = vmul.f32 %v3006_v18, %v3004_v20  ;;  %v2866_v10 = vld [vmem:[%s1016_s16 + $0x18] sm:$0xff]  ;;  %s1047_s16 = smov [#allocation21] }
 0x261   : >>> { %v3008_v25 = vld [vmem:[%s3524_s24 + $0x8] sm:$0xff]  ;;  %2851 = vst [vmem:[%s3499_s27 + $0x8] sm:$0xff] %v965_v15  ;;  %v1788_v27 = vmul.f32 %v3007_v19, %v3004_v20  ;;  %2853 = vst [vmem:[%s3507_s29 + $0x8] sm:$0xff] %v971_v22  ;;  %v1794_v31 = vmul.f32 %v3007_v19, %v3003_v14  ;;  %s3535_s27 = smov [#allocation12]  ;;  %s3543_s29 = smov [#allocation15] }
 0x262   : >>> { %v1791_v29 = vmul.f32 %v3008_v25, %v3004_v20  ;;  %2852 = vst [vmem:[%s3505_s22 + $0x8] sm:$0xff] %v968_v21  ;;  %2854 = vst [vmem:[%s3509_s11 + $0x8] sm:$0xff] %v974_v23  ;;  %v1797_v33 = vmul.f32 %v3008_v25, %v3003_v14  ;;  %s3541_s22 = smov [#allocation14]  ;;  %s1806_s11 = smov [#allocation24] }
 0x263   : >>> { %v1789_v34 = vsub.f32 %v1787_v26, %v1788_v27  ;;  %v1795_v36 = vadd.f32 %v1794_v31, %v1793_v30  ;;  %v3014_v50 = vld [vmem:[%s1806_s11 + $0x10] sm:$0xff]  ;;  %s3571_s11 = smov [#allocation12] }
 0x264   : >>> { %v1792_v35 = vsub.f32 %v1790_v28, %v1791_v29  ;;  %v1798_v37 = vadd.f32 %v1797_v33, %v1796_v32  ;;  %v3023_v29 = vld [vmem:[%s1837_s20 + $0x18] sm:$0xff]  ;;  %s3639_s20 = smov [#allocation13] }
 0x265   : >>> { %3009 = vst [vmem:[%s3512_s14 + $0x8] sm:$0xff] %v1789_v34  ;;  %3011 = vst [vmem:[%s3518_s23 + $0x8] sm:$0xff] %v1795_v36  ;;  %s3549_s14 = smov %s3338_s14  ;;  %s3558_s23 = smov %s3354_s23 }
 0x266   : >>> { %3010 = vst [vmem:[%s3515_s15 + $0x8] sm:$0xff] %v1792_v35  ;;  %3012 = vst [vmem:[%s3524_s24 + $0x8] sm:$0xff] %v1798_v37  ;;  %s3552_s15 = smov %s3345_s15  ;;  %s3561_s24 = smov %s3361_s24 }
 0x268   : >>> { %v2857_v40 = vld [vmem:[%s3535_s27 + $0x10] sm:$0xff] }
 0x269   : >>> { %v2858_v41 = vld [vmem:[%s3537_s30 + $0x10] sm:$0xff]  ;;  %v997_v44 = vmul.f32 %v2857_v40, %v2855_v39  ;;  %v1003_v45 = vmul.f32 %v2857_v40, %v2856_v38 }
 0x26a   : >>> { %v2859_v42 = vld [vmem:[%s3541_s22 + $0x10] sm:$0xff]  ;;  %v1000_v47 = vmul.f32 %v2858_v41, %v2855_v39  ;;  %v1006_v51 = vmul.f32 %v2858_v41, %v2856_v38 }
 0x26b   : >>> { %v2860_v43 = vld [vmem:[%s3543_s29 + $0x10] sm:$0xff]  ;;  %v998_v46 = vmul.f32 %v2859_v42, %v2856_v38  ;;  %v1004_v49 = vmul.f32 %v2859_v42, %v2855_v39 }
 0x26c   : >>> { %v1001_v48 = vmul.f32 %v2860_v43, %v2856_v38  ;;  %v1007_v52 = vmul.f32 %v2860_v43, %v2855_v39  ;;  %v3015_v57 = vld [vmem:[%s3549_s14 + $0x10] sm:$0xff] }
 0x26d   : >>> { %v999_v53 = vsub.f32 %v997_v44, %v998_v46  ;;  %v1005_v55 = vadd.f32 %v1004_v49, %v1003_v45  ;;  %v3016_v58 = vld [vmem:[%s3552_s15 + $0x10] sm:$0xff]  ;;  %v1821_v62 = vmul.f32 %v3015_v57, %v3013_v56  ;;  %v1827_v0 = vmul.f32 %v3015_v57, %v3014_v50  ;;  %v3614_v49 = vld [vmem:[%s1049_s17] ss:$0 sm:$0xff]  ;;  %s3646_s17 = smov [#allocation15] }
 0x26e   : >>> { %v1002_v54 = vsub.f32 %v1000_v47, %v1001_v48  ;;  %v1008_v59 = vadd.f32 %v1007_v52, %v1006_v51  ;;  %v3017_v60 = vld [vmem:[%s3558_s23 + $0x10] sm:$0xff]  ;;  %v1824_v63 = vmul.f32 %v3016_v58, %v3013_v56  ;;  %v1830_v4 = vmul.f32 %v3016_v58, %v3014_v50  ;;  %v3612_v48 = vld [vmem:[%s1047_s16] ss:$0 sm:$0xff]  ;;  %s3644_s16 = smov [#allocation14] }
 0x26f   : >>> { %v3018_v61 = vld [vmem:[%s3561_s24 + $0x10] sm:$0xff]  ;;  %2861 = vst [vmem:[%s3535_s27 + $0x10] sm:$0xff] %v999_v53  ;;  %2863 = vst [vmem:[%s3541_s22 + $0x10] sm:$0xff] %v1005_v55  ;;  %v1822_v1 = vmul.f32 %v3017_v60, %v3014_v50  ;;  %v1828_v3 = vmul.f32 %v3017_v60, %v3013_v56  ;;  %s3573_s27 = smov [#allocation14]  ;;  %s3580_s22 = smov [#allocation15] }
 0x270   : >>> { %v1825_v2 = vmul.f32 %v3018_v61, %v3014_v50  ;;  %2862 = vst [vmem:[%s3537_s30 + $0x10] sm:$0xff] %v1002_v54  ;;  %2864 = vst [vmem:[%s3543_s29 + $0x10] sm:$0xff] %v1008_v59  ;;  %v1831_v5 = vmul.f32 %v3018_v61, %v3013_v56  ;;  %s3578_s30 = smov [#allocation13]  ;;  %s1840_s29 = smov [#allocation24] }
 0x271   : >>> { %v1823_v6 = vsub.f32 %v1821_v62, %v1822_v1  ;;  %v1829_v8 = vadd.f32 %v1828_v3, %v1827_v0  ;;  %v3024_v26 = vld [vmem:[%s1840_s29 + $0x18] sm:$0xff]  ;;  %s3637_s29 = smov [#allocation12] }
 0x272   : >>> { %v1826_v7 = vsub.f32 %v1824_v63, %v1825_v2  ;;  %v1832_v9 = vadd.f32 %v1831_v5, %v1830_v4 }
 0x273   : >>> { %3019 = vst [vmem:[%s3549_s14 + $0x10] sm:$0xff] %v1823_v6  ;;  %3021 = vst [vmem:[%s3558_s23 + $0x10] sm:$0xff] %v1829_v8  ;;  %s3584_s14 = smov %s3338_s14  ;;  %s3593_s23 = smov %s3354_s23 }
 0x274   : >>> { %3020 = vst [vmem:[%s3552_s15 + $0x10] sm:$0xff] %v1826_v7  ;;  %3022 = vst [vmem:[%s3561_s24 + $0x10] sm:$0xff] %v1832_v9  ;;  %s3590_s15 = smov %s3345_s15  ;;  %s3597_s24 = smov %s3361_s24 }
 0x276   : >>> { %v2867_v12 = vld [vmem:[%s3571_s11 + $0x18] sm:$0xff] }
 0x277   : >>> { %v2869_v13 = vld [vmem:[%s3573_s27 + $0x18] sm:$0xff]  ;;  %v1031_v16 = vmul.f32 %v2867_v12, %v2865_v11  ;;  %v1037_v19 = vmul.f32 %v2867_v12, %v2866_v10 }
 0x278   : >>> { %v2868_v14 = vld [vmem:[%s3578_s30 + $0x18] sm:$0xff]  ;;  %v1032_v18 = vmul.f32 %v2869_v13, %v2866_v10  ;;  %v1038_v20 = vmul.f32 %v2869_v13, %v2865_v11 }
 0x279   : >>> { %v2870_v15 = vld [vmem:[%s3580_s22 + $0x18] sm:$0xff]  ;;  %v1034_v23 = vmul.f32 %v2868_v14, %v2865_v11  ;;  %v1040_v25 = vmul.f32 %v2868_v14, %v2866_v10 }
 0x27a   : >>> { %v1035_v21 = vmul.f32 %v2870_v15, %v2866_v10  ;;  %v1041_v22 = vmul.f32 %v2870_v15, %v2865_v11  ;;  %v1033_v27 = vsub.f32 %v1031_v16, %v1032_v18  ;;  %v1039_v28 = vadd.f32 %v1038_v20, %v1037_v19  ;;  %v3025_v30 = vld [vmem:[%s3584_s14 + $0x18] sm:$0xff] }
 0x27b   : >>> { %v3026_v31 = vld [vmem:[%s3590_s15 + $0x18] sm:$0xff]  ;;  %v1855_v36 = vmul.f32 %v3025_v30, %v3023_v29  ;;  %v1861_v39 = vmul.f32 %v3025_v30, %v3024_v26 }
 0x27c   : >>> { %v3027_v32 = vld [vmem:[%s3593_s23 + $0x18] sm:$0xff]  ;;  %v1036_v33 = vsub.f32 %v1034_v23, %v1035_v21  ;;  %v1042_v34 = vadd.f32 %v1041_v22, %v1040_v25  ;;  %2871 = vst [vmem:[%s3571_s11 + $0x18] sm:$0xff] %v1033_v27  ;;  %v1858_v38 = vmul.f32 %v3026_v31, %v3023_v29  ;;  %2873 = vst [vmem:[%s3573_s27 + $0x18] sm:$0xff] %v1039_v28  ;;  %s3608_s11 = smov [#allocation12]  ;;  %s3610_s27 = smov [#allocation14] }
 0x27d   : >>> { %v3028_v35 = vld [vmem:[%s3597_s24 + $0x18] sm:$0xff]  ;;  %v1856_v37 = vmul.f32 %v3027_v32, %v3024_v26  ;;  %v1862_v41 = vmul.f32 %v3027_v32, %v3023_v29  ;;  %v1864_v42 = vmul.f32 %v3026_v31, %v3024_v26 }
 0x27e   : >>> { %v1859_v40 = vmul.f32 %v3028_v35, %v3024_v26  ;;  %v1865_v43 = vmul.f32 %v3028_v35, %v3023_v29  ;;  %2872 = vst [vmem:[%s3578_s30 + $0x18] sm:$0xff] %v1036_v33  ;;  %2874 = vst [vmem:[%s3580_s22 + $0x18] sm:$0xff] %v1042_v34  ;;  %s3619_s30 = smov [#allocation13]  ;;  %s3621_s22 = smov [#allocation15] }
 0x27f   : >>> { %v1857_v44 = vsub.f32 %v1855_v36, %v1856_v37  ;;  %v1863_v46 = vadd.f32 %v1862_v41, %v1861_v39 }
 0x280   : >>> { %v1860_v45 = vsub.f32 %v1858_v38, %v1859_v40  ;;  %v1866_v47 = vadd.f32 %v1865_v43, %v1864_v42 }
 0x281   : >>> { %3029 = vst [vmem:[%s3584_s14 + $0x18] sm:$0xff] %v1857_v44  ;;  %3031 = vst [vmem:[%s3593_s23 + $0x18] sm:$0xff] %v1863_v46  ;;  %s3627_s14 = smov %s3338_s14  ;;  %s3649_s23 = smov %s3354_s23 }
 0x282   : >>> { %3030 = vst [vmem:[%s3590_s15 + $0x18] sm:$0xff] %v1860_v45  ;;  %3032 = vst [vmem:[%s3597_s24 + $0x18] sm:$0xff] %v1866_v47  ;;  %s3660_s15 = smov %s3345_s15  ;;  %s3689_s24 = smov %s3361_s24 }
 0x283   : >>> { %v1055_v50 = vld [vmem:[%s3608_s11] sm:$0xff] }
 0x284   : >>> { %v1057_v51 = vld [vmem:[%s3610_s27] sm:$0xff]  ;;  %v1059_v53 = vmul.f32 %v1055_v50, %v3612_v48  ;;  %v1062_v54 = vmul.f32 %v1055_v50, %v3614_v49 }
 0x285   : >>> { %v1056_v52 = vld [vmem:[%s3619_s30] sm:$0xff]  ;;  %v1065_v56 = vmul.f32 %v1057_v51, %v3612_v48  ;;  %v1068_v57 = vmul.f32 %v1057_v51, %v3614_v49 }
 0x286   : >>> { %v1058_v55 = vld [vmem:[%s3621_s22] sm:$0xff]  ;;  %v1060_v58 = vmul.f32 %v1056_v52, %v3614_v49  ;;  %v1063_v59 = vmul.f32 %v1056_v52, %v3612_v48 }
 0x287   : >>> { %v1066_v60 = vmul.f32 %v1058_v55, %v3614_v49  ;;  %v1069_v61 = vmul.f32 %v1058_v55, %v3612_v48 }
 0x288   : >>> { %v1873_v62 = vld [vmem:[%s3627_s14] ss:$0 sm:$0xff]  ;;  %v3034_v0 = vld [vmem:[%s3627_s14 + $0x7] ss:$0 sm:$0xff]  ;;  %v1061_v1 = vsub.f32 %v1059_v53, %v1060_v58  ;;  %v1064_v2 = vadd.f32 %v1063_v59, %v1062_v54  ;;  %v3035_v6 = vld [vmem:[%s3627_s14 + $0x7] sm:$0xfe] }
 0x289   : >>> { %v3033_v63 = vld [vmem:[%s3627_s14 - $0x1] sm:$0xfe]  ;;  %v1067_v3 = vsub.f32 %v1065_v56, %v1066_v60  ;;  %v1070_v4 = vadd.f32 %v1069_v61, %v1068_v57  ;;  %v3036_v7 = vld [vmem:[%s3627_s14 + $0xf] ss:$0 sm:$0xff]  ;;  %v3038_v8 = vld [vmem:[%s3627_s14 + $0xf] sm:$0xfe]  ;;  %v1891_v9 = vsel %vm1581_vm11, %v3034_v0, %v3035_v6 }
 0x28a   : >>> { %v1880_v5 = vsel %vm1581_vm11, %v1873_v62, %v3033_v63  ;;  %v1902_v10 = vsel %vm1581_vm11, %v3036_v7, %v3038_v8  ;;  %v3039_v11 = vld [vmem:[%s3627_s14 + $0x17] ss:$0 sm:$0xff]  ;;  %v3041_v12 = vld [vmem:[%s3627_s14 + $0x17] sm:$0xfe]  ;;  %v3042_v13 = vld [vmem:[%s3627_s14 + $0x1f] ss:$0 sm:$0xff]  ;;  %1071 = vst [vmem:[%s3608_s11] sm:$0xff] %v1061_v1 }
 0x28b   : >>> { %1883 = vst [vmem:[%s3627_s14] sm:$0xff] %v1880_v5  ;;  %1072 = vst [vmem:[%s3619_s30] sm:$0xff] %v1064_v2  ;;  %v1913_v14 = vsel %vm1581_vm11, %v3039_v11, %v3041_v12  ;;  %v1917_v15 = vld [vmem:[%s3649_s23] ss:$0 sm:$0xff]  ;;  %v3045_v16 = vld [vmem:[%s3649_s23 + $0x19] sm:$0x7f]  ;;  %s1103_s11 = smov [#allocation12]  ;;  %s1107_s30 = smov [#allocation14] }
 0x28c   : >>> { %1073 = vst [vmem:[%s3610_s27] sm:$0xff] %v1067_v3  ;;  %1074 = vst [vmem:[%s3621_s22] sm:$0xff] %v1070_v4  ;;  %v3046_v18 = vld [vmem:[%s3649_s23 + $0x18] ss:$0 sm:$0xff]  ;;  %v1926_v19 = vsel %vm4290_vm12, %v3042_v13, %v3045_v16  ;;  %v3048_v20 = vld [vmem:[%s3649_s23 + $0x11] sm:$0x7f]  ;;  %s1105_s27 = smov [#allocation13]  ;;  %s1109_s22 = smov [#allocation15] }
 0x28d   : >>> { %3037 = vst [vmem:[%s3627_s14 + $0x8] sm:$0xff] %v1891_v9  ;;  %3040 = vst [vmem:[%s3627_s14 + $0x10] sm:$0xff] %v1902_v10  ;;  %v3049_v21 = vld [vmem:[%s3649_s23 + $0x10] ss:$0 sm:$0xff]  ;;  %v3051_v22 = vld [vmem:[%s3649_s23 + $0x9] sm:$0x7f]  ;;  %v1935_v23 = vsel %vm4290_vm12, %v3046_v18, %v3048_v20 }
 0x28e   : >>> { %3043 = vst [vmem:[%s3627_s14 + $0x18] sm:$0xff] %v1913_v14  ;;  %3044 = vst [vmem:[%s3627_s14 + $0x1] sm:$0x1] %v1917_v15  ;;  %v1944_v25 = vsel %vm4290_vm12, %v3049_v21, %v3051_v22  ;;  %v3052_v26 = vld [vmem:[%s3649_s23 + $0x8] ss:$0 sm:$0xff] }
 0x28f   : >>> { %3047 = vst [vmem:[%s3649_s23 + $0x18] sm:$0xff] %v1926_v19  ;;  %v3054_v27 = vld [vmem:[%s3649_s23 + $0x1] sm:$0x7f]  ;;  %v1957_v28 = vld [vmem:[%s3660_s15] ss:$0 sm:$0xff]  ;;  %3050 = vst [vmem:[%s3649_s23 + $0x10] sm:$0xff] %v1935_v23 }
 0x290   : >>> { %3053 = vst [vmem:[%s3649_s23 + $0x8] sm:$0xff] %v1944_v25  ;;  %v1952_v29 = vsel %vm4290_vm12, %v3052_v26, %v3054_v27  ;;  %v3055_v30 = vld [vmem:[%s3660_s15 - $0x1] sm:$0xfe]  ;;  %v3056_v31 = vld [vmem:[%s3660_s15 + $0x7] ss:$0 sm:$0xff] }
 0x291   : >>> { %v3057_v32 = vld [vmem:[%s3660_s15 + $0x7] sm:$0xfe]  ;;  %1954 = vst [vmem:[%s3649_s23] sm:$0xff] %v1952_v29  ;;  %v1964_v33 = vsel %vm1581_vm11, %v1957_v28, %v3055_v30  ;;  %v3058_v35 = vld [vmem:[%s3660_s15 + $0xf] ss:$0 sm:$0xff]  ;;  %v3060_v36 = vld [vmem:[%s3660_s15 + $0xf] sm:$0xfe] }
 0x292   : >>> { %v1975_v34 = vsel %vm1581_vm11, %v3056_v31, %v3057_v32  ;;  %v3061_v37 = vld [vmem:[%s3660_s15 + $0x17] ss:$0 sm:$0xff]  ;;  %1967 = vst [vmem:[%s3660_s15] sm:$0xff] %v1964_v33  ;;  %v1986_v38 = vsel %vm1581_vm11, %v3058_v35, %v3060_v36  ;;  %v3063_v39 = vld [vmem:[%s3660_s15 + $0x17] sm:$0xfe]  ;;  %v3064_v40 = vld [vmem:[%s3660_s15 + $0x1f] ss:$0 sm:$0xff] }
 0x293   : >>> { %3059 = vst [vmem:[%s3660_s15 + $0x8] sm:$0xff] %v1975_v34  ;;  %v2001_v41 = vld [vmem:[%s3689_s24] ss:$0 sm:$0xff]  ;;  %3062 = vst [vmem:[%s3660_s15 + $0x10] sm:$0xff] %v1986_v38  ;;  %v1997_v42 = vsel %vm1581_vm11, %v3061_v37, %v3063_v39  ;;  %v3067_v43 = vld [vmem:[%s3689_s24 + $0x19] sm:$0x7f] }
 0x294   : >>> { %3066 = vst [vmem:[%s3660_s15 + $0x1] sm:$0x1] %v2001_v41  ;;  %v3068_v44 = vld [vmem:[%s3689_s24 + $0x18] ss:$0 sm:$0xff]  ;;  %v3070_v45 = vld [vmem:[%s3689_s24 + $0x11] sm:$0x7f]  ;;  %v2010_v46 = vsel %vm4290_vm12, %v3064_v40, %v3067_v43 }
 0x295   : >>> { %3065 = vst [vmem:[%s3660_s15 + $0x18] sm:$0xff] %v1997_v42  ;;  %v2019_v47 = vsel %vm4290_vm12, %v3068_v44, %v3070_v45  ;;  %v3071_v50 = vld [vmem:[%s3689_s24 + $0x10] ss:$0 sm:$0xff]  ;;  %v3073_v51 = vld [vmem:[%s3689_s24 + $0x9] sm:$0x7f]  ;;  %3069 = vst [vmem:[%s3689_s24 + $0x18] sm:$0xff] %v2010_v46 }
 0x296   : >>> { %v3074_v52 = vld [vmem:[%s3689_s24 + $0x8] ss:$0 sm:$0xff]  ;;  %3072 = vst [vmem:[%s3689_s24 + $0x10] sm:$0xff] %v2019_v47  ;;  %v2028_v53 = vsel %vm4290_vm12, %v3071_v50, %v3073_v51  ;;  %v3076_v54 = vld [vmem:[%s3689_s24 + $0x1] sm:$0x7f]  ;;  %v1214_v42 = vadd.s32 8, %v3770_v17 }
 0x297   : >>> { %v2875_v55 = vld [vmem:[%s3637_s29 + $0x8] sm:$0xff]  ;;  %3075 = vst [vmem:[%s3689_s24 + $0x8] sm:$0xff] %v2028_v53  ;;  %v2036_v57 = vsel %vm4290_vm12, %v3074_v52, %v3076_v54  ;;  %v1221_v43 = vadd.s32 16, %v3770_v17  ;;  %v3785_v17 = vmov %v3324_v17  ;;  %v1186_v44 = vadd.s32 16, %v1166_v17 }
 0x298   : >>> { %v2876_v56 = vld [vmem:[%s3639_s20 + $0x8] sm:$0xff]  ;;  %v1087_v58 = vmul.f32 %v2875_v55, %v3612_v48  ;;  %v1090_v60 = vmul.f32 %v2875_v55, %v3614_v49  ;;  %2038 = vst [vmem:[%s3689_s24] sm:$0xff] %v2036_v57  ;;  %v1194_v45 = vadd.s32 24, %v1166_v17  ;;  %v1248_v46 = vadd.s32 8, %v3785_v17 }
 0x299   : >>> { %v1088_v59 = vmul.f32 %v2876_v56, %v3614_v49  ;;  %v2877_v61 = vld [vmem:[%s3644_s16 + $0x8] sm:$0xff]  ;;  %v1091_v63 = vmul.f32 %v2876_v56, %v3612_v48  ;;  %v1255_v47 = vadd.s32 16, %v3785_v17  ;;  %v1262_v50 = vadd.s32 24, %v3785_v17 }
 0x29a   : >>> { %v2878_v62 = vld [vmem:[%s3646_s17 + $0x8] sm:$0xff]  ;;  %v1093_v0 = vmul.f32 %v2877_v61, %v3612_v48  ;;  %v1096_v2 = vmul.f32 %v2877_v61, %v3614_v49  ;;  %vm1215_vm14 = vcmp.eq.s32.totalorder %v1214_v42, %v1201_v24  ;;  %vm1222_vm15 = vcmp.eq.s32.totalorder %v1221_v43, %v1201_v24 }
 0x29b   : >>> { %v1094_v1 = vmul.f32 %v2878_v62, %v3614_v49  ;;  %v1089_v3 = vsub.f32 %v1087_v58, %v1088_v59  ;;  %v1097_v4 = vmul.f32 %v2878_v62, %v3612_v48  ;;  %v1092_v5 = vadd.f32 %v1091_v63, %v1090_v60 }
 0x29c   : >>> { %v3802_v24 = vmov %v3328_v24  ;;  %vm1187_vm3 = vcmp.eq.s32.totalorder %v1186_v44, %v1163_v24  ;;  %vm1195_vm4 = vcmp.eq.s32.totalorder %v1194_v45, %v1163_v24  ;;  %vm1242_vm5 = vcmp.eq.s32.totalorder %v3785_v17, %v3794_v24 }
 0x29d   : >>> { %v1095_v6 = vsub.f32 %v1093_v0, %v1094_v1  ;;  %2879 = vst [vmem:[%s3637_s29 + $0x8] sm:$0xff] %v1089_v3  ;;  %v1098_v7 = vadd.f32 %v1097_v4, %v1096_v2  ;;  %2880 = vst [vmem:[%s3639_s20 + $0x8] sm:$0xff] %v1092_v5  ;;  %s1131_s29 = smov [#allocation12]  ;;  %s1133_s20 = smov [#allocation13]  ;;  %vm1249_vm6 = vcmp.eq.s32.totalorder %v1248_v46, %v3794_v24 }
 0x29e   : >>> { %vm1256_vm7 = vcmp.eq.s32.totalorder %v1255_v47, %v3794_v24  ;;  %vm1263_vm9 = vcmp.eq.s32.totalorder %v1262_v50, %v3794_v24 }
 0x29f   : >>> { %2881 = vst [vmem:[%s3644_s16 + $0x8] sm:$0xff] %v1095_v6  ;;  %2882 = vst [vmem:[%s3646_s17 + $0x8] sm:$0xff] %v1098_v7  ;;  %s1135_s16 = smov [#allocation14]  ;;  %s1137_s17 = smov [#allocation15] }
 0x2a4   : >>> { %v2883_v8 = vld [vmem:[%s1103_s11 + $0x10] sm:$0xff] }
 0x2a5   : >>> { %v2884_v9 = vld [vmem:[%s1105_s27 + $0x10] sm:$0xff]  ;;  %v1115_v10 = vmul.f32 %v2883_v8, %v3612_v48  ;;  %v1118_v11 = vmul.f32 %v2883_v8, %v3614_v49 }
 0x2a6   : >>> { %v2885_v12 = vld [vmem:[%s1107_s30 + $0x10] sm:$0xff]  ;;  %v1116_v13 = vmul.f32 %v2884_v9, %v3614_v49  ;;  %v1119_v14 = vmul.f32 %v2884_v9, %v3612_v48 }
 0x2a7   : >>> { %v2886_v15 = vld [vmem:[%s1109_s22 + $0x10] sm:$0xff]  ;;  %v1121_v16 = vmul.f32 %v2885_v12, %v3612_v48  ;;  %v1124_v18 = vmul.f32 %v2885_v12, %v3614_v49 }
 0x2a8   : >>> { %v1122_v19 = vmul.f32 %v2886_v15, %v3614_v49  ;;  %v1125_v20 = vmul.f32 %v2886_v15, %v3612_v48  ;;  %v1117_v21 = vsub.f32 %v1115_v10, %v1116_v13  ;;  %v1120_v22 = vadd.f32 %v1119_v14, %v1118_v11 }
 0x2aa   : >>> { %v1123_v23 = vsub.f32 %v1121_v16, %v1122_v19  ;;  %v1126_v25 = vadd.f32 %v1125_v20, %v1124_v18  ;;  %2887 = vst [vmem:[%s1103_s11 + $0x10] sm:$0xff] %v1117_v21  ;;  %2888 = vst [vmem:[%s1105_s27 + $0x10] sm:$0xff] %v1120_v22  ;;  %s1160_s11 = smov [#allocation19]  ;;  %s3799_s27 = smov [#allocation13] }
 0x2ab   : >>> { %v1167_v53 = vld [vmem:[%s1160_s11] ss:$0 sm:$0xff]  ;;  %s3209_s11 = smov 1  }
 0x2ac   : >>> { %2889 = vst [vmem:[%s1107_s30 + $0x10] sm:$0xff] %v1123_v23  ;;  %2890 = vst [vmem:[%s1109_s22 + $0x10] sm:$0xff] %v1126_v25  ;;  %s1267_s30 = smov [#allocation20]  ;;  %s3807_s22 = smov [#allocation12] }
 0x2ad   : >>> { %v1274_v58 = vld [vmem:[%s1267_s30] ss:$0 sm:$0xff]  ;;  %s3904_s30 = smov [#allocation14] }
 0x2b1   : >>> { %v2891_v26 = vld [vmem:[%s1131_s29 + $0x18] sm:$0xff] }
 0x2b2   : >>> { %v2892_v27 = vld [vmem:[%s1133_s20 + $0x18] sm:$0xff]  ;;  %v1146_v29 = vmul.f32 %v2891_v26, %v3614_v49  ;;  %v1143_v31 = vmul.f32 %v2891_v26, %v3612_v48 }
 0x2b3   : >>> { %v1144_v28 = vmul.f32 %v2892_v27, %v3614_v49  ;;  %v1147_v30 = vmul.f32 %v2892_v27, %v3612_v48  ;;  %v2893_v32 = vld [vmem:[%s1135_s16 + $0x18] sm:$0xff] }
 0x2b4   : >>> { %v2894_v33 = vld [vmem:[%s1137_s17 + $0x18] sm:$0xff]  ;;  %v1149_v34 = vmul.f32 %v2893_v32, %v3612_v48  ;;  %v1152_v36 = vmul.f32 %v2893_v32, %v3614_v49 }
 0x2b5   : >>> { %v1150_v35 = vmul.f32 %v2894_v33, %v3614_v49  ;;  %v1153_v37 = vmul.f32 %v2894_v33, %v3612_v48  ;;  %v1148_v38 = vadd.f32 %v1147_v30, %v1146_v29  ;;  %v1145_v39 = vsub.f32 %v1143_v31, %v1144_v28 }
 0x2b6   : >>> { %v1228_v49 = vadd.s32 24, %v3770_v17  ;;  %v1178_v48 = vadd.s32 8, %v1166_v17  ;;  %v3789_v17 = vmov %v3324_v17 }
 0x2b7   : >>> { %v1151_v40 = vsub.f32 %v1149_v34, %v1150_v35  ;;  %v1154_v41 = vadd.f32 %v1153_v37, %v1152_v36  ;;  %2896 = vst [vmem:[%s1133_s20 + $0x18] sm:$0xff] %v1148_v38  ;;  %2895 = vst [vmem:[%s1131_s29 + $0x18] sm:$0xff] %v1145_v39  ;;  %v3805_v51 = vadd.s32 8, %v3789_v17  ;;  %v1293_v52 = vadd.s32 16, %v3789_v17  ;;  %s3810_s29 = smov [#allocation14]  ;;  %s3821_s20 = smov [#allocation15] }
 0x2b8   : >>> { %vm1229_vm0 = vcmp.eq.s32.totalorder %v1228_v49, %v1201_v24  ;;  %vm1179_vm2 = vcmp.eq.s32.totalorder %v1178_v48, %v1163_v24  ;;  %v1301_v54 = vadd.s32 24, %v3789_v17  ;;  %vm1278_vm10 = vcmp.eq.s32.totalorder %v3789_v17, %v3802_v24 }
 0x2b9   : >>> { %2897 = vst [vmem:[%s1135_s16 + $0x18] sm:$0xff] %v1151_v40  ;;  %2898 = vst [vmem:[%s1137_s17 + $0x18] sm:$0xff] %v1154_v41  ;;  %vm1286_vm12 = vcmp.eq.s32.totalorder %v3805_v51, %v3802_v24  ;;  %s3885_s16 = smov [#allocation13]  ;;  %s3888_s17 = smov [#allocation12] }
 0x2be   : >>> { %v1205_v55 = vld [vmem:[%s3799_s27] sm:$0xff]  ;;  %v2905_v56 = vld [vmem:[%s3799_s27 + $0x8] sm:$0xff]  ;;  %v2907_v57 = vld [vmem:[%s3799_s27 + $0x10] sm:$0xff] }
 0x2bf   : >>> { %v1209_v59 = vsel %vm1208_vm13, 0.0, %v1205_v55  ;;  %v1216_v60 = vsel %vm1215_vm14, 0.0, %v2905_v56  ;;  %v1223_v61 = vsel %vm1222_vm15, 0.0, %v2907_v57  ;;  %v2909_v62 = vld [vmem:[%s3799_s27 + $0x18] sm:$0xff]  ;;  %v1168_v63 = vld [vmem:[%s3807_s22] sm:$0xff]  ;;  %v2899_v0 = vld [vmem:[%s3807_s22 + $0x8] sm:$0xff]  ;;  %vm1294_vm13 = vcmp.eq.s32.totalorder %v1293_v52, %v3802_v24 }
 0x2c0   : >>> { %1210 = vst [vmem:[%s3799_s27] sm:$0xff] %v1209_v59  ;;  %2906 = vst [vmem:[%s3799_s27 + $0x8] sm:$0xff] %v1216_v60  ;;  %v1230_v1 = vsel %vm1229_vm0, 0.0, %v2909_v62  ;;  %v1172_v2 = vsel %vm1171_vm1, %v1167_v53, %v1168_v63  ;;  %v1180_v3 = vsel %vm1179_vm2, %v1167_v53, %v2899_v0  ;;  %v2901_v4 = vld [vmem:[%s3807_s22 + $0x10] sm:$0xff]  ;;  %v2903_v5 = vld [vmem:[%s3807_s22 + $0x18] sm:$0xff]  ;;  %vm1302_vm14 = vcmp.eq.s32.totalorder %v1301_v54, %v3802_v24 }
 0x2c1   : >>> { %2908 = vst [vmem:[%s3799_s27 + $0x10] sm:$0xff] %v1223_v61  ;;  %v1239_v6 = vld [vmem:[%s3810_s29] sm:$0xff]  ;;  %2910 = vst [vmem:[%s3799_s27 + $0x18] sm:$0xff] %v1230_v1  ;;  %v1188_v7 = vsel %vm1187_vm3, %v1167_v53, %v2901_v4  ;;  %v1196_v8 = vsel %vm1195_vm4, %v1167_v53, %v2903_v5  ;;  %v2911_v10 = vld [vmem:[%s3810_s29 + $0x8] sm:$0xff]  ;;  %s3895_s27 = smov [#allocation12]  ;;  %vm1320_vm15 = vcmp.eq.s32.totalorder %v3328_v24, 1 }
 0x2c2   : >>> { %1173 = vst [vmem:[%s3807_s22] sm:$0xff] %v1172_v2  ;;  %2900 = vst [vmem:[%s3807_s22 + $0x8] sm:$0xff] %v1180_v3  ;;  %v1243_v9 = vsel %vm1242_vm5, 0.0, %v1239_v6  ;;  %v2913_v11 = vld [vmem:[%s3810_s29 + $0x10] sm:$0xff]  ;;  %v2915_v12 = vld [vmem:[%s3810_s29 + $0x18] sm:$0xff]  ;;  %v1250_v13 = vsel %vm1249_vm6, 0.0, %v2911_v10  ;;  %vm1333_vm0 = vcmp.eq.s32.totalorder %v3328_v24, 31 }
 0x2c3   : >>> { %2902 = vst [vmem:[%s3807_s22 + $0x10] sm:$0xff] %v1188_v7  ;;  %2904 = vst [vmem:[%s3807_s22 + $0x18] sm:$0xff] %v1196_v8  ;;  %v1257_v14 = vsel %vm1256_vm7, 0.0, %v2913_v11  ;;  %v1264_v15 = vsel %vm1263_vm9, 0.0, %v2915_v12  ;;  %v1275_v16 = vld [vmem:[%s3821_s20] sm:$0xff]  ;;  %v2917_v18 = vld [vmem:[%s3821_s20 + $0x8] sm:$0xff] }
 0x2c4   : >>> { %1244 = vst [vmem:[%s3810_s29] sm:$0xff] %v1243_v9  ;;  %v2919_v19 = vld [vmem:[%s3821_s20 + $0x10] sm:$0xff]  ;;  %2912 = vst [vmem:[%s3810_s29 + $0x8] sm:$0xff] %v1250_v13  ;;  %v1279_v20 = vsel %vm1278_vm10, %v1274_v58, %v1275_v16  ;;  %v1287_v21 = vsel %vm1286_vm12, %v1274_v58, %v2917_v18  ;;  %v2921_v23 = vld [vmem:[%s3821_s20 + $0x18] sm:$0xff]  ;;  %s4291_s22 = smov 127   ;;  %vm1316_vm12 = vcmp.eq.s32.totalorder %v3328_v24, 0  ;;  %vm4311_vm1 = vcmp.eq.s32.totalorder %v3324_v17, 7 }
 0x2c5   : >>> { %2914 = vst [vmem:[%s3810_s29 + $0x10] sm:$0xff] %v1257_v14  ;;  %2916 = vst [vmem:[%s3810_s29 + $0x18] sm:$0xff] %v1264_v15  ;;  %v1295_v22 = vsel %vm1294_vm13, %v1274_v58, %v2919_v19  ;;  %v1303_v25 = vsel %vm1302_vm14, %v1274_v58, %v2921_v23  ;;  %s3907_s29 = smov [#allocation12]  ;;  %v435_v17 = vmov (%p624_p9), %v3324_v17  ;;  %v481_v24 = vmov (%p624_p9), %v3328_v24 }
 0x2c6   : >>> { %1280 = vst [vmem:[%s3821_s20] sm:$0xff] %v1279_v20  ;;  %2918 = vst [vmem:[%s3821_s20 + $0x8] sm:$0xff] %v1287_v21  ;;  %v484_v17 = vmov (%p624_p9), %v3324_v17  ;;  %v432_v24 = vmov (%p624_p9), %v3328_v24 }
 0x2c7   : >>> { %2920 = vst [vmem:[%s3821_s20 + $0x10] sm:$0xff] %v1295_v22  ;;  %2922 = vst [vmem:[%s3821_s20 + $0x18] sm:$0xff] %v1303_v25  ;;  %s3917_s20 = smov [#allocation13]  ;;  %vm447_vm9 = vcmp.eq.s32.totalorder (%p624_p9), %v435_v17, %v432_v24 }
 0x2c8   : >>> { %v1307_v26 = vld [vmem:[%s3885_s16] sm:$0xff]  ;;  %v2923_v31 = vld [vmem:[%s3917_s20 + $0x8] sm:$0xff]  ;;  %v2927_v34 = vld [vmem:[%s3932_s0 + $0x10] sm:$0xff] }
 0x2c9   : >>> { %1308 = vrot.lane.b32.xlu1 %v1307_v26, %s3209_s11  ;;  %v2931_v38 = vld [vmem:[%s3956_s10 + $0x18] sm:$0xff]  ;;  %vm4313_vm2 = vmmov %vm4311_vm1 }
 0x2ca   : >>> { %v3893_v27 = vld [vmem:[%s3888_s17] sm:$0xff]  ;;  %v3900_v28 = vld [vmem:[%s3895_s27 + $0x8] sm:$0xff]  ;;  %v3915_v30 = vld [vmem:[%s3907_s29 + $0x10] sm:$0xff] }
 0x2cb   : >>> { %1312 = vrot.lane.b32.xlu0 %v3893_v27, %s3209_s11  ;;  %v3945_v35 = vld [vmem:[%s3939_s2 + $0x18] sm:$0xff]  ;;  %vm4314_vm3 = vmmov %vm4311_vm1 }
 0x2cc   : >>> { %v3910_v29 = vld [vmem:[%s3904_s30] sm:$0xff]  ;;  %v3926_v32 = vld [vmem:[%s3921_s21 + $0x8] sm:$0xff]  ;;  %v3950_v36 = vld [vmem:[%s3942_s3 + $0x10] sm:$0xff] }
 0x2cd   : >>> { %1344 = vrot.lane.b32.xlu1 %v3900_v28, %s3209_s11  ;;  %v3974_v40 = vld [vmem:[%s3968_s9 + $0x18] sm:$0xff]  ;;  %vm4315_vm4 = vmmov %vm4311_vm1 }
 0x2ce   : >>> { %v2941_v37 = vld [vmem:[%s3952_s18 + $0x8] sm:$0xff]  ;;  %v2945_v39 = vld [vmem:[%s3962_s13 + $0x10] sm:$0xff]  ;;  %v2949_v41 = vld [vmem:[%s3971_s8 + $0x18] sm:$0xff] }
 0x2cf   : >>> { %1329 = vrot.lane.b32.xlu0 %v1307_v26, %s4291_s22  ;;  %s3928_s22 = smov [#allocation15]  ;;  %vm4316_vm5 = vmmov %vm4311_vm1 }
 0x2d0   : >>> { %v1441_v33 = vld [vmem:[%s3928_s22] sm:$0xff]  ;;  %vm4317_vm6 = vmmov %vm4311_vm1 }
 0x2d1   : >>> { %1446 = vrot.lane.b32.xlu1 %v3910_v29, %s3209_s11  ;;  %vm4318_vm7 = vmmov %vm4311_vm1 }
 0x2d3   : >>> { %1376 = vrot.lane.b32.xlu0 %v3915_v30, %s3209_s11 }
 0x2d5   : >>> { %1340 = vrot.lane.b32.xlu1 %v2923_v31, %s3209_s11 }
 0x2d7   : >>> { %1478 = vrot.lane.b32.xlu0 %v3926_v32, %s3209_s11 }
 0x2d9   : >>> { %1442 = vrot.lane.b32.xlu1 %v1441_v33, %s3209_s11 }
 0x2db   : >>> { %1372 = vrot.lane.b32.xlu0 %v2927_v34, %s3209_s11 }
 0x2dd   : >>> { %1361 = vrot.lane.b32.xlu1 %v2923_v31, %s4310_s1 }
 0x2df   : >>> { %1463 = vrot.lane.b32.xlu0 %v1441_v33, %s4310_s1 }
 0x2e1   : >>> { %1408 = vrot.lane.b32.xlu1 %v3945_v35, %s3209_s11 }
 0x2e3   : >>> { %1510 = vrot.lane.b32.xlu0 %v3950_v36, %s3209_s11 }
 0x2e5   : >>> { %1474 = vrot.lane.b32.xlu1 %v2941_v37, %s3209_s11 }
 0x2e7   : >>> { %1404 = vrot.lane.b32.xlu0 %v2931_v38, %s3209_s11 }
 0x2e9   : >>> { %1393 = vrot.lane.b32.xlu1 %v2927_v34, %s4310_s1 }
 0x2eb   : >>> { %1506 = vrot.lane.b32.xlu0 %v2945_v39, %s3209_s11 }
 0x2ed   : >>> { %1495 = vrot.lane.b32.xlu1 %v2941_v37, %s4310_s1 }
 0x2ef   : >>> { %1425 = vrot.lane.b32.xlu0 %v2931_v38, %s4310_s1 }
 0x2f1   : >>> { %1542 = vrot.lane.b32.xlu1 %v3974_v40, %s3209_s11 }
 0x2f3   : >>> { %1538 = vrot.lane.b32.xlu0 %v2949_v41, %s3209_s11 }
 0x2f5   : >>> { %1527 = vrot.lane.b32.xlu1 %v2945_v39, %s4310_s1 }
 0x2f9   : >>> { %1559 = vrot.lane.b32.xlu1 %v2949_v41, %s4310_s1  ;;  %s4056_s1 = smov [#allocation12] }
 0x33b   : >>> { %v1309_v42 = vpop.permute.xlu1 %1308 }
 0x33d   : >>> { %v1313_v43 = vpop.permute.xlu0 %1312 }
 0x33e   : >>> { %v1317_v49 = vsel %vm1316_vm12, %v3893_v27, %v1313_v43 }
 0x33f   : >>> { %v1321_v48 = vsel %vm1320_vm15, %v1309_v42, %v1317_v49  ;;  %v1345_v45 = vpop.permute.xlu1 %1344 }
 0x340   : >>> { %v1327_v44 = vsel %vm2549_vm8, %v1321_v48, 0.0  ;;  %v1349_v52 = vsel %vm1316_vm12, %v3900_v28, %v1345_v45 }
 0x341   : >>> { %v1330_v46 = vpop.permute.xlu0 %1329  ;;  %1431 = vst [vmem:[%s3888_s17] sm:$0xff] %v1327_v44 }
 0x342   : >>> { %v1334_v47 = vsel %vm1333_vm0, %v3893_v27, %v1330_v46 }
 0x343   : >>> { %1432 = vst [vmem:[%s3885_s16] sm:$0xff] %v1334_v47  ;;  %v1447_v50 = vpop.permute.xlu1 %1446 }
 0x344   : >>> { %v1451_v57 = vsel %vm1316_vm12, %v3910_v29, %v1447_v50 }
 0x345   : >>> { %v1377_v51 = vpop.permute.xlu0 %1376 }
 0x346   : >>> { %v1381_v59 = vsel %vm1316_vm12, %v3915_v30, %v1377_v51 }
 0x347   : >>> { %v1341_v53 = vpop.permute.xlu1 %1340 }
 0x348   : >>> { %v1353_v54 = vsel %vm1320_vm15, %v1341_v53, %v1349_v52 }
 0x349   : >>> { %v1479_v55 = vpop.permute.xlu0 %1478  ;;  %v1359_v56 = vsel %vm2549_vm8, %v1353_v54, 0.0 }
 0x34a   : >>> { %2935 = vst [vmem:[%s3895_s27 + $0x8] sm:$0xff] %v1359_v56  ;;  %v1483_v7 = vsel %vm1316_vm12, %v3926_v32, %v1479_v55 }
 0x34b   : >>> { %v1443_v58 = vpop.permute.xlu1 %1442 }
 0x34c   : >>> { %v1455_v60 = vsel %vm1320_vm15, %v1443_v58, %v1451_v57 }
 0x34d   : >>> { %v1373_v61 = vpop.permute.xlu0 %1372  ;;  %v1461_v62 = vsel %vm2549_vm8, %v1455_v60, 0.0 }
 0x34e   : >>> { %v1385_v63 = vsel %vm1320_vm15, %v1373_v61, %v1381_v59  ;;  %1565 = vst [vmem:[%s3904_s30] sm:$0xff] %v1461_v62 }
 0x34f   : >>> { %v1391_v0 = vsel %vm2549_vm8, %v1385_v63, 0.0  ;;  %v1362_v1 = vpop.permute.xlu1 %1361 }
 0x350   : >>> { %2937 = vst [vmem:[%s3907_s29 + $0x10] sm:$0xff] %v1391_v0  ;;  %v1366_v2 = vsel %vm1333_vm0, %v3900_v28, %v1362_v1 }
 0x351   : >>> { %v1464_v3 = vpop.permute.xlu0 %1463  ;;  %2936 = vst [vmem:[%s3917_s20 + $0x8] sm:$0xff] %v1366_v2 }
 0x352   : >>> { %v1468_v4 = vsel %vm1333_vm0, %v3910_v29, %v1464_v3 }
 0x353   : >>> { %1566 = vst [vmem:[%s3928_s22] sm:$0xff] %v1468_v4  ;;  %v1409_v5 = vpop.permute.xlu1 %1408 }
 0x354   : >>> { %v1413_v9 = vsel %vm1316_vm12, %v3945_v35, %v1409_v5 }
 0x355   : >>> { %v1511_v6 = vpop.permute.xlu0 %1510 }
 0x356   : >>> { %v1515_v16 = vsel %vm1316_vm12, %v3950_v36, %v1511_v6 }
 0x357   : >>> { %v1475_v8 = vpop.permute.xlu1 %1474 }
 0x358   : >>> { %v1487_v10 = vsel %vm1320_vm15, %v1475_v8, %v1483_v7 }
 0x359   : >>> { %v1405_v11 = vpop.permute.xlu0 %1404  ;;  %v1493_v12 = vsel %vm2549_vm8, %v1487_v10, 0.0 }
 0x35a   : >>> { %v1417_v13 = vsel %vm1320_vm15, %v1405_v11, %v1413_v9  ;;  %2953 = vst [vmem:[%s3921_s21 + $0x8] sm:$0xff] %v1493_v12 }
 0x35b   : >>> { %v1423_v14 = vsel %vm2549_vm8, %v1417_v13, 0.0  ;;  %v1394_v15 = vpop.permute.xlu1 %1393 }
 0x35c   : >>> { %2939 = vst [vmem:[%s3939_s2 + $0x18] sm:$0xff] %v1423_v14  ;;  %v1398_v18 = vsel %vm1333_vm0, %v3915_v30, %v1394_v15  ;;  %s4101_s2 = smov [#allocation14] }
 0x35d   : >>> { %v1507_v19 = vpop.permute.xlu0 %1506  ;;  %2938 = vst [vmem:[%s3932_s0 + $0x10] sm:$0xff] %v1398_v18  ;;  %s4092_s0 = smov [#allocation13] }
 0x35e   : >>> { %v1519_v20 = vsel %vm1320_vm15, %v1507_v19, %v1515_v16 }
 0x35f   : >>> { %v1525_v21 = vsel %vm2549_vm8, %v1519_v20, 0.0  ;;  %v1496_v22 = vpop.permute.xlu1 %1495 }
 0x360   : >>> { %2955 = vst [vmem:[%s3942_s3 + $0x10] sm:$0xff] %v1525_v21  ;;  %v1500_v23 = vsel %vm1333_vm0, %v3926_v32, %v1496_v22  ;;  %s1658_s3 = smov [#allocation15] }
 0x361   : >>> { %v1426_v25 = vpop.permute.xlu0 %1425  ;;  %2954 = vst [vmem:[%s3952_s18 + $0x8] sm:$0xff] %v1500_v23  ;;  %s555_s18 = smov (%p624_p9), [#allocation15] }
 0x362   : >>> { %v1430_v26 = vsel %vm1333_vm0, %v3945_v35, %v1426_v25 }
 0x363   : >>> { %2940 = vst [vmem:[%s3956_s10 + $0x18] sm:$0xff] %v1430_v26  ;;  %v1575_v27 = vld [vmem:[%s4056_s1] ss:$0 sm:$0xff]  ;;  %v2960_v29 = vld [vmem:[%s4056_s1 + $0x7] ss:$0 sm:$0xff]  ;;  %v1543_v34 = vpop.permute.xlu1 %1542  ;;  %s485_s10 = smov (%p624_p9), [#allocation13] }
 0x364   : >>> { %v2959_v28 = vld [vmem:[%s4056_s1 - $0x1] sm:$0xfe]  ;;  %v2961_v31 = vld [vmem:[%s4056_s1 + $0x7] sm:$0xfe]  ;;  %v2962_v32 = vld [vmem:[%s4056_s1 + $0xf] ss:$0 sm:$0xff]  ;;  %v1547_v42 = vsel %vm1316_vm12, %v3974_v40, %v1543_v34 }
 0x365   : >>> { %v1582_v30 = vsel %vm1581_vm11, %v1575_v27, %v2959_v28  ;;  %v2964_v33 = vld [vmem:[%s4056_s1 + $0xf] sm:$0xfe]  ;;  %v1593_v37 = vsel %vm1581_vm11, %v2960_v29, %v2961_v31  ;;  %v2965_v38 = vld [vmem:[%s4056_s1 + $0x17] ss:$0 sm:$0xff]  ;;  %v2967_v39 = vld [vmem:[%s4056_s1 + $0x17] sm:$0xfe]  ;;  %v1539_v43 = vpop.permute.xlu0 %1538 }
 0x366   : >>> { %1585 = vst [vmem:[%s4056_s1] sm:$0xff] %v1582_v30  ;;  %v1604_v35 = vsel %vm1581_vm11, %v2962_v32, %v2964_v33  ;;  %v2968_v41 = vld [vmem:[%s4056_s1 + $0x1f] ss:$0 sm:$0xff]  ;;  %2963 = vst [vmem:[%s4056_s1 + $0x8] sm:$0xff] %v1593_v37  ;;  %v1615_v49 = vsel %vm1581_vm11, %v2965_v38, %v2967_v39  ;;  %v1551_v48 = vsel %vm1320_vm15, %v1539_v43, %v1547_v42 }
 0x367   : >>> { %2966 = vst [vmem:[%s4056_s1 + $0x10] sm:$0xff] %v1604_v35  ;;  %2969 = vst [vmem:[%s4056_s1 + $0x18] sm:$0xff] %v1615_v49  ;;  %v1557_v44 = vsel %vm2549_vm8, %v1551_v48, 0.0  ;;  %v1528_v45 = vpop.permute.xlu1 %1527  ;;  %v454_v49 = vadd.s32 (%p624_p9), 8, %v435_v17 }
 0x368   : >>> { %2957 = vst [vmem:[%s3968_s9 + $0x18] sm:$0xff] %v1557_v44  ;;  %v1532_v46 = vsel %vm1333_vm0, %v3950_v36, %v1528_v45  ;;  %s436_s9 = smov (%p624_p9), [#allocation12] }
 0x369   : >>> { %2956 = vst [vmem:[%s3962_s13 + $0x10] sm:$0xff] %v1532_v46  ;;  %s4179_s13 = smov (%p624_p9), [#allocation14]  ;;  %vm455_vm10 = vcmp.eq.s32.totalorder (%p624_p9), %v454_v49, %v432_v24 }
 0x36a   : >>> { %v1659_v47 = vld [vmem:[%s4092_s0] ss:$0 sm:$0xff]  ;;  %v2982_v51 = vld [vmem:[%s4092_s0 + $0x7] ss:$0 sm:$0xff]  ;;  %v2983_v53 = vld [vmem:[%s4092_s0 + $0x7] sm:$0xfe] }
 0x36b   : >>> { %v2981_v50 = vld [vmem:[%s4092_s0 - $0x1] sm:$0xfe]  ;;  %v2984_v54 = vld [vmem:[%s4092_s0 + $0xf] ss:$0 sm:$0xff]  ;;  %v2986_v55 = vld [vmem:[%s4092_s0 + $0xf] sm:$0xfe]  ;;  %v1677_v36 = vsel %vm1581_vm11, %v2982_v51, %v2983_v53  ;;  %v1560_v60 = vpop.permute.xlu1 %1559 }
 0x36c   : >>> { %v1666_v52 = vsel %vm1581_vm11, %v1659_v47, %v2981_v50  ;;  %v1688_v56 = vsel %vm1581_vm11, %v2984_v54, %v2986_v55  ;;  %v2987_v57 = vld [vmem:[%s4092_s0 + $0x17] ss:$0 sm:$0xff]  ;;  %v2989_v58 = vld [vmem:[%s4092_s0 + $0x17] sm:$0xfe]  ;;  %v2990_v59 = vld [vmem:[%s4092_s0 + $0x1f] ss:$0 sm:$0xff]  ;;  %v1564_v62 = vsel %vm1333_vm0, %v3974_v40, %v1560_v60 }
 0x36d   : >>> { %1669 = vst [vmem:[%s4092_s0] sm:$0xff] %v1666_v52  ;;  %2985 = vst [vmem:[%s4092_s0 + $0x8] sm:$0xff] %v1677_v36  ;;  %v1699_v61 = vsel %vm1581_vm11, %v2987_v57, %v2989_v58  ;;  %v474_v60 = vadd.s32 (%p624_p9), 24, %v435_v17 }
 0x36e   : >>> { %2988 = vst [vmem:[%s4092_s0 + $0x10] sm:$0xff] %v1688_v56  ;;  %2991 = vst [vmem:[%s4092_s0 + $0x18] sm:$0xff] %v1699_v61 }
 0x36f   : >>> { %2958 = vst [vmem:[%s3971_s8 + $0x18] sm:$0xff] %v1564_v62  ;;  %v1619_v63 = vld [vmem:[%s4101_s2] ss:$0 sm:$0xff]  ;;  %v2971_v0 = vld [vmem:[%s4101_s2 + $0x19] sm:$0x7f]  ;;  %vm4312_vm11 = vmmov %vm4311_vm1  ;;  %s2039_s8 = sadd.s32 (%p624_p9), 1, %s3202_s25   ;;  %vm475_vm14 = vcmp.eq.s32.totalorder (%p624_p9), %v474_v60, %v432_v24 }
 0x370   : >>> { %v2972_v1 = vld [vmem:[%s4101_s2 + $0x18] ss:$0 sm:$0xff]  ;;  %2970 = vst [vmem:[%s4056_s1 + $0x1] sm:$0x1] %v1619_v63  ;;  %v1628_v2 = vsel %vm4311_vm1, %v2968_v41, %v2971_v0  ;;  %v2974_v3 = vld [vmem:[%s4101_s2 + $0x11] sm:$0x7f]  ;;  %s4319_s25 = smov (%p624_p9), %s2039_s8 }
 0x371   : >>> { %v2975_v4 = vld [vmem:[%s4101_s2 + $0x10] ss:$0 sm:$0xff]  ;;  %v2977_v5 = vld [vmem:[%s4101_s2 + $0x9] sm:$0x7f]  ;;  %2973 = vst [vmem:[%s4101_s2 + $0x18] sm:$0xff] %v1628_v2  ;;  %v1637_v40 = vsel %vm4312_vm11, %v2972_v1, %v2974_v3  ;;  %p620_p10 = scmp.ge.s32.totalorder (%p624_p9), %s2039_s8, 15 }
 0x372   : >>> { %v1646_v6 = vsel %vm4313_vm2, %v2975_v4, %v2977_v5  ;;  %v2978_v7 = vld [vmem:[%s4101_s2 + $0x8] ss:$0 sm:$0xff]  ;;  %v2980_v8 = vld [vmem:[%s4101_s2 + $0x1] sm:$0x7f]  ;;  %2976 = vst [vmem:[%s4101_s2 + $0x10] sm:$0xff] %v1637_v40 }
 0x373   : >>> { %2979 = vst [vmem:[%s4101_s2 + $0x8] sm:$0xff] %v1646_v6  ;;  %v1654_v9 = vsel %vm4314_vm3, %v2978_v7, %v2980_v8 }
 0x374   : >>> { %1656 = vst [vmem:[%s4101_s2] sm:$0xff] %v1654_v9 }
 0x376   : >>> { %v1703_v10 = vld [vmem:[%s1658_s3] ss:$0 sm:$0xff]  ;;  %v2993_v11 = vld [vmem:[%s1658_s3 + $0x19] sm:$0x7f]  ;;  %v2994_v12 = vld [vmem:[%s1658_s3 + $0x18] ss:$0 sm:$0xff] }
 0x377   : >>> { %2992 = vst [vmem:[%s4092_s0 + $0x1] sm:$0x1] %v1703_v10  ;;  %v1712_v13 = vsel %vm4315_vm4, %v2990_v59, %v2993_v11  ;;  %v2996_v14 = vld [vmem:[%s1658_s3 + $0x11] sm:$0x7f]  ;;  %v2997_v15 = vld [vmem:[%s1658_s3 + $0x10] ss:$0 sm:$0xff] }
 0x378   : >>> { %v2999_v16 = vld [vmem:[%s1658_s3 + $0x9] sm:$0x7f]  ;;  %2995 = vst [vmem:[%s1658_s3 + $0x18] sm:$0xff] %v1712_v13  ;;  %v1721_v18 = vsel %vm4316_vm5, %v2994_v12, %v2996_v14  ;;  %v3000_v20 = vld [vmem:[%s1658_s3 + $0x8] ss:$0 sm:$0xff]  ;;  %v442_v23 = vld [vmem:[%s436_s9] sm:$0xff] (%p624_p9) }
 0x379   : >>> { %v1730_v19 = vsel %vm4317_vm6, %v2997_v15, %v2999_v16  ;;  %v3002_v21 = vld [vmem:[%s1658_s3 + $0x1] sm:$0x7f]  ;;  %2998 = vst [vmem:[%s1658_s3 + $0x10] sm:$0xff] %v1721_v18  ;;  %v3077_v25 = vld [vmem:[%s436_s9 + $0x8] sm:$0xff] (%p624_p9)  ;;  %v3078_v26 = vld [vmem:[%s436_s9 + $0x10] sm:$0xff] (%p624_p9)  ;;  %v443_v27 = vsel (%p624_p9), %vm2549_vm8, %v442_v23, 0.0 }
 0x37a   : >>> { %3001 = vst [vmem:[%s1658_s3 + $0x8] sm:$0xff] %v1730_v19  ;;  %v1738_v22 = vsel %vm4318_vm7, %v3000_v20, %v3002_v21  ;;  %v451_v28 = vsel (%p624_p9), %vm2549_vm8, %v3077_v25, 0.0  ;;  %v461_v29 = vsel (%p624_p9), %vm2549_vm8, %v3078_v26, 0.0  ;;  %v3079_v30 = vld [vmem:[%s436_s9 + $0x18] sm:$0xff] (%p624_p9)  ;;  %v444_v32 = vmul.f32 (%p624_p9), %v443_v27, %v443_v27 }
 0x37b   : >>> { %1740 = vst [vmem:[%s1658_s3] sm:$0xff] %v1738_v22  ;;  %626 = sbr.rel (!%p624_p9) target bundleno = 315 (0x13b), region = 581  ;;  %v452_v33 = vmul.f32 (%p624_p9), %v451_v28, %v451_v28  ;;  %v462_v34 = vmul.f32 (%p624_p9), %v461_v29, %v461_v29  ;;  %v471_v37 = vsel (%p624_p9), %vm2549_vm8, %v3079_v30, 0.0  ;;  %v526_v51 = vld [vmem:[%s4179_s13] sm:$0xff] (%p624_p9)  ;;  %v3083_v53 = vld [vmem:[%s4179_s13 + $0x8] sm:$0xff] (%p624_p9)  ;;  %v464_v59 = vadd.s32 (%p624_p9), 16, %v435_v17  ;;  %v3084_v0 = vld [vmem:[%s4179_s13 + $0x10] sm:$0xff] (%p624_p9) }
 0x37c   : >> { %v472_v41 = vmul.f32 (%p624_p9), %v471_v37, %v471_v37  ;;  %v448_v54 = vsel (%p624_p9), %vm447_vm9, 0.0, %v444_v32  ;;  %v527_v57 = vsel (%p624_p9), %vm2549_vm8, %v526_v51, 0.0  ;;  %v533_v63 = vsel (%p624_p9), %vm2549_vm8, %v3083_v53, 0.0  ;;  %v3085_v3 = vld [vmem:[%s4179_s13 + $0x18] sm:$0xff] (%p624_p9) }
 0x37d   : >> { %v458_v39 = vadd.f32 (%p624_p9), %v452_v33, %v444_v32  ;;  %v456_v56 = vsel (%p624_p9), %vm455_vm10, 0.0, %v452_v33  ;;  %vm465_vm13 = vcmp.eq.s32.totalorder (%p624_p9), %v464_v59, %v432_v24  ;;  %v516_v24 = vmov (%p624_p9), %v3328_v24 }
 0x37e   : >> { %v491_v31 = vld [vmem:[%s485_s10] sm:$0xff] (%p624_p9)  ;;  %v3080_v35 = vld [vmem:[%s485_s10 + $0x8] sm:$0xff] (%p624_p9)  ;;  %v3081_v42 = vld [vmem:[%s485_s10 + $0x10] sm:$0xff] (%p624_p9)  ;;  %v457_v58 = vadd.f32 (%p624_p9), %v456_v56, %v448_v54  ;;  %v519_v17 = vmov (%p624_p9), %v3324_v17  ;;  %v528_v2 = vmul.f32 (%p624_p9), %v527_v57, %v527_v57  ;;  %v466_v4 = vsel (%p624_p9), %vm465_vm13, 0.0, %v462_v34 }
 0x37f   : >> { %v492_v38 = vsel (%p624_p9), %vm2549_vm8, %v491_v31, 0.0  ;;  %v498_v43 = vsel (%p624_p9), %vm2549_vm8, %v3080_v35, 0.0  ;;  %v468_v48 = vadd.f32 (%p624_p9), %v462_v34, %v458_v39  ;;  %v3082_v45 = vld [vmem:[%s485_s10 + $0x18] sm:$0xff] (%p624_p9)  ;;  %v504_v46 = vsel (%p624_p9), %vm2549_vm8, %v3081_v42, 0.0 }
 0x380   : >> { %v493_v44 = vmul.f32 %v492_v38, %v492_v38  ;;  %v499_v50 = vmul.f32 %v498_v43, %v498_v43  ;;  %v510_v52 = vsel %vm2549_vm8, %v3082_v45, 0.0  ;;  %v505_v36 = vmul.f32 %v504_v46, %v504_v46 }
 0x381   : >> { %v478_v47 = vadd.f32 %v472_v41, %v468_v48  ;;  %v511_v62 = vmul.f32 %v510_v52, %v510_v52  ;;  %v476_v5 = vsel %vm475_vm14, 0.0, %v472_v41  ;;  %v539_v40 = vsel %vm2549_vm8, %v3084_v0, 0.0 }
 0x382   : >> { %v467_v6 = vadd.f32 %v466_v4, %v457_v58  ;;  %v534_v8 = vmul.f32 %v533_v63, %v533_v63  ;;  %v561_v9 = vld [vmem:[%s555_s18] sm:$0xff]  ;;  %v545_v10 = vsel %vm2549_vm8, %v3085_v3, 0.0  ;;  %v540_v13 = vmul.f32 %v539_v40, %v539_v40  ;;  %v3086_v14 = vld [vmem:[%s555_s18 + $0x8] sm:$0xff]  ;;  %v3087_v20 = vld [vmem:[%s555_s18 + $0x10] sm:$0xff] }
 0x383   : >> { %v495_v55 = vadd.f32 %v493_v44, %v478_v47  ;;  %v562_v15 = vsel %vm2549_vm8, %v561_v9, 0.0  ;;  %v546_v19 = vmul.f32 %v545_v10, %v545_v10  ;;  %v572_v21 = vsel %vm2549_vm8, %v3086_v14, 0.0  ;;  %v3088_v26 = vld [vmem:[%s555_s18 + $0x18] sm:$0xff] }
 0x384   : >> { %v477_v11 = vadd.f32 %v476_v5, %v467_v6  ;;  %v563_v25 = vmul.f32 %v562_v15, %v562_v15  ;;  %v582_v27 = vsel %vm2549_vm8, %v3087_v20, 0.0  ;;  %v573_v30 = vmul.f32 %v572_v21, %v572_v21 }
 0x385   : >> { %v501_v61 = vadd.f32 %v499_v50, %v495_v55  ;;  %v554_v17 = vmov %v3324_v17  ;;  %v592_v31 = vsel %vm2549_vm8, %v3088_v26, 0.0  ;;  %v583_v34 = vmul.f32 %v582_v27, %v582_v27 }
 0x386   : >> { %v494_v16 = vadd.f32 %v493_v44, %v477_v11  ;;  %v551_v24 = vmov %v3328_v24  ;;  %v575_v35 = vadd.s32 8, %v554_v17  ;;  %v593_v39 = vmul.f32 %v592_v31, %v592_v31 }
 0x387   : >> { %v507_v1 = vadd.f32 %v505_v36, %v501_v61  ;;  %vm566_vm12 = vcmp.eq.s32.totalorder %v554_v17, %v551_v24  ;;  %v585_v42 = vadd.s32 16, %v554_v17  ;;  %v595_v48 = vadd.s32 24, %v554_v17 }
 0x388   : >> { %v500_v22 = vadd.f32 %v499_v50, %v494_v16  ;;  %vm576_vm15 = vcmp.eq.s32.totalorder %v575_v35, %v551_v24  ;;  %v567_v45 = vsel %vm566_vm12, 0.0, %v563_v25 }
 0x389   : >> { %v513_v7 = vadd.f32 %v511_v62, %v507_v1  ;;  %vm586_vm0 = vcmp.eq.s32.totalorder %v585_v42, %v551_v24  ;;  %v577_v47 = vsel %vm576_vm15, 0.0, %v573_v30  ;;  %vm596_vm1 = vcmp.eq.s32.totalorder %v595_v48, %v551_v24 }
 0x38a   : >> { %v506_v28 = vadd.f32 %v505_v36, %v500_v22  ;;  %v587_v51 = vsel %vm586_vm0, 0.0, %v583_v34  ;;  %v597_v53 = vsel %vm596_vm1, 0.0, %v593_v39 }
 0x38b   : >> { %v530_v12 = vadd.f32 %v528_v2, %v513_v7 }
 0x38c   : >> { %v512_v32 = vadd.f32 %v511_v62, %v506_v28 }
 0x38d   : >> { %v536_v18 = vadd.f32 %v534_v8, %v530_v12 }
 0x38e   : >> { %v529_v37 = vadd.f32 %v528_v2, %v512_v32 }
 0x38f   : >> { %v542_v23 = vadd.f32 %v540_v13, %v536_v18 }
 0x390   : >> { %v535_v41 = vadd.f32 %v534_v8, %v529_v37 }
 0x391   : >> { %v548_v29 = vadd.f32 %v546_v19, %v542_v23 }
 0x392   : >> { %v541_v49 = vadd.f32 %v540_v13, %v535_v41 }
 0x393   : >> { %v569_v33 = vadd.f32 %v563_v25, %v548_v29 }
 0x394   : >> { %v547_v46 = vadd.f32 %v546_v19, %v541_v49 }
 0x395   : >> { %v579_v38 = vadd.f32 %v573_v30, %v569_v33 }
 0x396   : >> { %v568_v50 = vadd.f32 %v567_v45, %v547_v46 }
 0x397   : >> { %v589_v43 = vadd.f32 %v583_v34, %v579_v38 }
 0x398   : >> { %v578_v52 = vadd.f32 %v577_v47, %v568_v50 }
 0x399   : >> { %v599_v44 = vadd.f32 %v593_v39, %v589_v43 }
 0x39a   : >> { %v588_v54 = vadd.f32 %v587_v51, %v578_v52 }
 0x39b   : >> { %600 = vadd.xlane.f32.xlu0 %v599_v44 }
 0x39c   : >> { %v598_v55 = vadd.f32 %v597_v53, %v588_v54 }
 0x39f   : >> { %608 = vadd.xlane.f32.xlu0 %v598_v55 }
 0x424   : >> { %v601_v36 = vpop.xlane.xlu0 %600 }
 0x425   : >> { %v602_v56 = vrot.slane %v601_v36, 4 }
 0x427   : >> { %v603_v57 = vadd.f32 %v602_v56, %v601_v36 }
 0x428   : >> { %v609_v59 = vpop.xlane.xlu0 %608 }
 0x429   : >> { %v604_v58 = vrot.slane %v603_v57, 2  ;;  %v610_v60 = vrot.slane %v609_v59, 4 }
 0x42b   : >> { %v611_v61 = vadd.f32 %v610_v60, %v609_v59  ;;  %v605_v62 = vadd.f32 %v604_v58, %v603_v57 }
 0x42d   : >> { %v612_v63 = vrot.slane %v611_v61, 2  ;;  %v606_v1 = vrot.slane %v605_v62, 1 }
 0x42f   : >> { %v613_v0 = vadd.f32 %v612_v63, %v611_v61  ;;  %v607_v4 = vadd.f32 %v606_v1, %v605_v62 }
 0x431   : >> { %v614_v2 = vrot.slane %v613_v0, 1 }
 0x433   : >> { %v615_v3 = vadd.f32 %v614_v2, %v613_v0 }
 0x435   : >> { %3113 = vpush %v615_v3 }
 0x436   : >> { %3115 = vpush %v607_v4 }
 0x466   : >> { %s3114_s21 = spop %3113 }
 0x467   : >> { %s3116_s26 = spop %3115 }
 0x468   : >> { %s618_s16 = smul.f32 1e-10, %s3116_s26 }
 0x46a   : >> { %p619_p11 = scmp.le.f32.partialorder %s3114_s21, %s618_s16 }
 0x46c   : >> { %p621_p12 = por %p620_p10, %p619_p11 }
 0x46e   : > { %2041 = sbr.rel (!%p621_p12) target bundleno = 314 (0x13a), region = 592 }
 0x473 PF: > { %s2046_s17 = smov [#allocation12]  ;;  %v2050_v24 = vmov %v3328_v24  ;;  %v2053_v17 = vmov %v3324_v17  ;;  %s2084_s25 = smov [#allocation15] }
 0x474   : > { %v2088_v24 = vmov %v3328_v24  ;;  %v2091_v17 = vmov %v3324_v17  ;;  %v2054_v5 = vld [vmem:[%s2046_s17] sm:$0xff]  ;;  %vm2057_vm11 = vcmp.eq.s32.totalorder %v2053_v17, %v2050_v24  ;;  %v3089_v40 = vld [vmem:[%s2046_s17 + $0x8] sm:$0xff]  ;;  %v2062_v6 = vadd.s32 8, %v2053_v17  ;;  %v3090_v8 = vld [vmem:[%s2046_s17 + $0x10] sm:$0xff]  ;;  %s2042_s11 = sand.u32 7, %s3277_s12   ;;  %s4320_s22 = scalar_lea.vmem [#allocation5], %s3322_s28 }
 0x475   : > { %vm2095_vm2 = vcmp.eq.s32.totalorder %v2091_v17, %v2088_v24  ;;  %v2058_v7 = vsel %vm2057_vm11, %v2054_v5, 0.0  ;;  %v2068_v9 = vadd.s32 16, %v2053_v17  ;;  %v2074_v10 = vadd.s32 24, %v2053_v17  ;;  %v3091_v12 = vld [vmem:[%s2046_s17 + $0x18] sm:$0xff]  ;;  %v2092_v13 = vld [vmem:[%s2084_s25] sm:$0xff]  ;;  %v3092_v14 = vld [vmem:[%s2084_s25 + $0x8] sm:$0xff] }
 0x476   : > { %v2100_v11 = vadd.s32 8, %v2091_v17  ;;  %vm2063_vm8 = vcmp.eq.s32.totalorder %v2062_v6, %v2050_v24  ;;  %v2106_v15 = vadd.s32 16, %v2091_v17  ;;  %v2112_v16 = vadd.s32 24, %v2091_v17  ;;  %v3093_v20 = vld [vmem:[%s2084_s25 + $0x10] sm:$0xff]  ;;  %v3094_v22 = vld [vmem:[%s2084_s25 + $0x18] sm:$0xff]  ;;  %s2043_s27 = scalar_lea.vmem [#allocation4], %s2042_s11 }
 0x477   : > { %v2064_v18 = vsel %vm2063_vm8, %v3089_v40, %v2058_v7  ;;  %vm2069_vm3 = vcmp.eq.s32.totalorder %v2068_v9, %v2050_v24  ;;  %vm2075_vm4 = vcmp.eq.s32.totalorder %v2074_v10, %v2050_v24  ;;  %v2096_v19 = vsel %vm2095_vm2, %v2092_v13, 0.0  ;;  %s2047_s27 = smov %s2043_s27  ;;  %s2045_s30 = scalar_lea.vmem [#allocation6], %s2042_s11 }
 0x478   : > { %v2070_v21 = vsel %vm2069_vm3, %v3090_v8, %v2064_v18  ;;  %vm2101_vm5 = vcmp.eq.s32.totalorder %v2100_v11, %v2088_v24  ;;  %vm2107_vm6 = vcmp.eq.s32.totalorder %v2106_v15, %v2088_v24  ;;  %vm2113_vm7 = vcmp.eq.s32.totalorder %v2112_v16, %v2088_v24  ;;  %s2085_s30 = smov %s2045_s30  ;;  %s4321_s29 = scalar_lea.vmem [#allocation7], %s3322_s28 }
 0x479   : > { %v2076_v23 = vsel %vm2075_vm4, %v3091_v12, %v2070_v21  ;;  %v2102_v25 = vsel %vm2101_vm5, %v3092_v14, %v2096_v19  ;;  %s2165_s20 = sshrl.u32 (%p3291_p3), %s3277_s12, 3  ;;  %s4322_s1 = scalar_lea.vmem (%p3291_p3), [#allocation5], %s3322_s28 }
 0x47a   : > { %v2077_v26 = vrot.slane %v2076_v23, 4  ;;  %v2108_v27 = vsel %vm2107_vm6, %v3093_v20, %v2102_v25  ;;  %s3101_s0 = sshll.u32 (%p3291_p3), %s2165_s20, 1 }
 0x47b   : > { %v2114_v28 = vsel %vm2113_vm7, %v3094_v22, %v2108_v27  ;;  %s2167_s8 = scalar_lea.vmem (%p3291_p3), %s4284_s4, %s3101_s0 }
 0x47c   : > { %v2078_v29 = vadd.f32 %v2077_v26, %v2076_v23  ;;  %v2115_v30 = vrot.slane %v2114_v28, 4 }
 0x47e   : > { %v2079_v31 = vrot.slane %v2078_v29, 2  ;;  %v2116_v32 = vadd.f32 %v2115_v30, %v2114_v28 }
 0x480   : > { %v2080_v33 = vadd.f32 %v2079_v31, %v2078_v29  ;;  %v2117_v17 = vrot.slane %v2116_v32, 2 }
 0x482   : > { %v2081_v34 = vrot.slane %v2080_v33, 1  ;;  %v2118_v37 = vadd.f32 %v2117_v17, %v2116_v32 }
 0x484   : > { %v2082_v35 = vadd.f32 %v2081_v34, %v2080_v33  ;;  %v2119_v24 = vrot.slane %v2118_v37, 1 }
 0x486   : > { %2083 = vst [vmem:[%s2047_s27] sm:$0x1] %v2082_v35  ;;  %v2120_v38 = vadd.f32 %v2119_v24, %v2118_v37 }
 0x488   : > { %2121 = vst [vmem:[%s2085_s30] sm:$0x1] %v2120_v38 }
 0x48c   : > { %2164 = sbr.rel (!%p3291_p3) target bundleno = 1175 (0x497), region = 114 }
 0x48d   : > { %v2126_v39 = vld [vmem:[#allocation4] sm:$0x3] }
 0x48e   : > { %2129 = vst [vmem:[%s4320_s22] sm:$0x3] %v2126_v39 }
 0x48f   : > { %v2134_v41 = vld [vmem:[#allocation6] sm:$0x3] }
 0x490   : > { %2137 = vst [vmem:[%s4321_s29] sm:$0x3] %v2134_v41 }
 0x495   : > { %v2184_v42 = vld [vmem:[%s4322_s1] sm:$0x3] }
 0x496   : > { %2185 = vst [vmem:[%s2167_s8] sm:$0x3] %v2184_v42 }
 0x497 PF: > { %2203 = sbr.rel (!%p3291_p3) target bundleno = 1183 (0x49f), region = 148  ;;  %s2204_s9 = sshrl.u32 (%p3291_p3), %s3277_s12, 3 }
 0x498   : > { %s4323_s10 = scalar_lea.vmem (%p3291_p3), [#allocation7], %s3322_s28  ;;  %s3102_s13 = sshll.u32 (%p3291_p3), %s2204_s9, 1 }
 0x499   : > { %s2206_s26 = scalar_lea.vmem (%p3291_p3), %s4285_s5, %s3102_s13 }
 0x49d   : > { %v2223_v43 = vld [vmem:[%s4323_s10] sm:$0x3] }
 0x49e   : > { %2224 = vst [vmem:[%s2206_s26] sm:$0x3] %v2223_v43 }
 0x49f PF: > { %s3103_s19 = sshll.u32 %s3277_s12, 5  ;;  %v2254_v49 = vld [vmem:[%s3338_s14] sm:$0xff]  ;;  %v2256_v48 = vld [vmem:[%s3338_s14 + $0x8] sm:$0xff]  ;;  %v2258_v44 = vld [vmem:[%s3338_s14 + $0x10] sm:$0xff]  ;;  %s4324_s30 = sld [smem:[#allocation32_spill]] }
 0x4a0   : > { %s2241_s17 = scalar_lea.vmem %s4286_s6, %s3103_s19  ;;  %v2260_v45 = vld [vmem:[%s3338_s14 + $0x18] sm:$0xff]  ;;  %s2266_s27 = scalar_lea.vmem %s4287_s7, %s3103_s19  ;;  %v2279_v46 = vld [vmem:[%s3345_s15] sm:$0xff]  ;;  %v2281_v47 = vld [vmem:[%s3345_s15 + $0x8] sm:$0xff] }
 0x4a1   : > { %2255 = vst [vmem:[%s2241_s17] sm:$0xff] %v2254_v49  ;;  %2257 = vst [vmem:[%s2241_s17 + $0x8] sm:$0xff] %v2256_v48  ;;  %v2283_v50 = vld [vmem:[%s3345_s15 + $0x10] sm:$0xff]  ;;  %v2285_v51 = vld [vmem:[%s3345_s15 + $0x18] sm:$0xff]  ;;  %s4325_s1 = sld [smem:[#allocation33_spill]] }
 0x4a2   : > { %2259 = vst [vmem:[%s2241_s17 + $0x10] sm:$0xff] %v2258_v44  ;;  %2261 = vst [vmem:[%s2241_s17 + $0x18] sm:$0xff] %v2260_v45  ;;  %v2304_v52 = vld [vmem:[%s3354_s23] sm:$0xff]  ;;  %v2306_v53 = vld [vmem:[%s3354_s23 + $0x8] sm:$0xff] }
 0x4a3   : > { %2280 = vst [vmem:[%s2266_s27] sm:$0xff] %v2279_v46  ;;  %2282 = vst [vmem:[%s2266_s27 + $0x8] sm:$0xff] %v2281_v47  ;;  %v2308_v54 = vld [vmem:[%s3354_s23 + $0x10] sm:$0xff]  ;;  %v2310_v55 = vld [vmem:[%s3354_s23 + $0x18] sm:$0xff] }
 0x4a4   : > { %2284 = vst [vmem:[%s2266_s27 + $0x10] sm:$0xff] %v2283_v50  ;;  %2286 = vst [vmem:[%s2266_s27 + $0x18] sm:$0xff] %v2285_v51  ;;  %v2329_v36 = vld [vmem:[%s3361_s24] sm:$0xff]  ;;  %v2331_v56 = vld [vmem:[%s3361_s24 + $0x8] sm:$0xff] }
 0x4a5   : > { %s2291_s22 = scalar_lea.vmem %s4324_s30, %s3103_s19  ;;  %v2333_v57 = vld [vmem:[%s3361_s24 + $0x10] sm:$0xff]  ;;  %v2335_v58 = vld [vmem:[%s3361_s24 + $0x18] sm:$0xff] }
 0x4a6   : > { %2305 = vst [vmem:[%s2291_s22] sm:$0xff] %v2304_v52  ;;  %2307 = vst [vmem:[%s2291_s22 + $0x8] sm:$0xff] %v2306_v53 }
 0x4a7   : > { %s2316_s0 = scalar_lea.vmem %s4325_s1, %s3103_s19  ;;  %2309 = vst [vmem:[%s2291_s22 + $0x10] sm:$0xff] %v2308_v54  ;;  %2311 = vst [vmem:[%s2291_s22 + $0x18] sm:$0xff] %v2310_v55 }
 0x4a8   : > { %2330 = vst [vmem:[%s2316_s0] sm:$0xff] %v2329_v36  ;;  %2332 = vst [vmem:[%s2316_s0 + $0x8] sm:$0xff] %v2331_v56 }
 0x4a9   : > { %2334 = vst [vmem:[%s2316_s0 + $0x10] sm:$0xff] %v2333_v57  ;;  %2336 = vst [vmem:[%s2316_s0 + $0x18] sm:$0xff] %v2335_v58 }
 0x4aa PF: > { %s4326_s11 = sld [smem:[#allocation26_spill]] }
 0x4ab   : > { %s4327_s30 = sld [smem:[#allocation25_spill]] }
 0x4ac   : > { %s4328_s10 = sld [smem:[#allocation27_spill]] }
 0x4b0   : > { %p13_p13 = scmp.ge.s32.totalorder %s4326_s11, 4  }
 0x4b2   :  { %15 = sbr.rel (!%p13_p13) target bundleno = 9 (0x9), region = 603 }

// kernel: single_level_ae_ost_forward.5
= control target key start
LH: loop header
LB: loop body
LE: loop exit
PB: predicated region body
PF: predicated region fallthrough
CT: control target
= control target key end

     0   :  { %s1088_s9 = smov 0   ;;  %s1090_s10 = smov 0   ;;  %s1382_s0 = inlined_call_operand.vmem [shape: bf16[4,64,288], index: 0, kind: input, shape index: {}]   ;;  %s1383_s1 = inlined_call_operand.vmem [shape: f32[4,64,1], index: 1, kind: output, shape index: {0}]   ;;  %s1384_s2 = inlined_call_operand.vmem [shape: f32[4,64,64], index: 2, kind: output, shape index: {1}]  }
   0x1   :  { %s1092_s11 = smov 0  }
   0x2 LB: > { %s25_s12 = sadd.s32 1, %s1066_s10  ;;  %p880_p0 = scmp.ge.s32.totalorder %s1070_s11, 1  ;;  %s1070_s11 = sphi %s1092_s11, %s13_s11   ;;  %s1066_s10 = sphi %s1090_s10, %s1386_s10   ;;  %s1062_s9 = sphi %s1088_s9, %s1385_s9  }
   0x3   : > { %p27_p1 = scmp.ge.s32.totalorder %s25_s12, 4  ;;  %p134_p2 = scmp.lt.s32.totalorder %s1070_s11, 5 }
   0x5   : > { %s1388_s12 = smov (%p27_p1, %s25_s12), 0  ;;  %p135_p3 = pnand %p880_p0, %p134_p2 }
   0x6   : > { %p166_p4 = scmp.lt.s32.totalorder (!%p135_p3), %s1062_s9, 3 }
   0x7   : > { %138 = sbr.rel (%p135_p3) target bundleno = 414 (0x19e), region = 24 }
   0xc   : > { %vm190_vm0 = vcmask 7168   ;;  %v1072_v0 = vmov 0.0   ;;  %s1390_s9 = smov (!%p166_p4, %s1062_s9), 3  ;;  %vm257_vm1 = vcmask 261120   ;;  %vm199_vm2 = vcmask 523264  }
   0xd   : > { %198 = vst.msk [vmem:[#allocation2 + $0x38] sm:$0xff] %vm190_vm0, %v1072_v0  ;;  %191 = vst.msk [vmem:[#allocation2] sm:$0xff] %vm190_vm0, %v1072_v0  ;;  %s1010_s13 = smul.u32 96, %s1390_s9  ;;  %s920_s17 = sshll.u32 %s1390_s9, 6 }
   0xe   : > { %192 = vst.msk [vmem:[#allocation2 + $0x8] sm:$0xff] %vm190_vm0, %v1072_v0  ;;  %193 = vst.msk [vmem:[#allocation2 + $0x10] sm:$0xff] %vm190_vm0, %v1072_v0  ;;  %s1246_s20 = scalar_lea.vmem %s1383_s1, %s920_s17  ;;  %s1341_s23 = scalar_lea.vmem %s1384_s2, %s920_s17 }
   0xf   : > { %194 = vst.msk [vmem:[#allocation2 + $0x18] sm:$0xff] %vm190_vm0, %v1072_v0  ;;  %195 = vst.msk [vmem:[#allocation2 + $0x20] sm:$0xff] %vm190_vm0, %v1072_v0  ;;  %s1128_s16 = scalar_lea.vmem %s1382_s0, %s1010_s13 }
  0x10   : > { %196 = vst.msk [vmem:[#allocation2 + $0x28] sm:$0xff] %vm190_vm0, %v1072_v0  ;;  %197 = vst.msk [vmem:[#allocation2 + $0x30] sm:$0xff] %vm190_vm0, %v1072_v0  ;;  %v1131_v1 = vld [vmem:[%s1128_s16 + $0x54] sm:$0xff]  ;;  %v1134_v2 = vld [vmem:[%s1128_s16 + $0x5c] sm:$0xf] }
  0x11   : > { %v1137_v3 = vld [vmem:[%s1128_s16 + $0x48] sm:$0xff]  ;;  %v253_v4 = vunpack.c.l.bf16 %v1131_v1  ;;  %v254_v5 = vunpack.c.h.bf16 %v1131_v1  ;;  %v255_v6 = vunpack.c.l.bf16 %v1134_v2  ;;  %v1143_v7 = vld [vmem:[%s1128_s16 + $0x50] sm:$0xf]  ;;  %v1147_v9 = vld [vmem:[%s1128_s16 + $0x3c] sm:$0xff]  ;;  %200 = vst.msk [vmem:[#allocation3] sm:$0xff] %vm199_vm2, %v1072_v0 }
  0x12   : > { %v250_v8 = vunpack.c.l.bf16 %v1137_v3  ;;  %v219_v10 = vld [vmem:[%s1128_s16 + $0x44] sm:$0xf]  ;;  %v251_v11 = vunpack.c.h.bf16 %v1137_v3  ;;  %v252_v12 = vunpack.c.l.bf16 %v1143_v7  ;;  %v247_v13 = vunpack.c.l.bf16 %v1147_v9  ;;  %v217_v15 = vld [vmem:[%s1128_s16 + $0x38] sm:$0xf]  ;;  %v1156_v16 = vld [vmem:[%s1128_s16 + $0x30] sm:$0xff]  ;;  %201 = vst.msk [vmem:[#allocation3 + $0x8] sm:$0xff] %vm199_vm2, %v1072_v0 }
  0x13   : > { %v248_v14 = vunpack.c.h.bf16 %v1147_v9  ;;  %v292_v17 = vadd.f32 %v254_v5, %v253_v4  ;;  %v293_v18 = vsel %vm257_vm1, %v255_v6, 0.0  ;;  %v249_v19 = vunpack.c.l.bf16 %v219_v10  ;;  %v1160_v20 = vld [vmem:[%s1128_s16 + $0x24] sm:$0xff]  ;;  %v1165_v25 = vld [vmem:[%s1128_s16 + $0x2c] sm:$0xf]  ;;  %v1168_v26 = vld [vmem:[%s1128_s16 + $0x18] sm:$0xff]  ;;  %202 = vst.msk [vmem:[#allocation3 + $0x10] sm:$0xff] %vm199_vm2, %v1072_v0 }
  0x14   : > { %v287_v21 = vadd.f32 %v251_v11, %v250_v8  ;;  %v288_v22 = vsel %vm257_vm1, %v252_v12, 0.0  ;;  %v244_v24 = vunpack.c.l.bf16 %v1156_v16  ;;  %v245_v29 = vunpack.c.h.bf16 %v1156_v16  ;;  %v213_v31 = vld [vmem:[%s1128_s16 + $0x20] sm:$0xf]  ;;  %v1176_v36 = vld [vmem:[%s1128_s16 + $0xc] sm:$0xff]  ;;  %v211_v41 = vld [vmem:[%s1128_s16 + $0x14] sm:$0xf] }
  0x15   : > { %v282_v23 = vadd.f32 %v248_v14, %v247_v13  ;;  %v294_v27 = vadd.f32 %v293_v18, %v292_v17  ;;  %v283_v28 = vsel %vm257_vm1, %v249_v19, 0.0  ;;  %v246_v30 = vunpack.c.l.bf16 %v217_v15  ;;  %v208_v45 = vld [vmem:[%s1128_s16] sm:$0xff]  ;;  %v209_v46 = vld [vmem:[%s1128_s16 + $0x8] sm:$0xf]  ;;  %203 = vst.msk [vmem:[#allocation3 + $0x18] sm:$0xff] %vm199_vm2, %v1072_v0  ;;  %204 = vst.msk [vmem:[#allocation3 + $0x20] sm:$0xff] %vm199_vm2, %v1072_v0 }
  0x16   : > { %v289_v32 = vadd.f32 %v288_v22, %v287_v21  ;;  %v241_v34 = vunpack.c.l.bf16 %v1160_v20  ;;  %v242_v35 = vunpack.c.h.bf16 %v1160_v20  ;;  %v277_v37 = vadd.f32 %v245_v29, %v244_v24  ;;  %205 = vst.msk [vmem:[#allocation3 + $0x28] sm:$0xff] %vm199_vm2, %v1072_v0  ;;  %206 = vst.msk [vmem:[#allocation3 + $0x30] sm:$0xff] %vm199_vm2, %v1072_v0  ;;  %v231_v18 = vld [vmem:[#allocation2 + $0x38] sm:$0xff] }
  0x17   : > { %v284_v33 = vadd.f32 %v283_v28, %v282_v23  ;;  %295 = vadd.xlane.f32.xlu0 %v294_v27  ;;  %v278_v38 = vsel %vm257_vm1, %v246_v30, 0.0  ;;  %v243_v39 = vunpack.c.l.bf16 %v1165_v25  ;;  %v238_v40 = vunpack.c.l.bf16 %v1168_v26  ;;  %207 = vst.msk [vmem:[#allocation3 + $0x38] sm:$0xff] %vm199_vm2, %v1072_v0  ;;  %v229_v19 = vld [vmem:[#allocation2 + $0x28] sm:$0xff]  ;;  %v230_v23 = vld [vmem:[#allocation2 + $0x30] sm:$0xff]  ;;  %v227_v30 = vld [vmem:[#allocation2 + $0x18] sm:$0xff] }
  0x18   : > { %v272_v42 = vadd.f32 %v242_v35, %v241_v34  ;;  %v239_v43 = vunpack.c.h.bf16 %v1168_v26  ;;  %v240_v44 = vunpack.c.l.bf16 %v213_v31  ;;  %v279_v47 = vadd.f32 %v278_v38, %v277_v37  ;;  %v225_v37 = vld [vmem:[#allocation2 + $0x8] sm:$0xff] }
  0x19   : > { %285 = vadd.xlane.f32.xlu1 %v284_v33  ;;  %v273_v48 = vsel %vm257_vm1, %v243_v39, 0.0  ;;  %v235_v49 = vunpack.c.l.bf16 %v1176_v36  ;;  %v236_v50 = vunpack.c.h.bf16 %v1176_v36  ;;  %v237_v54 = vunpack.c.l.bf16 %v211_v41 }
  0x1a   : > { %v274_v51 = vadd.f32 %v273_v48, %v272_v42  ;;  %v267_v52 = vadd.f32 %v239_v43, %v238_v40  ;;  %v268_v53 = vsel %vm257_vm1, %v240_v44, 0.0  ;;  %v232_v56 = vunpack.c.l.bf16 %v208_v45  ;;  %v224_v40 = vld [vmem:[#allocation2] sm:$0xff] }
  0x1b   : > { %290 = vadd.xlane.f32.xlu0 %v289_v32  ;;  %v262_v55 = vadd.f32 %v236_v50, %v235_v49  ;;  %v233_v57 = vunpack.c.h.bf16 %v208_v45  ;;  %v234_v58 = vunpack.c.l.bf16 %v209_v46  ;;  %v263_v60 = vsel %vm257_vm1, %v237_v54, 0.0 }
  0x1c   : > { %v269_v59 = vadd.f32 %v268_v53, %v267_v52  ;;  %v888_v61 = vcombine.low %v209_v46, %v211_v41  ;;  %v896_v62 = vcombine.high %v1137_v3, %v1131_v1  ;;  %v895_v5 = vcombine.low %v1137_v3, %v1131_v1 }
  0x1d   : > { %280 = vadd.xlane.f32.xlu1 %v279_v47  ;;  %v256_v63 = vadd.f32 %v233_v57, %v232_v56  ;;  %v258_v4 = vsel %vm257_vm1, %v234_v58, 0.0  ;;  %v894_v6 = vcombine.low %v217_v15, %v219_v10  ;;  %v897_v8 = vcombine.low %v1143_v7, %v1134_v2 }
  0x1e   : > { %402 = vmatprep.subr.bf16.mxu0 %v896_v62  ;;  %v893_v11 = vcombine.high %v1156_v16, %v1147_v9  ;;  %954 = vmatprep.mubr.msk.bf16.mxu1 %vm257_vm1, %v888_v61  ;;  %v264_v12 = vadd.f32 %v263_v60, %v262_v55  ;;  %v887_v1 = vcombine.high %v208_v45, %v1176_v36 }
  0x1f   : > { %275 = vadd.xlane.f32.xlu0 %v274_v51  ;;  %403 = vmatpush1.bf16.xpose.msra.mxu0 %v895_v5  ;;  %v259_v13 = vadd.f32 %v258_v4, %v256_v63  ;;  %v392_v14 = vsel %vm257_vm1, %v897_v8, 0  ;;  %v892_v2 = vcombine.low %v1156_v16, %v1147_v9  ;;  %v890_v3 = vcombine.high %v1168_v26, %v1160_v20 }
  0x20   : > { %1006 = vmatprep.subr.msk.bf16.mxu1 %vm257_vm1, %v897_v8  ;;  %404 = vmatprep.subr.bf16.mxu0 %v893_v11  ;;  %v891_v7 = vcombine.low %v213_v31, %v1165_v25  ;;  %v389_v10 = vsel %vm257_vm1, %v894_v6, 0  ;;  %v889_v15 = vcombine.low %v1168_v26, %v1160_v20  ;;  %v886_v9 = vcombine.low %v208_v45, %v1176_v36  ;;  %v228_v25 = vld [vmem:[#allocation2 + $0x20] sm:$0xff]  ;;  %v226_v31 = vld [vmem:[#allocation2 + $0x10] sm:$0xff] }
  0x21   : > { %270 = vadd.xlane.f32.xlu1 %v269_v59  ;;  %947 = vmatpush3.bf16.xpose.msra.mxu1 %v392_v14  ;;  %v383_v16 = vsel %vm257_vm1, %v888_v61, 0 }
  0x22   : > { %1007 = vmatprep.subr.msk.bf16.mxu1 %vm257_vm1, %v894_v6  ;;  %426 = vmatprep.mubr.bf16.mxu0 %v887_v1  ;;  %v386_v17 = vsel %vm257_vm1, %v891_v7, 0 }
  0x23   : > { %265 = vadd.xlane.f32.xlu0 %v264_v12 }
  0x25   : > { %260 = vadd.xlane.f32.xlu1 %v259_v13  ;;  %v315_v13 = vld [vmem:[#allocation3 + $0x8] sm:$0xff] }
  0x27   : > { %405 = vmatpush1.bf16.xpose.msra.mxu0 %v892_v2 }
  0x28   : > { %406 = vmatprep.subr.bf16.mxu0 %v890_v3 }
  0x29   : > { %949 = vmatpush3.bf16.xpose.msra.mxu1 %v389_v10 }
  0x2a   : > { %1008 = vmatprep.subr.msk.bf16.mxu1 %vm257_vm1, %v891_v7 }
  0x2f   : > { %407 = vmatpush1.bf16.xpose.msra.mxu0 %v889_v15 }
  0x30   : > { %408 = vmatprep.subr.bf16.mxu0 %v887_v1 }
  0x31   : > { %951 = vmatpush3.bf16.xpose.msra.mxu1 %v386_v17  ;;  %v317_v17 = vld [vmem:[#allocation3 + $0x18] sm:$0xff] }
  0x32   : > { %1009 = vmatprep.subr.msk.bf16.mxu1 %vm257_vm1, %v888_v61 }
  0x37   : > { %409 = vmatpush1.bf16.xpose.msra.mxu0 %v886_v9 }
  0x39   : > { %953 = vmatpush3.bf16.xpose.msra.mxu1 %v383_v16 }
  0x3e   : > { %427 = vmatmul.mubr.bf16.vlgmr.msra.gmra.mxu0 %v886_v9 }
  0x3f   : > { %434 = vmatprep.mubr.bf16.mxu0 %v890_v3 }
  0x40   : > { %955 = vmatmul.mubr.msk.bf16.vlgmr.msra.gmra.mxu1 %vm257_vm1, %v891_v7 }
  0x41   : > { %958 = vmatprep.mubr.msk.bf16.mxu1 %vm257_vm1, %v894_v6 }
  0x46   : > { %435 = vmatmul.mubr.bf16.gmra.mxu0 %v889_v15 }
  0x47   : > { %442 = vmatprep.mubr.bf16.mxu0 %v893_v11  ;;  %v316_v11 = vld [vmem:[#allocation3 + $0x10] sm:$0xff] }
  0x48   : > { %959 = vmatmul.mubr.msk.bf16.gmra.mxu1 %vm257_vm1, %v897_v8 }
  0x4e   : > { %443 = vmatmul.mubr.bf16.gmra.mxu0 %v892_v2 }
  0x4f   : > { %450 = vmatprep.mubr.bf16.mxu0 %v896_v62  ;;  %v314_v62 = vld [vmem:[#allocation3] sm:$0xff] }
  0x56   : > { %451 = vmatmul.mubr.bf16.gmra.mxu0 %v895_v5 }
  0xa0   : > { %v296_v20 = vpop.xlane.xlu0 %295 }
  0xa1   : > { %v304_v21 = vadd.f32 %v296_v20, %v231_v18 }
  0xa2   : > { %v286_v22 = vpop.xlane.xlu1 %285 }
  0xa3   : > { %v302_v24 = vadd.f32 %v286_v22, %v229_v19  ;;  %313 = vst.msk [vmem:[#allocation2 + $0x38] sm:$0xff] %vm190_vm0, %v304_v21 }
  0xa4   : > { %v291_v26 = vpop.xlane.xlu0 %290 }
  0xa5   : > { %311 = vst.msk [vmem:[#allocation2 + $0x28] sm:$0xff] %vm190_vm0, %v302_v24  ;;  %v303_v27 = vadd.f32 %v291_v26, %v230_v23  ;;  %v318_v23 = vld [vmem:[#allocation3 + $0x20] sm:$0xff] }
  0xa6   : > { %v281_v28 = vpop.xlane.xlu1 %280 }
  0xa7   : > { %v301_v29 = vadd.f32 %v281_v28, %v228_v25  ;;  %312 = vst.msk [vmem:[#allocation2 + $0x30] sm:$0xff] %vm190_vm0, %v303_v27 }
  0xa8   : > { %v276_v32 = vpop.xlane.xlu0 %275 }
  0xa9   : > { %310 = vst.msk [vmem:[#allocation2 + $0x20] sm:$0xff] %vm190_vm0, %v301_v29  ;;  %v300_v33 = vadd.f32 %v276_v32, %v227_v30  ;;  %v319_v29 = vld [vmem:[#allocation3 + $0x28] sm:$0xff] }
  0xaa   : > { %v271_v34 = vpop.xlane.xlu1 %270  ;;  %v551_v35 = vld [vmem:[#allocation2 + $0x38] sm:$0xff] }
  0xab   : > { %v299_v36 = vadd.f32 %v271_v34, %v226_v31  ;;  %v1248_v38 = vmul.f32 0.00390625, %v551_v35  ;;  %309 = vst.msk [vmem:[#allocation2 + $0x18] sm:$0xff] %vm190_vm0, %v300_v33  ;;  %v320_v33 = vld [vmem:[#allocation3 + $0x30] sm:$0xff] }
  0xac   : > { %v549_v39 = vld [vmem:[#allocation2 + $0x28] sm:$0xff]  ;;  %v266_v42 = vpop.xlane.xlu0 %265 }
  0xad   : > { %308 = vst.msk [vmem:[#allocation2 + $0x10] sm:$0xff] %vm190_vm0, %v299_v36  ;;  %v558_v41 = vmul.f32 0.00390625, %v549_v39  ;;  %962 = vmatprep.subr.msk.mxu0 %vm190_vm0, %v1248_v38  ;;  %990 = vmatprep.subr.msk.mxu1 %vm190_vm0, %v1248_v38  ;;  %v298_v43 = vadd.f32 %v266_v42, %v225_v37  ;;  %765 = vst.msk [vmem:[%s1246_s20 + $0x38] sm:$0xff] %vm190_vm0, %v1248_v38 }
  0xae   : > { %v261_v44 = vpop.xlane.xlu1 %260  ;;  %963 = vmatpush3.xpose.msk.msra.mxu0 %vm190_vm0, %v1248_v38  ;;  %998 = vmatpush3.xpose.msk.msra.mxu1 %vm190_vm0, %v1248_v38  ;;  %v550_v45 = vld [vmem:[#allocation2 + $0x30] sm:$0xff] }
  0xaf   : > { %v297_v46 = vadd.f32 %v261_v44, %v224_v40  ;;  %763 = vst.msk [vmem:[%s1246_s20 + $0x28] sm:$0xff] %vm190_vm0, %v558_v41  ;;  %v559_v47 = vmul.f32 0.00390625, %v550_v45  ;;  %307 = vst.msk [vmem:[#allocation2 + $0x8] sm:$0xff] %vm190_vm0, %v298_v43  ;;  %v723_v43 = vlaneseq }
  0xb0   : > { %v548_v48 = vld [vmem:[#allocation2 + $0x20] sm:$0xff] }
  0xb1   : > { %v557_v49 = vmul.f32 0.00390625, %v548_v48  ;;  %306 = vst.msk [vmem:[#allocation2] sm:$0xff] %vm190_vm0, %v297_v46  ;;  %964 = vmatprep.subr.msk.mxu0 %vm190_vm0, %v559_v47  ;;  %991 = vmatprep.subr.msk.mxu1 %vm190_vm0, %v559_v47  ;;  %764 = vst.msk [vmem:[%s1246_s20 + $0x30] sm:$0xff] %vm190_vm0, %v559_v47  ;;  %v724_v44 = vshrl.u32 %v723_v43, 7  ;;  %v1324_v46 = vand.u32 127, %v723_v43 }
  0xb2   : > { %965 = vmatpush3.xpose.msk.msra.mxu0 %vm190_vm0, %v559_v47  ;;  %999 = vmatpush3.xpose.msk.msra.mxu1 %vm190_vm0, %v559_v47  ;;  %v547_v50 = vld [vmem:[#allocation2 + $0x18] sm:$0xff] }
  0xb3   : > { %762 = vst.msk [vmem:[%s1246_s20 + $0x20] sm:$0xff] %vm190_vm0, %v557_v49  ;;  %966 = vmatprep.subr.msk.mxu0 %vm190_vm0, %v558_v41  ;;  %992 = vmatprep.subr.msk.mxu1 %vm190_vm0, %v558_v41  ;;  %v556_v51 = vmul.f32 0.00390625, %v547_v50  ;;  %v725_v45 = vadd.s32 8, %v724_v44  ;;  %v728_v48 = vadd.s32 32, %v724_v44  ;;  %vm734_vm5 = vcmp.eq.s32.totalorder %v724_v44, %v1324_v46 }
  0xb4   : > { %v546_v52 = vld [vmem:[#allocation2 + $0x10] sm:$0xff]  ;;  %984 = vmatprep.mubr.msk.f32.mxu1 %vm190_vm0, %v557_v49 }
  0xb5   : > { %v555_v53 = vmul.f32 0.00390625, %v546_v52  ;;  %761 = vst.msk [vmem:[%s1246_s20 + $0x18] sm:$0xff] %vm190_vm0, %v556_v51  ;;  %vm735_vm3 = vcmp.eq.s32.totalorder %v725_v45, %v1324_v46  ;;  %v727_v52 = vadd.s32 24, %v724_v44  ;;  %vm738_vm6 = vcmp.eq.s32.totalorder %v728_v48, %v1324_v46 }
  0xb6   : > { %967 = vmatpush3.xpose.msk.msra.mxu0 %vm190_vm0, %v558_v41  ;;  %1000 = vmatpush3.xpose.msk.msra.mxu1 %vm190_vm0, %v558_v41  ;;  %v545_v54 = vld [vmem:[#allocation2 + $0x8] sm:$0xff]  ;;  %v743_v50 = vsel %vm735_vm3, 1e-05, %v1072_v0 }
  0xb7   : > { %760 = vst.msk [vmem:[%s1246_s20 + $0x10] sm:$0xff] %vm190_vm0, %v555_v53  ;;  %968 = vmatprep.subr.msk.mxu0 %vm190_vm0, %v557_v49  ;;  %993 = vmatprep.subr.msk.mxu1 %vm190_vm0, %v557_v49  ;;  %v554_v55 = vmul.f32 0.00390625, %v545_v54  ;;  %vm737_vm7 = vcmp.eq.s32.totalorder %v727_v52, %v1324_v46 }
  0xb8   : > { %v544_v56 = vld [vmem:[#allocation2] sm:$0xff] }
  0xb9   : > { %v553_v57 = vmul.f32 0.00390625, %v544_v56  ;;  %759 = vst.msk [vmem:[%s1246_s20 + $0x8] sm:$0xff] %vm190_vm0, %v554_v55 }
  0xba   : > { %969 = vmatpush3.xpose.msk.msra.mxu0 %vm190_vm0, %v557_v49  ;;  %1001 = vmatpush3.xpose.msk.msra.mxu1 %vm190_vm0, %v557_v49 }
  0xbb   : > { %758 = vst.msk [vmem:[%s1246_s20] sm:$0xff] %vm190_vm0, %v553_v57  ;;  %970 = vmatprep.subr.msk.mxu0 %vm190_vm0, %v556_v51  ;;  %994 = vmatprep.subr.msk.mxu1 %vm190_vm0, %v556_v51 }
  0xbc   : > { %978 = vmatprep.mubr.msk.f32.mxu0 %vm190_vm0, %v553_v57 }
  0xbe   : > { %971 = vmatpush3.xpose.msk.msra.mxu0 %vm190_vm0, %v556_v51  ;;  %1002 = vmatpush3.xpose.msk.msra.mxu1 %vm190_vm0, %v556_v51 }
  0xbf   : > { %972 = vmatprep.subr.msk.mxu0 %vm190_vm0, %v555_v53  ;;  %995 = vmatprep.subr.msk.mxu1 %vm190_vm0, %v555_v53 }
  0xc2   : > { %973 = vmatpush3.xpose.msk.msra.mxu0 %vm190_vm0, %v555_v53  ;;  %1003 = vmatpush3.xpose.msk.msra.mxu1 %vm190_vm0, %v555_v53 }
  0xc3   : > { %974 = vmatprep.subr.msk.mxu0 %vm190_vm0, %v554_v55  ;;  %996 = vmatprep.subr.msk.mxu1 %vm190_vm0, %v554_v55 }
  0xc6   : > { %975 = vmatpush3.xpose.msk.msra.mxu0 %vm190_vm0, %v554_v55  ;;  %1004 = vmatpush3.xpose.msk.msra.mxu1 %vm190_vm0, %v554_v55 }
  0xc7   : > { %976 = vmatprep.subr.msk.mxu0 %vm190_vm0, %v553_v57  ;;  %997 = vmatprep.subr.msk.mxu1 %vm190_vm0, %v553_v57 }
  0xca   : > { %977 = vmatpush3.xpose.msk.msra.mxu0 %vm190_vm0, %v553_v57  ;;  %1005 = vmatpush3.xpose.msk.msra.mxu1 %vm190_vm0, %v553_v57 }
  0xcd   : > { %979 = vmatmul.mubr.msk.f32.vlgmr.msra.gmra.mxu0 %vm190_vm0, %v554_v55  ;;  %985 = vmatmul.mubr.msk.f32.vlgmr.msra.gmra.mxu1 %vm190_vm0, %v558_v41 }
  0xce   : > { %981 = vmatprep.mubr.msk.f32.mxu0 %vm190_vm0, %v555_v53  ;;  %987 = vmatprep.mubr.msk.f32.mxu1 %vm190_vm0, %v559_v47  ;;  %v729_v47 = vadd.s32 40, %v724_v44  ;;  %v731_v53 = vadd.s32 56, %v724_v44 }
  0xd0   : > { %vm739_vm4 = vcmp.eq.s32.totalorder %v729_v47, %v1324_v46  ;;  %vm741_vm8 = vcmp.eq.s32.totalorder %v731_v53, %v1324_v46 }
  0xd1   : > { %982 = vmatmul.mubr.msk.f32.gmra.mxu0 %vm190_vm0, %v556_v51  ;;  %988 = vmatmul.mubr.msk.f32.gmra.mxu1 %vm190_vm0, %v1248_v38  ;;  %v321_v38 = vld [vmem:[#allocation3 + $0x38] sm:$0xff] }
  0xfe   : > { %v428_v58 = vpop.f32.mrf.mxu0 }
 0x100   : > { %v430_v59 = vpop.f32.mrf.mxu0  ;;  %v956_v60 = vpop.f32.mrf.mxu1 }
 0x102   : > { %v431_v61 = vpop.f32.mrf.mxu0  ;;  %v493_v63 = vpop.f32.mrf.mxu1 }
 0x103   : > { %v494_v4 = vadd.f32 %v493_v63, %v428_v58  ;;  %v747_v58 = vsel %vm739_vm4, 1e-05, %v1072_v0 }
 0x104   : > { %v433_v5 = vpop.f32.mrf.mxu0  ;;  %v957_v6 = vpop.f32.mrf.mxu1 }
 0x105   : > { %v524_v8 = vadd.f32 %v494_v4, %v314_v62  ;;  %v730_v62 = vadd.s32 48, %v724_v44 }
 0x106   : > { %v436_v12 = vpop.f32.mrf.mxu0  ;;  %v496_v14 = vpop.f32.mrf.mxu1 }
 0x107   : > { %533 = vst.msk [vmem:[#allocation3] sm:$0xff] %vm199_vm2, %v524_v8  ;;  %v502_v1 = vadd.f32 %v956_v60, %v436_v12  ;;  %v497_v2 = vadd.f32 %v496_v14, %v431_v61  ;;  %v726_v61 = vadd.s32 16, %v724_v44  ;;  %vm740_vm10 = vcmp.eq.s32.totalorder %v730_v62, %v1324_v46 }
 0x108   : > { %v438_v3 = vpop.f32.mrf.mxu0  ;;  %v960_v7 = vpop.f32.mrf.mxu1 }
 0x109   : > { %v526_v10 = vadd.f32 %v502_v1, %v316_v11  ;;  %v525_v15 = vadd.f32 %v497_v2, %v315_v13  ;;  %v742_v11 = vsel %vm734_vm5, 1e-05, %v1072_v0  ;;  %v746_v13 = vsel %vm738_vm6, 1e-05, %v1072_v0 }
 0x10a   : > { %v439_v9 = vpop.f32.mrf.mxu0  ;;  %v509_v16 = vpop.f32.mrf.mxu1  ;;  %vm736_vm9 = vcmp.eq.s32.totalorder %v726_v61, %v1324_v46 }
 0x10b   : > { %535 = vst.msk [vmem:[#allocation3 + $0x10] sm:$0xff] %vm199_vm2, %v526_v10  ;;  %534 = vst.msk [vmem:[#allocation3 + $0x8] sm:$0xff] %vm199_vm2, %v525_v15  ;;  %v505_v18 = vadd.f32 %v957_v6, %v439_v9 }
 0x10c   : > { %v441_v19 = vpop.f32.mrf.mxu0  ;;  %v961_v20 = vpop.f32.mrf.mxu1 }
 0x10d   : > { %v527_v21 = vadd.f32 %v505_v18, %v317_v17 }
 0x10e   : > { %v444_v22 = vpop.f32.mrf.mxu0  ;;  %v512_v26 = vpop.f32.mrf.mxu1  ;;  %v690_v8 = vld [vmem:[#allocation3] sm:$0xff] }
 0x10f   : > { %536 = vst.msk [vmem:[#allocation3 + $0x18] sm:$0xff] %vm199_vm2, %v527_v21  ;;  %v510_v24 = vadd.f32 %v509_v16, %v444_v22 }
 0x110   : > { %v446_v25 = vpop.f32.mrf.mxu0 }
 0x111   : > { %v528_v27 = vadd.f32 %v510_v24, %v318_v23 }
 0x112   : > { %v447_v28 = vpop.f32.mrf.mxu0  ;;  %v691_v56 = vld [vmem:[#allocation3 + $0x8] sm:$0xff] }
 0x113   : > { %537 = vst.msk [vmem:[#allocation3 + $0x20] sm:$0xff] %vm199_vm2, %v528_v27  ;;  %v513_v30 = vadd.f32 %v512_v26, %v447_v28 }
 0x114   : > { %v449_v31 = vpop.f32.mrf.mxu0 }
 0x115   : > { %v529_v32 = vadd.f32 %v513_v30, %v319_v29  ;;  %v745_v30 = vsel %vm737_vm7, 1e-05, %v1072_v0  ;;  %v749_v31 = vsel %vm741_vm8, 1e-05, %v1072_v0 }
 0x116   : > { %v452_v34 = vpop.f32.mrf.mxu0  ;;  %v693_v22 = vld [vmem:[#allocation3 + $0x18] sm:$0xff] }
 0x117   : > { %538 = vst.msk [vmem:[#allocation3 + $0x28] sm:$0xff] %vm199_vm2, %v529_v32  ;;  %v518_v35 = vadd.f32 %v960_v7, %v452_v34  ;;  %v692_v32 = vld [vmem:[#allocation3 + $0x10] sm:$0xff] }
 0x118   : > { %v454_v36 = vpop.f32.mrf.mxu0 }
 0x119   : > { %v530_v37 = vadd.f32 %v518_v35, %v320_v33 }
 0x11a   : > { %v455_v39 = vpop.f32.mrf.mxu0  ;;  %v694_v12 = vld [vmem:[#allocation3 + $0x20] sm:$0xff] }
 0x11b   : > { %539 = vst.msk [vmem:[#allocation3 + $0x30] sm:$0xff] %vm199_vm2, %v530_v37  ;;  %v521_v40 = vadd.f32 %v961_v20, %v455_v39  ;;  %v748_v39 = vsel %vm740_vm10, 1e-05, %v1072_v0 }
 0x11c   : > { %v457_v41 = vpop.f32.mrf.mxu0 }
 0x11d   : > { %v531_v42 = vadd.f32 %v521_v40, %v321_v38  ;;  %v744_v38 = vsel %vm736_vm9, 1e-05, %v1072_v0 }
 0x11e   : > { %v695_v57 = vld [vmem:[#allocation3 + $0x28] sm:$0xff] }
 0x11f   : > { %540 = vst.msk [vmem:[#allocation3 + $0x38] sm:$0xff] %vm199_vm2, %v531_v42 }
 0x122   : > { %v696_v33 = vld [vmem:[#allocation3 + $0x30] sm:$0xff] }
 0x126   : > { %v697_v23 = vld [vmem:[#allocation3 + $0x38] sm:$0xff] }
 0x18d   : > { %v980_v49 = vpop.f32.mrf.mxu0  ;;  %v986_v51 = vpop.f32.mrf.mxu1 }
 0x18e   : > { %v699_v54 = vmul.f32 256.0, %v980_v49  ;;  %v703_v55 = vmul.f32 256.0, %v986_v51 }
 0x18f   : > { %v651_v59 = vpop.f32.mrf.mxu0  ;;  %v671_v60 = vpop.f32.mrf.mxu1 }
 0x190   : > { %v707_v63 = vsub.f32 %v691_v56, %v699_v54  ;;  %v711_v4 = vsub.f32 %v695_v57, %v703_v55  ;;  %v698_v5 = vmul.f32 256.0, %v651_v59  ;;  %v702_v6 = vmul.f32 256.0, %v671_v60 }
 0x191   : > { %v983_v14 = vpop.f32.mrf.mxu0  ;;  %v989_v1 = vpop.f32.mrf.mxu1 }
 0x192   : > { %v716_v2 = vmul.f32 0.003921569, %v707_v63  ;;  %v720_v3 = vmul.f32 0.003921569, %v711_v4  ;;  %v706_v7 = vsub.f32 %v690_v8, %v698_v5  ;;  %v710_v10 = vsub.f32 %v694_v12, %v702_v6 }
 0x193   : > { %v701_v15 = vmul.f32 256.0, %v983_v14  ;;  %v705_v17 = vmul.f32 256.0, %v989_v1  ;;  %v661_v9 = vpop.f32.mrf.mxu0  ;;  %v681_v16 = vpop.f32.mrf.mxu1 }
 0x194   : > { %v751_v18 = vadd.f32 %v743_v50, %v716_v2  ;;  %v755_v19 = vadd.f32 %v747_v58, %v720_v3  ;;  %v715_v20 = vmul.f32 0.003921569, %v706_v7  ;;  %v719_v21 = vmul.f32 0.003921569, %v710_v10 }
 0x195   : > { %v709_v24 = vsub.f32 %v693_v22, %v701_v15  ;;  %v713_v25 = vsub.f32 %v697_v23, %v705_v17  ;;  %v700_v26 = vmul.f32 256.0, %v661_v9  ;;  %v704_v27 = vmul.f32 256.0, %v681_v16 }
 0x196   : > { %767 = vst.msk [vmem:[%s1341_s23 + $0x8] sm:$0xff] %vm199_vm2, %v751_v18  ;;  %771 = vst.msk [vmem:[%s1341_s23 + $0x28] sm:$0xff] %vm199_vm2, %v755_v19  ;;  %v750_v28 = vadd.f32 %v742_v11, %v715_v20  ;;  %v754_v29 = vadd.f32 %v746_v13, %v719_v21 }
 0x197   : > { %v718_v34 = vmul.f32 0.003921569, %v709_v24  ;;  %v722_v35 = vmul.f32 0.003921569, %v713_v25  ;;  %v708_v36 = vsub.f32 %v692_v32, %v700_v26  ;;  %v712_v37 = vsub.f32 %v696_v33, %v704_v27 }
 0x198   : > { %766 = vst.msk [vmem:[%s1341_s23] sm:$0xff] %vm199_vm2, %v750_v28  ;;  %770 = vst.msk [vmem:[%s1341_s23 + $0x20] sm:$0xff] %vm199_vm2, %v754_v29 }
 0x199   : > { %v753_v40 = vadd.f32 %v745_v30, %v718_v34  ;;  %v757_v41 = vadd.f32 %v749_v31, %v722_v35  ;;  %v717_v42 = vmul.f32 0.003921569, %v708_v36  ;;  %v721_v43 = vmul.f32 0.003921569, %v712_v37 }
 0x19b   : > { %769 = vst.msk [vmem:[%s1341_s23 + $0x18] sm:$0xff] %vm199_vm2, %v753_v40  ;;  %773 = vst.msk [vmem:[%s1341_s23 + $0x38] sm:$0xff] %vm199_vm2, %v757_v41  ;;  %v752_v44 = vadd.f32 %v744_v38, %v717_v42  ;;  %v756_v45 = vadd.f32 %v748_v39, %v721_v43 }
 0x19d   : > { %768 = vst.msk [vmem:[%s1341_s23 + $0x10] sm:$0xff] %vm199_vm2, %v752_v44  ;;  %772 = vst.msk [vmem:[%s1341_s23 + $0x30] sm:$0xff] %vm199_vm2, %v756_v45 }
 0x19e PF: > { %s13_s11 = sadd.s32 1, %s1070_s11   ;;  %s1385_s9 = smov %s1066_s10 }
 0x19f   : > { %p10_p5 = scmp.ge.s32.totalorder %s13_s11, 6   ;;  %s1386_s10 = smov %s1388_s12 }
 0x1a1   :  { %12 = sbr.rel (!%p10_p5) target bundleno = 2 (0x2), region = 74 }

// kernel: single_level_ae_ost_forward.4
= control target key start
LH: loop header
LB: loop body
LE: loop exit
PB: predicated region body
PF: predicated region fallthrough
CT: control target
= control target key end

     0   :  { %s1160_s15 = smov 0   ;;  %s1162_s16 = smov 0   ;;  %s1497_s0 = inlined_call_operand.vmem [shape: bf16[4,1,3,326], index: 0, kind: input, shape index: {}]   ;;  %s1498_s1 = inlined_call_operand.vmem [shape: bf16[1,64,27], index: 1, kind: input, shape index: {}]   ;;  %s1499_s2 = inlined_call_operand.vmem [shape: f32[64,1], index: 2, kind: input, shape index: {}]   ;;  %s1500_s3 = inlined_call_operand.vmem [shape: f32[1,288], index: 3, kind: input, shape index: {}]   ;;  %s1501_s4 = inlined_call_operand.vmem [shape: bf16[4,64,288], index: 4, kind: output, shape index: {}]  }
   0x1   :  { %s1164_s17 = smov 0  }
   0x2 LB: > { %s26_s18 = sadd.s32 1, %s1118_s16  ;;  %p979_p0 = scmp.ge.s32.totalorder %s1122_s17, 1  ;;  %s1122_s17 = sphi %s1164_s17, %s14_s17   ;;  %s1118_s16 = sphi %s1162_s16, %s1511_s16   ;;  %s1114_s15 = sphi %s1160_s15, %s1510_s15  }
   0x3   : > { %p28_p1 = scmp.ge.s32.totalorder %s26_s18, 4  ;;  %p182_p2 = scmp.lt.s32.totalorder %s1122_s17, 5 }
   0x5   : > { %s1513_s18 = smov (%p28_p1, %s26_s18), 0  ;;  %p183_p3 = pnand %p979_p0, %p182_p2 }
   0x6   : > { %p216_p4 = scmp.lt.s32.totalorder (!%p183_p3), %s1114_s15, 3  ;;  %s1125_s23 = smov (!%p183_p3), 90  }
   0x7   : > { %186 = sbr.rel (%p183_p3) target bundleno = 423 (0x1a7), region = 36  ;;  %s1126_s24 = smov (!%p183_p3), 92  }
   0x8   : > { %s1127_s25 = smov (!%p183_p3), 108   ;;  %s1128_s26 = smov (!%p183_p3), 91  }
   0x9   : > { %s1129_s27 = smov (!%p183_p3), 127   ;;  %s1130_s28 = smov (!%p183_p3), 126  }
   0xa   : > { %s1131_s29 = smov (!%p183_p3), 110   ;;  %s1132_s30 = smov (!%p183_p3), 109  }
   0xc   : > { %v242_v0 = vlaneseq  ;;  %v1124_v1 = vmov 1983009808   ;;  %s1515_s15 = smov (!%p216_p4, %s1114_s15), 3  ;;  %v1133_v61 = vmov 0   ;;  %v496_v63 = vld [vmem:[%s1499_s2 + $0x8] sm:$0xff]  ;;  %vm380_vm0 = vcmask 752640  }
   0xd   : > { %v240_v2 = vunpack.c.l.s4 %v1124_v1  ;;  %s1050_s19 = smul.u32 6, %s1515_s15  ;;  %617 = vmatprep.mubr.bf16.mxu0 %v1133_v61  ;;  %647 = vmatprep.mubr.bf16.mxu1 %v1133_v61  ;;  %v497_v1 = vld [vmem:[%s1499_s2 + $0x10] sm:$0xff]  ;;  %vm363_vm1 = vcmask 883712   ;;  %vm458_vm2 = vcmask 1040384   ;;  %vm398_vm3 = vcmask 744448  }
   0xe   : > { %v1180_v3 = vshrl.u32 %v242_v0, 7  ;;  %1093 = vset.pattern.permute.xlu1 %v1133_v61  ;;  %1092 = vset.pattern.permute.xlu0 %v1133_v61  ;;  %v495_v0 = vld [vmem:[%s1499_s2] sm:$0xff]  ;;  %vm420_vm4 = vcmask 1042432   ;;  %vm472_vm5 = vsmask.f32 2304  ;;  %vm433_vm6 = vcmask 1044480  }
   0xf   : > { %v241_v4 = vunpack.c.0.s8 %v240_v2  ;;  %s224_s22 = scalar_lea.vmem %s1497_s0, %s1050_s19  ;;  %v498_v2 = vld [vmem:[%s1499_s2 + $0x18] sm:$0xff]  ;;  %vm411_vm7 = vcmask 736256   ;;  %vm439_vm8 = vcmask 1045504   ;;  %vm1301_vm9 = vmand %vm420_vm4, %vm472_vm5  ;;  %vm477_vm10 = vcmask 1043456   ;;  %s1051_s9 = smul.u32 96, %s1515_s15 }
  0x10   : > { %v1189_v6 = vld [vmem:[%s224_s22] sm:$0x3f]  ;;  %vm414_vm11 = vcmask 1041408   ;;  %vm415_vm12 = vsmask.f32 1280  ;;  %vm287_vm13 = vcmask 1039360  }
  0x11   : > { %v1184_v5 = vsub.s32 %v241_v4, %v1180_v3  ;;  %v238_v8 = vcombine.high %v1189_v6, %v1189_v6  ;;  %v326_v51 = vcombine.low %v1189_v6, %v1189_v6  ;;  %v499_v4 = vld [vmem:[%s1499_s2 + $0x20] sm:$0xff]  ;;  %vm302_vm14 = vcmask 1031168   ;;  %vm1319_vm15 = vmand %vm414_vm11, %vm415_vm12  ;;  %s1428_s11 = scalar_lea.vmem %s1501_s4, %s1051_s9 }
  0x12   : > { %vm342_vm5 = vcmask 891904   ;;  %vm453_vm11 = vsmask.f32 7424 }
  0x13   : > { %v1193_v7 = vrot.slane %v1189_v6, %v1184_v5  ;;  %v1211_v13 = vrot.slane %v238_v8, %v1184_v5  ;;  %v333_v55 = vrot.slane %v326_v51, %v1184_v5  ;;  %v500_v5 = vld [vmem:[%s1499_s2 + $0x28] sm:$0xff]  ;;  %v501_v6 = vld [vmem:[%s1499_s2 + $0x30] sm:$0xff]  ;;  %v502_v8 = vld [vmem:[%s1499_s2 + $0x38] sm:$0xff] }
  0x15   : > { %407 = vrot.lane.b32.xlu1 %v1193_v7, %s1125_s23  ;;  %v371_v9 = vrot.slane %v1193_v7, 7  ;;  %v1201_v10 = vshrl.u32 %v1193_v7, 16  ;;  %v1204_v11 = vshll.u32 %v1193_v7, 16  ;;  %v1208_v12 = vcombine.high %v1193_v7, %v1193_v7 }
  0x16   : > { %v274_v20 = vshrl.u32 %v1211_v13, 16  ;;  %v1225_v21 = vshll.u32 %v1211_v13, 16  ;;  %v373_v25 = vrot.slane %v1211_v13, 7  ;;  %v335_v34 = vcombine.low %v1193_v7, %v1193_v7 }
  0x17   : > { %v345_v14 = vrot.slane %v1204_v11, 1  ;;  %v383_v15 = vrot.slane %v1201_v10, 5  ;;  %v384_v16 = vrot.slane %v1204_v11, 6  ;;  %v1217_v17 = vshll.u32 %v1208_v12, 16 }
  0x18   : > { %v372_v19 = vrot.slane %v1208_v12, 7  ;;  %v266_v23 = vshrl.u32 %v1208_v12, 16  ;;  %v389_v26 = vrot.slane %v274_v20, 5  ;;  %v390_v27 = vrot.slane %v1225_v21, 6 }
  0x19   : > { %374 = vrot.lane.b32.xlu1 %v371_v9, %s1126_s24  ;;  %v348_v18 = vor.u32 %v345_v14, %v1201_v10  ;;  %v385_v22 = vor.u32 %v384_v16, %v383_v15  ;;  %v346_v24 = vrot.slane %v1217_v17, 1  ;;  %v347_v29 = vrot.slane %v1225_v21, 1 }
  0x1a   : > { %v391_v30 = vor.u32 %v390_v27, %v389_v26  ;;  %v386_v32 = vrot.slane %v266_v23, 5  ;;  %v387_v33 = vrot.slane %v1217_v17, 6  ;;  %v276_v35 = vrot.slane %v274_v20, 6  ;;  %v1096_v27 = vld [vmem:[%s1498_s1] sm:$0xff]  }
  0x1b   : > { %357 = vrot.lane.b32.xlu0 %v348_v18, %s1127_s25  ;;  %v349_v28 = vor.u32 %v346_v24, %v266_v23  ;;  %v350_v31 = vor.u32 %v347_v29, %v274_v20  ;;  %v279_v36 = vrot.slane %v1225_v21, 7  ;;  %v404_v39 = vcombine.low %v1211_v13, %v1211_v13 }
  0x1c   : > { %v388_v37 = vor.u32 %v387_v33, %v386_v32  ;;  %v268_v40 = vrot.slane %v266_v23, 6  ;;  %v271_v41 = vrot.slane %v1217_v17, 7  ;;  %v294_v42 = vrot.slane %v1208_v12, 5 }
  0x1d   : > { %376 = vrot.lane.b32.xlu1 %v372_v19, %s1126_s24  ;;  %v280_v38 = vor.u32 %v279_v36, %v276_v35  ;;  %v260_v44 = vrot.slane %v1201_v10, 6  ;;  %v263_v45 = vrot.slane %v1204_v11, 7  ;;  %v293_v46 = vrot.slane %v1193_v7, 5 }
  0x1e   : > { %v272_v43 = vor.u32 %v271_v41, %v268_v40  ;;  %v311_v47 = vrot.slane %v274_v20, 3  ;;  %v312_v48 = vrot.slane %v1225_v21, 4  ;;  %v295_v52 = vrot.slane %v1211_v13, 5 }
  0x1f   : > { %392 = vrot.lane.b32.xlu0 %v385_v22, %s1128_s26  ;;  %v264_v49 = vor.u32 %v263_v45, %v260_v44  ;;  %v308_v53 = vrot.slane %v266_v23, 3  ;;  %v309_v54 = vrot.slane %v1217_v17, 4  ;;  %v305_v57 = vrot.slane %v1201_v10, 3 }
  0x20   : > { %v313_v50 = vor.u32 %v312_v48, %v311_v47  ;;  %v306_v58 = vrot.slane %v1204_v11, 4  ;;  %v334_v59 = vcombine.low %v333_v55, %v333_v55  ;;  %v1087_v62 = vpack.i.bf16 %v347_v29, %v346_v24 }
  0x21   : > { %378 = vrot.lane.b32.xlu1 %v373_v25, %s1126_s24  ;;  %v310_v56 = vor.u32 %v309_v54, %v308_v53 }
  0x22   : > { %v307_v60 = vor.u32 %v306_v58, %v305_v57 }
  0x23   : > { %359 = vrot.lane.b32.xlu0 %v349_v28, %s1127_s25 }
  0x25   : > { %396 = vrot.lane.b32.xlu1 %v391_v30, %s1128_s26 }
  0x27   : > { %361 = vrot.lane.b32.xlu0 %v350_v31, %s1127_s25  ;;  %v1134_v31 = vmov 65535  }
  0x28   : > { %v577_v32 = vsel %vm433_vm6, 4294967295, %v1134_v31  ;;  %v1098_v31 = vld [vmem:[%s1498_s1 + $0x8] sm:$0xff]  }
  0x29   : > { %405 = vrot.lane.b32.xlu1 %v335_v34, %s1125_s23 }
  0x2b   : > { %394 = vrot.lane.b32.xlu0 %v388_v37, %s1128_s26 }
  0x2d   : > { %285 = vrot.lane.b32.xlu1 %v280_v38, %s1129_s27  ;;  %v578_v38 = vsel %vm439_vm8, %v577_v32, 0  ;;  %v1099_v32 = vld [vmem:[%s1498_s1 + $0x10] sm:$0xff]  }
  0x2f   : > { %409 = vrot.lane.b32.xlu0 %v404_v39, %s1125_s23 }
  0x31   : > { %298 = vrot.lane.b32.xlu1 %v294_v42, %s1130_s28 }
  0x33   : > { %283 = vrot.lane.b32.xlu0 %v272_v43, %s1129_s27 }
  0x35   : > { %296 = vrot.lane.b32.xlu1 %v293_v46, %s1130_s28 }
  0x37   : > { %281 = vrot.lane.b32.xlu0 %v264_v49, %s1129_s27 }
  0x39   : > { %318 = vrot.lane.b32.xlu1 %v313_v50, %s1131_s29 }
  0x3b   : > { %300 = vrot.lane.b32.xlu0 %v295_v52, %s1130_s28 }
  0x3d   : > { %338 = vrot.lane.b32.xlu1 %v333_v55, %s1132_s30 }
  0x3f   : > { %316 = vrot.lane.b32.xlu0 %v310_v56, %s1131_s29 }
  0x41   : > { %336 = vrot.lane.b32.xlu1 %v334_v59, %s1132_s30 }
  0x43   : > { %314 = vrot.lane.b32.xlu0 %v307_v60, %s1131_s29 }
  0x45   : > { %351 = vrot.lane.b32.xlu1 %v345_v14, %s1127_s25 }
  0x47   : > { %340 = vrot.lane.b32.xlu0 %v335_v34, %s1132_s30 }
  0x49   : > { %510 = vperm.xlu1 %1093, %v496_v63  }
  0x4b   : > { %1088 = vrot.lane.b32.xlu0 %v1087_v62, %s1127_s25 }
  0x4d   : > { %515 = vperm.xlu1 %1093, %v497_v1  }
  0x4f   : > { %505 = vperm.xlu0 %1092, %v495_v0  }
  0x51   : > { %525 = vperm.xlu1 %1093, %v499_v4  }
  0x53   : > { %520 = vperm.xlu0 %1092, %v498_v2  }
  0x55   : > { %535 = vperm.xlu1 %1093, %v501_v6  }
  0x57   : > { %530 = vperm.xlu0 %1092, %v500_v5  }
  0x5b   : > { %540 = vperm.xlu0 %1092, %v502_v8  }
  0x87   : > { %v408_v9 = vpop.permute.xlu1 %407 }
  0x8b   : > { %v375_v10 = vpop.permute.xlu1 %374 }
  0x8d   : > { %v358_v11 = vpop.permute.xlu0 %357 }
  0x8f   : > { %v377_v14 = vpop.permute.xlu1 %376 }
  0x90   : > { %v381_v20 = vsel %vm380_vm0, %v375_v10, %v377_v14 }
  0x91   : > { %v393_v15 = vpop.permute.xlu0 %392 }
  0x93   : > { %v1292_v16 = vpop.permute.xlu1 %378 }
  0x94   : > { %v382_v24 = vsel %vm380_vm0, %v377_v14, %v1292_v16  ;;  %vm434_vm0 = vsmask.f32 4352 }
  0x95   : > { %v360_v17 = vpop.permute.xlu0 %359  ;;  %vm1331_vm12 = vmand %vm433_vm6, %vm434_vm0 }
  0x96   : > { %v366_v21 = vsel %vm363_vm1, %v358_v11, %v360_v17 }
  0x97   : > { %v1294_v18 = vpop.permute.xlu1 %396  ;;  %v461_v25 = vsel %vm458_vm2, %v366_v21, %v381_v20 }
  0x99   : > { %v362_v19 = vpop.permute.xlu0 %361 }
  0x9a   : > { %v367_v26 = vsel %vm363_vm1, %v360_v17, %v362_v19  ;;  %v469_v62 = vsel %vm458_vm2, %v362_v19, %v1292_v16 }
  0x9b   : > { %v406_v22 = vpop.permute.xlu1 %405  ;;  %v465_v34 = vsel %vm458_vm2, %v367_v26, %v382_v24  ;;  %v476_v10 = vsel %vm1301_vm9, %v469_v62, %v1294_v18 }
  0x9c   : > { %v412_v35 = vsel %vm411_vm7, %v406_v22, %v408_v9 }
  0x9d   : > { %v395_v23 = vpop.permute.xlu0 %394 }
  0x9e   : > { %v399_v28 = vsel %vm398_vm3, %v393_v15, %v395_v23  ;;  %v400_v29 = vsel %vm398_vm3, %v395_v23, %v1294_v18  ;;  %vm320_vm3 = vcmask 900096  }
  0x9f   : > { %v474_v30 = vsel %vm1301_vm9, %v461_v25, %v399_v28  ;;  %v1309_v33 = vpop.permute.xlu1 %285  ;;  %v475_v37 = vsel %vm1301_vm9, %v465_v34, %v400_v29  ;;  %v1097_v28 = vld [vmem:[%s1498_s1 + $0x18] sm:$0xff]  }
  0xa0   : > { %v480_v40 = vsel %vm477_vm10, %v474_v30, %v412_v35  ;;  %v419_v22 = vsel %vm1319_vm15, %v1211_v13, %v1309_v33 }
  0xa1   : > { %v410_v36 = vpop.permute.xlu0 %409  ;;  %v579_v45 = vand.u32 %v578_v38, %v480_v40 }
  0xa2   : > { %v413_v39 = vsel %vm411_vm7, %v408_v9, %v410_v36  ;;  %vm452_vm7 = vcmask 1047552  }
  0xa3   : > { %v483_v41 = vsel %vm477_vm10, %v475_v37, %v413_v39  ;;  %v299_v42 = vpop.permute.xlu1 %298  ;;  %vm1345_vm2 = vmand %vm452_vm7, %vm453_vm11  ;;  %v751_v39 = vsub.s32 0, %v1180_v3 }
  0xa4   : > { %v581_v43 = vand.u32 %v578_v38, %v483_v41  ;;  %v747_v41 = vld [vmem:[%s1500_s3] sm:$0x7] }
  0xa5   : > { %v284_v44 = vpop.permute.xlu0 %283 }
  0xa6   : > { %597 = vmatprep.subr.bf16.mxu0 %v581_v43  ;;  %1046 = vmatprep.subr.bf16.mxu1 %v581_v43  ;;  %v289_v59 = vsel %vm287_vm13, %v284_v44, %v1309_v33 }
  0xa7   : > { %598 = vmatpush1.bf16.msra.mxu0 %v579_v45  ;;  %1048 = vmatpush1.bf16.msra.mxu1 %v579_v45  ;;  %v297_v46 = vpop.permute.xlu1 %296  ;;  %v418_v2 = vsel %vm1319_vm15, %v1208_v12, %v289_v59  ;;  %v486_v12 = vsel %vm477_vm10, %v476_v10, %v410_v36 }
  0xa8   : > { %v303_v56 = vsel %vm302_vm14, %v297_v46, %v299_v42  ;;  %v583_v25 = vand.u32 %v578_v38, %v486_v12  ;;  %v1408_v46 = vrot.slane %v747_v41, %v751_v39 }
  0xa9   : > { %v282_v47 = vpop.permute.xlu0 %281 }
  0xaa   : > { %v288_v53 = vsel %vm287_vm13, %v282_v47, %v284_v44 }
  0xab   : > { %v319_v49 = vpop.permute.xlu1 %318  ;;  %v417_v55 = vsel %vm1319_vm15, %v1193_v7, %v288_v53 }
  0xac   : > { %v423_v0 = vsel %vm420_vm4, %v417_v55, %v303_v56 }
  0xad   : > { %v301_v48 = vpop.permute.xlu0 %300 }
  0xae   : > { %v304_v63 = vsel %vm302_vm14, %v299_v42, %v301_v48  ;;  %v431_v26 = vsel %vm420_vm4, %v419_v22, %v301_v48 }
  0xaf   : > { %v339_v51 = vpop.permute.xlu1 %338  ;;  %v427_v11 = vsel %vm420_vm4, %v418_v2, %v304_v63  ;;  %v438_v13 = vsel %vm1331_vm12, %v431_v26, %v319_v49  ;;  %vm869_vm4 = vcmask 257024  }
  0xb1   : > { %v317_v50 = vpop.permute.xlu0 %316 }
  0xb2   : > { %v322_v1 = vsel %vm320_vm3, %v317_v50, %v319_v49 }
  0xb3   : > { %v337_v57 = vpop.permute.xlu1 %336  ;;  %v437_v17 = vsel %vm1331_vm12, %v427_v11, %v322_v1 }
  0xb4   : > { %v343_v5 = vsel %vm342_vm5, %v337_v57, %v339_v51  ;;  %v759_v57 = vsub.s32 2, %v1180_v3 }
  0xb5   : > { %v315_v52 = vpop.permute.xlu0 %314 }
  0xb6   : > { %v321_v60 = vsel %vm320_vm3, %v315_v52, %v317_v50  ;;  %v1430_v11 = vrot.slane %v747_v41, %v759_v57 }
  0xb7   : > { %v436_v4 = vsel %vm1331_vm12, %v423_v0, %v321_v60  ;;  %v352_v9 = vpop.permute.xlu1 %351 }
  0xb8   : > { %v442_v21 = vsel %vm439_vm8, %v436_v4, %v343_v5 }
  0xb9   : > { %v341_v58 = vpop.permute.xlu0 %340 }
  0xba   : > { %v344_v6 = vsel %vm342_vm5, %v339_v51, %v341_v58  ;;  %v450_v29 = vsel %vm439_vm8, %v438_v13, %v341_v58 }
  0xbb   : > { %v446_v18 = vsel %vm439_vm8, %v437_v17, %v344_v6 }
  0xbd   : > { %v1089_v8 = vpop.permute.xlu0 %1088 }
  0xbe   : > { %v1091_v14 = vunpack.i.h.bf16 %v1089_v8  ;;  %v1090_v15 = vunpack.i.l.bf16 %v1089_v8 }
  0xc0   : > { %v364_v19 = vsel %vm363_vm1, %v352_v9, %v1090_v15  ;;  %v365_v20 = vsel %vm363_vm1, %v1090_v15, %v1091_v14  ;;  %vm563_vm1 = vcmask 220160   ;;  %v457_v30 = vsel %vm1345_vm2, %v450_v29, %v1091_v14 }
  0xc1   : > { %v456_v23 = vsel %vm1345_vm2, %v446_v18, %v365_v20  ;;  %v455_v24 = vsel %vm1345_vm2, %v442_v21, %v364_v19 }
  0xc2   : > { %599 = vmatprep.subr.bf16.mxu0 %v456_v23  ;;  %1047 = vmatprep.subr.bf16.mxu1 %v456_v23 }
  0xc3   : > { %600 = vmatpush1.bf16.msra.mxu0 %v455_v24  ;;  %1049 = vmatpush1.bf16.msra.mxu1 %v455_v24 }
  0xc4   : > { %1034 = vmatprep.subr.bf16.mxu1 %v583_v25  ;;  %v1392_v33 = vpop.permute.xlu1 %510 }
  0xc6   : > { %986 = vmatmul.mubr.msk.bf16.vlgmr.msra.gmra.mxu0 %vm563_vm1, %v1096_v27  ;;  %989 = vmatmul.mubr.msk.bf16.vlgmr.msra.gmra.mxu1 %vm563_vm1, %v1097_v28 }
  0xc7   : > { %1035 = vmatpush3.bf16.msra.mxu1 %v583_v25  ;;  %627 = vmatprep.mubr.bf16.mxu0 %v1133_v61 }
  0xc8   : > { %1036 = vmatprep.subr.bf16.mxu1 %v457_v30  ;;  %1038 = vmatprep.mubr.msk.bf16.mxu1 %vm563_vm1, %v1096_v27  ;;  %v516_v35 = vpop.permute.xlu1 %515 }
  0xca   : > { %v506_v34 = vpop.permute.xlu0 %505 }
  0xcb   : > { %1037 = vmatpush3.bf16.msra.mxu1 %v457_v30 }
  0xcc   : > { %v1396_v37 = vpop.permute.xlu1 %525 }
  0xce   : > { %987 = vmatmul.mubr.msk.bf16.gmra.mxu0 %vm563_vm1, %v1098_v31  ;;  %1039 = vmatmul.mubr.msk.bf16.vlgmr.msra.gmra.mxu1 %vm563_vm1, %v1098_v31  ;;  %v1394_v36 = vpop.permute.xlu0 %520 }
  0xcf   : > { %637 = vmatprep.mubr.bf16.mxu0 %v1133_v61  ;;  %1042 = vmatprep.mubr.msk.bf16.mxu1 %vm563_vm1, %v1099_v32  ;;  %v755_v61 = vsub.s32 1, %v1180_v3 }
  0xd0   : > { %v1401_v40 = vpop.permute.xlu1 %535 }
  0xd1   : > { %v1410_v48 = vrot.slane %v747_v41, %v755_v61 }
  0xd2   : > { %v1398_v38 = vpop.permute.xlu0 %530 }
  0xd6   : > { %988 = vmatmul.mubr.msk.bf16.gmra.mxu0 %vm563_vm1, %v1099_v32  ;;  %1043 = vmatmul.mubr.msk.bf16.gmra.mxu1 %vm563_vm1, %v1097_v28  ;;  %v1413_v54 = vpop.permute.xlu0 %540 }
 0x186   : > { %v619_v42 = vpop.f32.mrf.mxu0  ;;  %v649_v43 = vpop.f32.mrf.mxu1 }
 0x187   : > { %v620_v44 = vadd.f32 %v619_v42, %v506_v34  ;;  %v650_v45 = vadd.f32 %v649_v43, %v1401_v40 }
 0x188   : > { %v621_v47 = vpop.f32.mrf.mxu0  ;;  %v651_v49 = vpop.f32.mrf.mxu1 }
 0x189   : > { %v723_v50 = vmax.f32 %v620_v44, 0.0  ;;  %v741_v51 = vmax.f32 %v650_v45, 0.0  ;;  %v622_v52 = vadd.f32 %v621_v47, %v506_v34  ;;  %v652_v53 = vadd.f32 %v651_v49, %v1401_v40 }
 0x18a   : > { %v623_v55 = vpop.f32.mrf.mxu0  ;;  %v653_v56 = vpop.f32.mrf.mxu1 }
 0x18b   : > { %v724_v58 = vmax.f32 %v622_v52, 0.0  ;;  %v742_v59 = vmax.f32 %v652_v53, 0.0  ;;  %v764_v60 = vmul.f32 %v1408_v46, %v723_v50  ;;  %v782_v62 = vmul.f32 %v1408_v46, %v741_v51 }
 0x18c   : > { %v624_v63 = vadd.f32 %v623_v55, %v1392_v33  ;;  %v654_v0 = vadd.f32 %v653_v56, %v1413_v54  ;;  %v625_v7 = vpop.f32.mrf.mxu0  ;;  %v655_v1 = vpop.f32.mrf.mxu1 }
 0x18d   : > { %v765_v2 = vmul.f32 %v1410_v48, %v724_v58  ;;  %v783_v4 = vmul.f32 %v1410_v48, %v742_v59  ;;  %v626_v5 = vadd.f32 %v625_v7, %v1392_v33  ;;  %v656_v3 = vadd.f32 %v655_v1, %v1413_v54 }
 0x18e   : > { %v726_v6 = vmax.f32 %v624_v63, 0.0  ;;  %v744_v8 = vmax.f32 %v654_v0, 0.0  ;;  %v629_v9 = vpop.f32.mrf.mxu0  ;;  %v1040_v10 = vpop.f32.mrf.mxu1 }
 0x18f   : > { %v1012_v14 = vpack.c.bf16 %v765_v2, %v764_v60  ;;  %v1024_v15 = vpack.c.bf16 %v783_v4, %v782_v62  ;;  %v727_v16 = vmax.f32 %v626_v5, 0.0  ;;  %v745_v12 = vmax.f32 %v656_v3, 0.0 }
 0x190   : > { %v767_v17 = vmul.f32 %v1408_v46, %v726_v6  ;;  %v785_v19 = vmul.f32 %v1408_v46, %v744_v8  ;;  %v630_v20 = vadd.f32 %v629_v9, %v516_v35  ;;  %v701_v18 = vadd.f32 %v1040_v10, %v516_v35  ;;  %v631_v21 = vpop.f32.mrf.mxu0  ;;  %v692_v22 = vpop.f32.mrf.mxu1 }
 0x191   : > { %868 = vst [vmem:[%s1428_s11] sm:$0xff] %v1012_v14  ;;  %881 = vst [vmem:[%s1428_s11 + $0x48] sm:$0xff] %v1024_v15  ;;  %v768_v23 = vmul.f32 %v1410_v48, %v727_v16  ;;  %v786_v24 = vmul.f32 %v1410_v48, %v745_v12  ;;  %v632_v25 = vadd.f32 %v631_v21, %v516_v35 }
 0x192   : > { %v693_v26 = vadd.f32 %v692_v22, %v506_v34  ;;  %v729_v27 = vmax.f32 %v630_v20, 0.0  ;;  %v731_v28 = vmax.f32 %v701_v18, 0.0  ;;  %v633_v13 = vpop.f32.mrf.mxu0  ;;  %v1041_v29 = vpop.f32.mrf.mxu1 }
 0x193   : > { %v1014_v30 = vpack.c.bf16 %v768_v23, %v767_v17  ;;  %v1026_v31 = vpack.c.bf16 %v786_v24, %v785_v19  ;;  %v730_v32 = vmax.f32 %v632_v25, 0.0  ;;  %v634_v42 = vadd.f32 %v633_v13, %v1394_v36 }
 0x194   : > { %v725_v39 = vmax.f32 %v693_v26, 0.0  ;;  %v770_v61 = vmul.f32 %v1408_v46, %v729_v27  ;;  %v772_v41 = vmul.f32 %v1430_v11, %v731_v28  ;;  %v704_v35 = vadd.f32 %v1041_v29, %v1394_v36  ;;  %v635_v34 = vpop.f32.mrf.mxu0  ;;  %v695_v43 = vpop.f32.mrf.mxu1 }
 0x195   : > { %871 = vst [vmem:[%s1428_s11 + $0xc] sm:$0xff] %v1014_v30  ;;  %883 = vst [vmem:[%s1428_s11 + $0x54] sm:$0xff] %v1026_v31  ;;  %v771_v44 = vmul.f32 %v1410_v48, %v730_v32  ;;  %v636_v47 = vadd.f32 %v635_v34, %v1394_v36  ;;  %v696_v49 = vadd.f32 %v695_v43, %v1392_v33  ;;  %v732_v51 = vmax.f32 %v634_v42, 0.0 }
 0x196   : > { %v766_v45 = vmul.f32 %v1430_v11, %v725_v39  ;;  %v1017_v50 = vpack.c.bf16 %v772_v41, %v772_v41  ;;  %v734_v52 = vmax.f32 %v704_v35, 0.0  ;;  %v639_v53 = vpop.f32.mrf.mxu0  ;;  %v1044_v55 = vpop.f32.mrf.mxu1 }
 0x197   : > { %v1016_v56 = vpack.c.bf16 %v771_v44, %v770_v61  ;;  %v733_v58 = vmax.f32 %v636_v47, 0.0  ;;  %v728_v59 = vmax.f32 %v696_v49, 0.0  ;;  %v773_v60 = vmul.f32 %v1408_v46, %v732_v51 }
 0x198   : > { %v1013_v57 = vpack.c.bf16 %v766_v45, %v766_v45  ;;  %874 = vst.msk [vmem:[%s1428_s11 + $0x20] sm:$0xf] %vm869_vm4, %v1017_v50  ;;  %v775_v62 = vmul.f32 %v1430_v11, %v734_v52  ;;  %v640_v36 = vadd.f32 %v639_v53, %v1396_v37  ;;  %v717_v33 = vadd.f32 %v1044_v55, %v1401_v40  ;;  %v641_v63 = vpop.f32.mrf.mxu0  ;;  %v708_v0 = vpop.f32.mrf.mxu1 }
 0x199   : > { %873 = vst [vmem:[%s1428_s11 + $0x18] sm:$0xff] %v1016_v56  ;;  %v774_v7 = vmul.f32 %v1410_v48, %v733_v58  ;;  %v769_v1 = vmul.f32 %v1430_v11, %v728_v59  ;;  %v642_v2 = vadd.f32 %v641_v63, %v1396_v37  ;;  %v709_v4 = vadd.f32 %v708_v0, %v1396_v37 }
 0x19a   : > { %870 = vst.msk [vmem:[%s1428_s11 + $0x8] sm:$0xf] %vm869_vm4, %v1013_v57  ;;  %v1019_v5 = vpack.c.bf16 %v775_v62, %v775_v62  ;;  %v735_v3 = vmax.f32 %v640_v36, 0.0  ;;  %v743_v6 = vmax.f32 %v717_v33, 0.0  ;;  %v643_v40 = vpop.f32.mrf.mxu0  ;;  %v1045_v8 = vpop.f32.mrf.mxu1 }
 0x19b   : > { %v1018_v9 = vpack.c.bf16 %v774_v7, %v773_v60  ;;  %v1015_v10 = vpack.c.bf16 %v769_v1, %v769_v1  ;;  %v736_v14 = vmax.f32 %v642_v2, 0.0  ;;  %v737_v15 = vmax.f32 %v709_v4, 0.0 }
 0x19c   : > { %876 = vst.msk [vmem:[%s1428_s11 + $0x2c] sm:$0xf] %vm869_vm4, %v1019_v5  ;;  %v776_v16 = vmul.f32 %v1408_v46, %v735_v3  ;;  %v784_v12 = vmul.f32 %v1430_v11, %v743_v6  ;;  %v644_v17 = vadd.f32 %v643_v40, %v1398_v38  ;;  %v720_v37 = vadd.f32 %v1045_v8, %v1413_v54  ;;  %v645_v19 = vpop.f32.mrf.mxu0  ;;  %v711_v20 = vpop.f32.mrf.mxu1 }
 0x19d   : > { %875 = vst [vmem:[%s1428_s11 + $0x24] sm:$0xff] %v1018_v9  ;;  %872 = vst.msk [vmem:[%s1428_s11 + $0x14] sm:$0xf] %vm869_vm4, %v1015_v10  ;;  %v777_v18 = vmul.f32 %v1410_v48, %v736_v14  ;;  %v778_v21 = vmul.f32 %v1430_v11, %v737_v15  ;;  %v646_v22 = vadd.f32 %v645_v19, %v1398_v38 }
 0x19e   : > { %v712_v23 = vadd.f32 %v711_v20, %v1398_v38  ;;  %v1025_v24 = vpack.c.bf16 %v784_v12, %v784_v12  ;;  %v738_v25 = vmax.f32 %v644_v17, 0.0  ;;  %v746_v54 = vmax.f32 %v720_v37, 0.0 }
 0x19f   : > { %v1020_v26 = vpack.c.bf16 %v777_v18, %v776_v16  ;;  %v1021_v27 = vpack.c.bf16 %v778_v21, %v778_v21  ;;  %v739_v28 = vmax.f32 %v646_v22, 0.0 }
 0x1a0   : > { %v740_v13 = vmax.f32 %v712_v23, 0.0  ;;  %882 = vst.msk [vmem:[%s1428_s11 + $0x50] sm:$0xf] %vm869_vm4, %v1025_v24  ;;  %v787_v29 = vmul.f32 %v1430_v11, %v746_v54  ;;  %v779_v30 = vmul.f32 %v1408_v46, %v738_v25 }
 0x1a1   : > { %877 = vst [vmem:[%s1428_s11 + $0x30] sm:$0xff] %v1020_v26  ;;  %878 = vst.msk [vmem:[%s1428_s11 + $0x38] sm:$0xf] %vm869_vm4, %v1021_v27  ;;  %v780_v38 = vmul.f32 %v1410_v48, %v739_v28 }
 0x1a2   : > { %v781_v31 = vmul.f32 %v1430_v11, %v740_v13  ;;  %v1027_v32 = vpack.c.bf16 %v787_v29, %v787_v29 }
 0x1a3   : > { %v1022_v39 = vpack.c.bf16 %v780_v38, %v779_v30 }
 0x1a4   : > { %v1023_v61 = vpack.c.bf16 %v781_v31, %v781_v31  ;;  %884 = vst.msk [vmem:[%s1428_s11 + $0x5c] sm:$0xf] %vm869_vm4, %v1027_v32 }
 0x1a5   : > { %879 = vst [vmem:[%s1428_s11 + $0x3c] sm:$0xff] %v1022_v39 }
 0x1a6   : > { %880 = vst.msk [vmem:[%s1428_s11 + $0x44] sm:$0xf] %vm869_vm4, %v1023_v61 }
 0x1a7 PF: > { %s14_s17 = sadd.s32 1, %s1122_s17   ;;  %s1510_s15 = smov %s1118_s16 }
 0x1a8   : > { %p11_p5 = scmp.ge.s32.totalorder %s14_s17, 6   ;;  %s1511_s16 = smov %s1513_s18 }
 0x1aa   :  { %13 = sbr.rel (!%p11_p5) target bundleno = 2 (0x2), region = 66 }

// kernel: single_level_ae_ost_forward.6
= control target key start
LH: loop header
LB: loop body
LE: loop exit
PB: predicated region body
PF: predicated region fallthrough
CT: control target
= control target key end

     0   :  { %s955_s12 = smov 0   ;;  %s957_s13 = smov 0   ;;  %s1055_s0 = inlined_call_operand.vmem [shape: bf16[2,64,64], index: 0, kind: input, shape index: {}]   ;;  %s1056_s1 = inlined_call_operand.vmem [shape: f32[2,64,1], index: 1, kind: input, shape index: {}]   ;;  %s1057_s2 = inlined_call_operand.vmem [shape: bf16[4,64,288], index: 2, kind: input, shape index: {}]   ;;  %s1058_s3 = inlined_call_operand.vmem [shape: bf16[2,64,288], index: 3, kind: output, shape index: {}]  }
   0x1   :  { %s959_s14 = smov 0  }
   0x2 LB: > { %s25_s15 = sadd.s32 1, %s928_s13  ;;  %p770_p0 = scmp.ge.s32.totalorder %s932_s14, 1  ;;  %s932_s14 = sphi %s959_s14, %s13_s14   ;;  %s928_s13 = sphi %s957_s13, %s1060_s13   ;;  %s924_s12 = sphi %s955_s12, %s1059_s12  }
   0x3   : > { %p27_p1 = scmp.ge.s32.totalorder %s25_s15, 2  ;;  %p178_p2 = scmp.lt.s32.totalorder %s932_s14, 3 }
   0x5   : > { %s1062_s15 = smov (%p27_p1, %s25_s15), 0  ;;  %p179_p3 = pnand %p770_p0, %p178_p2 }
   0x6   : > { %p231_p4 = scmp.lt.s32.totalorder (!%p179_p3), %s924_s12, 3  ;;  %p220_p5 = scmp.lt.s32.totalorder (!%p179_p3), %s924_s12, 1 }
   0x7   : > { %182 = sbr.rel (%p179_p3) target bundleno = 262 (0x106), region = 32 }
   0xc   : > { %v934_v0 = vmov 0   ;;  %s232_s16 = scalar_select %p231_p4, %s924_s12, 3  ;;  %vm407_vm0 = vcmask 523264   ;;  %vm639_vm1 = vcmask 257024  }
   0xd   : > { %452 = vmatprep.mubr.bf16.mxu0 %v934_v0  ;;  %888 = vset.pattern.permute.xlu0 %v934_v0  ;;  %s1064_s12 = smov (!%p220_p5, %s924_s12), 1 }
   0xe   : > { %889 = vset.pattern.permute.xlu1 %v934_v0  ;;  %s861_s17 = smul.u32 96, %s232_s16  ;;  %s819_s21 = sshll.u32 %s1064_s12, 5 }
   0xf   : > { %s820_s22 = sshll.u32 %s1064_s12, 6  ;;  %s986_s25 = scalar_lea.vmem %s1055_s0, %s819_s21 }
  0x10   : > { %s238_s20 = scalar_lea.vmem %s1057_s2, %s861_s17  ;;  %v905_v12 = vld [vmem:[%s986_s25] sm:$0xff]   ;;  %s992_s28 = scalar_lea.vmem %s1056_s1, %s820_s22  ;;  %v907_v17 = vld [vmem:[%s986_s25 + $0x8] sm:$0xff]   ;;  %v908_v19 = vld [vmem:[%s986_s25 + $0x10] sm:$0xff]  }
  0x11   : > { %v890_v1 = vld [vmem:[%s238_s20 + $0x4c] ss:$12 sps:$4 sm:$0xff]   ;;  %v892_v2 = vld [vmem:[%s238_s20 + $0x48] ss:$12 sps:$4 sm:$0xff]   ;;  %v895_v4 = vld [vmem:[%s238_s20 + $0x50] ss:$12 sps:$4 sm:$0xff]   ;;  %853 = vmatprep.mubr.msk.bf16.mxu1 %vm407_vm0, %v905_v12 }
  0x12   : > { %428 = vmatprep.subr.bf16.mxu0 %v890_v1  ;;  %v893_v3 = vld [vmem:[%s238_s20 + $0x34] ss:$12 sps:$4 sm:$0xff]   ;;  %v896_v5 = vld [vmem:[%s238_s20 + $0x30] ss:$12 sps:$4 sm:$0xff]   ;;  %845 = vmatprep.subr.bf16.mxu1 %v895_v4  ;;  %v899_v7 = vld [vmem:[%s238_s20 + $0x38] ss:$12 sps:$4 sm:$0xff]  }
  0x13   : > { %429 = vmatpush1.bf16.msra.mxu0 %v892_v2  ;;  %v897_v6 = vld [vmem:[%s238_s20 + $0x1c] ss:$12 sps:$4 sm:$0xff]   ;;  %846 = vmatpush3.bf16.msra.mxu1 %v895_v4  ;;  %v900_v8 = vld [vmem:[%s238_s20 + $0x18] ss:$12 sps:$4 sm:$0xff]   ;;  %v903_v9 = vld [vmem:[%s238_s20 + $0x20] ss:$12 sps:$4 sm:$0xff]  }
  0x14   : > { %430 = vmatprep.subr.bf16.mxu0 %v893_v3  ;;  %847 = vmatprep.subr.bf16.mxu1 %v899_v7  ;;  %v901_v10 = vld [vmem:[%s238_s20 + $0x4] ss:$12 sps:$4 sm:$0xff]   ;;  %v904_v11 = vld [vmem:[%s238_s20] ss:$12 sps:$4 sm:$0xff]   ;;  %v906_v13 = vld [vmem:[%s238_s20 + $0x8] ss:$12 sps:$4 sm:$0xff]  }
  0x15   : > { %v275_v14 = vld [vmem:[%s992_s28] sm:$0xff]  ;;  %v277_v15 = vld [vmem:[%s992_s28 + $0x10] sm:$0xff]  ;;  %v276_v16 = vld [vmem:[%s992_s28 + $0x8] sm:$0xff]  ;;  %s862_s29 = smul.u32 96, %s1064_s12 }
  0x16   : > { %285 = vperm.xlu0 %888, %v275_v14   ;;  %295 = vperm.xlu1 %889, %v277_v15   ;;  %v278_v18 = vld [vmem:[%s992_s28 + $0x18] sm:$0xff]  ;;  %v279_v20 = vld [vmem:[%s992_s28 + $0x20] sm:$0xff]  ;;  %v280_v21 = vld [vmem:[%s992_s28 + $0x28] sm:$0xff] }
  0x17   : > { %431 = vmatpush1.bf16.msra.mxu0 %v896_v5  ;;  %848 = vmatpush3.bf16.msra.mxu1 %v899_v7  ;;  %v281_v22 = vld [vmem:[%s992_s28 + $0x30] sm:$0xff]  ;;  %v909_v23 = vld [vmem:[%s986_s25 + $0x18] sm:$0xff]   ;;  %s1020_s5 = scalar_lea.vmem %s1058_s3, %s862_s29 }
  0x18   : > { %432 = vmatprep.subr.bf16.mxu0 %v897_v6  ;;  %849 = vmatprep.subr.bf16.mxu1 %v903_v9  ;;  %v282_v24 = vld [vmem:[%s992_s28 + $0x38] sm:$0xff] }
  0x1a   : > { %290 = vperm.xlu0 %888, %v276_v16   ;;  %300 = vperm.xlu1 %889, %v278_v18  }
  0x1b   : > { %433 = vmatpush1.bf16.msra.mxu0 %v900_v8  ;;  %850 = vmatpush3.bf16.msra.mxu1 %v903_v9 }
  0x1c   : > { %434 = vmatprep.subr.bf16.mxu0 %v901_v10  ;;  %851 = vmatprep.subr.bf16.mxu1 %v906_v13 }
  0x1e   : > { %305 = vperm.xlu0 %888, %v279_v20   ;;  %310 = vperm.xlu1 %889, %v280_v21  }
  0x1f   : > { %435 = vmatpush1.bf16.msra.mxu0 %v904_v11  ;;  %852 = vmatpush3.bf16.msra.mxu1 %v906_v13 }
  0x22   : > { %793 = vmatmul.mubr.msk.bf16.vlgmr.msra.gmra.mxu0 %vm407_vm0, %v905_v12  ;;  %854 = vmatmul.mubr.msk.bf16.vlgmr.msra.gmra.mxu1 %vm407_vm0, %v907_v17 }
  0x23   : > { %462 = vmatprep.mubr.bf16.mxu0 %v934_v0  ;;  %857 = vmatprep.mubr.msk.bf16.mxu1 %vm407_vm0, %v908_v19 }
  0x24   : > { %315 = vperm.xlu0 %888, %v281_v22   ;;  %320 = vperm.xlu1 %889, %v282_v24  }
  0x2a   : > { %794 = vmatmul.mubr.msk.bf16.gmra.mxu0 %vm407_vm0, %v907_v17  ;;  %858 = vmatmul.mubr.msk.bf16.gmra.mxu1 %vm407_vm0, %v909_v23 }
  0x2b   : > { %472 = vmatprep.mubr.bf16.mxu0 %v934_v0 }
  0x32   : > { %795 = vmatmul.mubr.msk.bf16.gmra.mxu0 %vm407_vm0, %v908_v19 }
  0x33   : > { %482 = vmatprep.mubr.bf16.mxu0 %v934_v0 }
  0x3a   : > { %796 = vmatmul.mubr.msk.bf16.gmra.mxu0 %vm407_vm0, %v909_v23 }
  0x91   : > { %v286_v25 = vpop.permute.xlu0 %285  ;;  %v296_v26 = vpop.permute.xlu1 %295 }
  0x95   : > { %v291_v27 = vpop.permute.xlu0 %290  ;;  %v301_v29 = vpop.permute.xlu1 %300 }
  0x99   : > { %v306_v34 = vpop.permute.xlu0 %305  ;;  %v311_v45 = vpop.permute.xlu1 %310 }
  0x9f   : > { %v316_v51 = vpop.permute.xlu0 %315  ;;  %v321_v63 = vpop.permute.xlu1 %320 }
  0xe2   : > { %v454_v28 = vpop.f32.mrf.mxu0  ;;  %v855_v33 = vpop.f32.mrf.mxu1 }
  0xe3   : > { %v455_v31 = vadd.f32 %v454_v28, %v286_v25  ;;  %v536_v36 = vadd.f32 %v855_v33, %v296_v26 }
  0xe4   : > { %v456_v30 = vpop.f32.mrf.mxu0  ;;  %v527_v38 = vpop.f32.mrf.mxu1 }
  0xe5   : > { %v457_v32 = vadd.f32 %v456_v30, %v286_v25  ;;  %v826_v39 = vpack.c.bf16 %v536_v36, %v536_v36  ;;  %v528_v41 = vadd.f32 %v527_v38, %v286_v25 }
  0xe6   : > { %v458_v35 = vpop.f32.mrf.mxu0  ;;  %v856_v44 = vpop.f32.mrf.mxu1 }
  0xe7   : > { %v821_v37 = vpack.c.bf16 %v457_v32, %v455_v31  ;;  %v459_v42 = vadd.f32 %v458_v35, %v291_v27  ;;  %644 = vst.msk [vmem:[%s1020_s5 + $0x20] sm:$0xf] %vm639_vm1, %v826_v39  ;;  %v822_v46 = vpack.c.bf16 %v528_v41, %v528_v41  ;;  %v539_v48 = vadd.f32 %v856_v44, %v301_v29 }
  0xe8   : > { %v460_v40 = vpop.f32.mrf.mxu0  ;;  %v530_v50 = vpop.f32.mrf.mxu1 }
  0xe9   : > { %638 = vst [vmem:[%s1020_s5] sm:$0xff] %v821_v37  ;;  %v461_v43 = vadd.f32 %v460_v40, %v291_v27  ;;  %640 = vst.msk [vmem:[%s1020_s5 + $0x8] sm:$0xf] %vm639_vm1, %v822_v46  ;;  %v828_v52 = vpack.c.bf16 %v539_v48, %v539_v48  ;;  %v531_v54 = vadd.f32 %v530_v50, %v291_v27 }
  0xea   : > { %v464_v47 = vpop.f32.mrf.mxu0  ;;  %v859_v57 = vpop.f32.mrf.mxu1 }
  0xeb   : > { %v823_v49 = vpack.c.bf16 %v461_v43, %v459_v42  ;;  %v465_v55 = vadd.f32 %v464_v47, %v296_v26  ;;  %646 = vst.msk [vmem:[%s1020_s5 + $0x2c] sm:$0xf] %vm639_vm1, %v828_v52  ;;  %v824_v58 = vpack.c.bf16 %v531_v54, %v531_v54  ;;  %v552_v60 = vadd.f32 %v859_v57, %v316_v51 }
  0xec   : > { %v466_v53 = vpop.f32.mrf.mxu0  ;;  %v543_v62 = vpop.f32.mrf.mxu1 }
  0xed   : > { %641 = vst [vmem:[%s1020_s5 + $0xc] sm:$0xff] %v823_v49  ;;  %v467_v56 = vadd.f32 %v466_v53, %v296_v26  ;;  %642 = vst.msk [vmem:[%s1020_s5 + $0x14] sm:$0xf] %vm639_vm1, %v824_v58  ;;  %v544_v1 = vadd.f32 %v543_v62, %v306_v34  ;;  %v834_v2 = vpack.c.bf16 %v552_v60, %v552_v60 }
  0xee   : > { %v468_v59 = vpop.f32.mrf.mxu0  ;;  %v860_v5 = vpop.f32.mrf.mxu1 }
  0xef   : > { %v825_v61 = vpack.c.bf16 %v467_v56, %v465_v55  ;;  %v469_v3 = vadd.f32 %v468_v59, %v301_v29  ;;  %v830_v6 = vpack.c.bf16 %v544_v1, %v544_v1  ;;  %v555_v8 = vadd.f32 %v860_v5, %v321_v63  ;;  %652 = vst.msk [vmem:[%s1020_s5 + $0x50] sm:$0xf] %vm639_vm1, %v834_v2 }
  0xf0   : > { %v470_v0 = vpop.f32.mrf.mxu0  ;;  %v546_v10 = vpop.f32.mrf.mxu1 }
  0xf1   : > { %643 = vst [vmem:[%s1020_s5 + $0x18] sm:$0xff] %v825_v61  ;;  %v471_v4 = vadd.f32 %v470_v0, %v301_v29  ;;  %648 = vst.msk [vmem:[%s1020_s5 + $0x38] sm:$0xf] %vm639_vm1, %v830_v6  ;;  %v836_v11 = vpack.c.bf16 %v555_v8, %v555_v8  ;;  %v547_v13 = vadd.f32 %v546_v10, %v311_v45 }
  0xf2   : > { %v474_v7 = vpop.f32.mrf.mxu0 }
  0xf3   : > { %v827_v9 = vpack.c.bf16 %v471_v4, %v469_v3  ;;  %v475_v14 = vadd.f32 %v474_v7, %v306_v34  ;;  %654 = vst.msk [vmem:[%s1020_s5 + $0x5c] sm:$0xf] %vm639_vm1, %v836_v11  ;;  %v832_v16 = vpack.c.bf16 %v547_v13, %v547_v13 }
  0xf4   : > { %v476_v12 = vpop.f32.mrf.mxu0 }
  0xf5   : > { %645 = vst [vmem:[%s1020_s5 + $0x24] sm:$0xff] %v827_v9  ;;  %v477_v15 = vadd.f32 %v476_v12, %v306_v34  ;;  %650 = vst.msk [vmem:[%s1020_s5 + $0x44] sm:$0xf] %vm639_vm1, %v832_v16 }
  0xf6   : > { %v478_v17 = vpop.f32.mrf.mxu0 }
  0xf7   : > { %v829_v18 = vpack.c.bf16 %v477_v15, %v475_v14  ;;  %v479_v20 = vadd.f32 %v478_v17, %v311_v45 }
  0xf8   : > { %v480_v19 = vpop.f32.mrf.mxu0 }
  0xf9   : > { %647 = vst [vmem:[%s1020_s5 + $0x30] sm:$0xff] %v829_v18  ;;  %v481_v21 = vadd.f32 %v480_v19, %v311_v45 }
  0xfa   : > { %v484_v22 = vpop.f32.mrf.mxu0 }
  0xfb   : > { %v831_v23 = vpack.c.bf16 %v481_v21, %v479_v20  ;;  %v485_v25 = vadd.f32 %v484_v22, %v316_v51 }
  0xfc   : > { %v486_v24 = vpop.f32.mrf.mxu0 }
  0xfd   : > { %649 = vst [vmem:[%s1020_s5 + $0x3c] sm:$0xff] %v831_v23  ;;  %v487_v26 = vadd.f32 %v486_v24, %v316_v51 }
  0xfe   : > { %v488_v27 = vpop.f32.mrf.mxu0 }
  0xff   : > { %v833_v28 = vpack.c.bf16 %v487_v26, %v485_v25  ;;  %v489_v30 = vadd.f32 %v488_v27, %v321_v63 }
 0x100   : > { %v490_v29 = vpop.f32.mrf.mxu0 }
 0x101   : > { %651 = vst [vmem:[%s1020_s5 + $0x48] sm:$0xff] %v833_v28  ;;  %v491_v31 = vadd.f32 %v490_v29, %v321_v63 }
 0x103   : > { %v835_v32 = vpack.c.bf16 %v491_v31, %v489_v30 }
 0x105   : > { %653 = vst [vmem:[%s1020_s5 + $0x54] sm:$0xff] %v835_v32 }
 0x106 PF: > { %s13_s14 = sadd.s32 1, %s932_s14   ;;  %s1059_s12 = smov %s928_s13 }
 0x107   : > { %p10_p6 = scmp.ge.s32.totalorder %s13_s14, 4   ;;  %s1060_s13 = smov %s1062_s15 }
 0x109   :  { %12 = sbr.rel (!%p10_p6) target bundleno = 2 (0x2), region = 68 }

// kernel: single_level_ae_ost_forward.7
= control target key start
LH: loop header
LB: loop body
LE: loop exit
PB: predicated region body
PF: predicated region fallthrough
CT: control target
= control target key end

     0   :  { %s1223_s15 = smov 0   ;;  %s1225_s16 = smov 0   ;;  %s1776_s0 = inlined_call_operand.vmem [shape: bf16[2,1,64,326], index: 0, kind: input, shape index: {}]   ;;  %s1777_s1 = inlined_call_operand.vmem [shape: bf16[3,3,192], index: 1, kind: input, shape index: {}]   ;;  %s1778_s2 = inlined_call_operand.vmem [shape: f32[3,1], index: 2, kind: input, shape index: {}]   ;;  %s1779_s3 = inlined_call_operand.vmem [shape: f32[1,288], index: 3, kind: input, shape index: {}]   ;;  %s1780_s4 = inlined_call_operand.vmem [shape: f32[2,3,288], index: 4, kind: output, shape index: {}]  }
   0x1   :  { %s1227_s17 = smov 0  }
   0x2 LB: > { %s26_s18 = sadd.s32 1, %s1187_s16  ;;  %p1093_p0 = scmp.ge.s32.totalorder %s1191_s17, 1  ;;  %s1191_s17 = sphi %s1227_s17, %s14_s17   ;;  %s1187_s16 = sphi %s1225_s16, %s1782_s16   ;;  %s1183_s15 = sphi %s1223_s15, %s1781_s15  }
   0x3   : > { %p28_p1 = scmp.ge.s32.totalorder %s26_s18, 2  ;;  %p182_p2 = scmp.lt.s32.totalorder %s1191_s17, 3 }
   0x5   : > { %s1784_s18 = smov (%p28_p1, %s26_s18), 0  ;;  %p183_p3 = pnand %p1093_p0, %p182_p2 }
   0x6   : > { %p216_p4 = scmp.lt.s32.totalorder (!%p183_p3), %s1183_s15, 1  ;;  %s1193_s23 = smov (!%p183_p3), 127  }
   0x7   : > { %186 = sbr.rel (%p183_p3) target bundleno = 624 (0x270), region = 36  ;;  %s1194_s24 = smov (!%p183_p3), 126  }
   0x8   : > { %s1195_s25 = smov (!%p183_p3), 110   ;;  %s1197_s28 = smov (!%p183_p3), 92  }
   0xc   : > { %s1786_s15 = smov (!%p216_p4, %s1183_s15), 1  ;;  %v1196_v12 = vmov 0   ;;  %vm340_vm0 = vcmask 1039360   ;;  %vm385_vm1 = vcmask 1031168   ;;  %vm552_vm2 = vcmask 523264  }
   0xd   : > { %s1121_s19 = smul.u32 96, %s1786_s15  ;;  %597 = vmatprep.subr.bf16.mxu1 %v1196_v12  ;;  %1152 = vset.pattern.permute.xlu0 %v1196_v12  ;;  %v1424_v50 = vld.sshfl [vmem:[%s1777_s1 + $0x4] sm:$0x33 pattern:$0x76325410]  ;;  %vm491_vm3 = vcmask 900096  }
   0xe   : > { %v417_v51 = vcombine.high %v1424_v50, %v1424_v50  ;;  %vm815_vm4 = vcmask 752640   ;;  %s1122_s11 = smul.u32 12, %s1786_s15  ;;  %vm997_vm5 = vcmask 256000  }
   0xf   : > { %s224_s22 = scalar_lea.vmem %s1776_s0, %s1121_s19 }
  0x10   : > { %v1247_v0 = vld [vmem:[%s224_s22 + $0x4c] ss:$12 sps:$4 sm:$0xff]   ;;  %v1249_v1 = vld [vmem:[%s224_s22 + $0x48] ss:$12 sps:$4 sm:$0xff]   ;;  %v1252_v2 = vld [vmem:[%s224_s22 + $0x50] ss:$12 sps:$4 sm:$0xff]   ;;  %1111 = vmatprep.mubr.msk.bf16.mxu1 %vm552_vm2, %v417_v51  ;;  %1110 = vmatprep.mubr.msk.bf16.mxu0 %vm552_vm2, %v417_v51  ;;  %s233_s14 = scalar_lea.vmem %s1780_s4, %s1122_s11 }
  0x11   : > { %336 = vrot.lane.b32.xlu0 %v1247_v0, %s1193_s23  ;;  %334 = vrot.lane.b32.xlu1 %v1249_v1, %s1193_s23  ;;  %v1255_v3 = vld [vmem:[%s224_s22 + $0x34] ss:$12 sps:$4 sm:$0xff]   ;;  %v1258_v4 = vld [vmem:[%s224_s22 + $0x38] ss:$12 sps:$4 sm:$0xff]  }
  0x12   : > { %v1261_v5 = vld [vmem:[%s224_s22 + $0x30] ss:$12 sps:$4 sm:$0xff]   ;;  %v1267_v7 = vld [vmem:[%s224_s22 + $0x20] ss:$12 sps:$4 sm:$0xff]   ;;  %v1270_v8 = vld [vmem:[%s224_s22 + $0x18] ss:$12 sps:$4 sm:$0xff]  }
  0x13   : > { %v1264_v6 = vld [vmem:[%s224_s22 + $0x1c] ss:$12 sps:$4 sm:$0xff]   ;;  %v1273_v9 = vld [vmem:[%s224_s22 + $0x4] ss:$12 sps:$4 sm:$0xff]   ;;  %v1279_v11 = vld [vmem:[%s224_s22] ss:$12 sps:$4 sm:$0xff]  }
  0x14   : > { %v1276_v10 = vld [vmem:[%s224_s22 + $0x8] ss:$12 sps:$4 sm:$0xff]  }
  0x15   : > { %338 = vrot.lane.b32.xlu0 %v1252_v2, %s1193_s23  ;;  %330 = vrot.lane.b32.xlu1 %v1255_v3, %s1193_s23 }
  0x19   : > { %332 = vrot.lane.b32.xlu0 %v1258_v4, %s1193_s23  ;;  %328 = vrot.lane.b32.xlu1 %v1261_v5, %s1193_s23 }
  0x1d   : > { %324 = vrot.lane.b32.xlu0 %v1264_v6, %s1193_s23  ;;  %326 = vrot.lane.b32.xlu1 %v1267_v7, %s1193_s23 }
  0x21   : > { %322 = vrot.lane.b32.xlu0 %v1270_v8, %s1193_s23  ;;  %318 = vrot.lane.b32.xlu1 %v1273_v9, %s1193_s23 }
  0x25   : > { %320 = vrot.lane.b32.xlu0 %v1276_v10, %s1193_s23  ;;  %316 = vrot.lane.b32.xlu1 %v1279_v11, %s1193_s23 }
  0x29   : > { %381 = vrot.lane.b32.xlu0 %v1247_v0, %s1194_s24  ;;  %383 = vrot.lane.b32.xlu1 %v1252_v2, %s1194_s24 }
  0x2d   : > { %379 = vrot.lane.b32.xlu0 %v1249_v1, %s1194_s24  ;;  %375 = vrot.lane.b32.xlu1 %v1255_v3, %s1194_s24 }
  0x31   : > { %377 = vrot.lane.b32.xlu0 %v1258_v4, %s1194_s24  ;;  %373 = vrot.lane.b32.xlu1 %v1261_v5, %s1194_s24 }
  0x35   : > { %369 = vrot.lane.b32.xlu0 %v1264_v6, %s1194_s24  ;;  %371 = vrot.lane.b32.xlu1 %v1267_v7, %s1194_s24 }
  0x39   : > { %367 = vrot.lane.b32.xlu0 %v1270_v8, %s1194_s24  ;;  %363 = vrot.lane.b32.xlu1 %v1273_v9, %s1194_s24 }
  0x3d   : > { %365 = vrot.lane.b32.xlu0 %v1276_v10, %s1194_s24  ;;  %361 = vrot.lane.b32.xlu1 %v1279_v11, %s1194_s24 }
  0x41   : > { %439 = vrot.lane.b32.xlu0 %v1247_v0, %s1195_s25  ;;  %441 = vrot.lane.b32.xlu1 %v1252_v2, %s1195_s25 }
  0x45   : > { %437 = vrot.lane.b32.xlu0 %v1249_v1, %s1195_s25  ;;  %433 = vrot.lane.b32.xlu1 %v1255_v3, %s1195_s25 }
  0x49   : > { %435 = vrot.lane.b32.xlu0 %v1258_v4, %s1195_s25  ;;  %431 = vrot.lane.b32.xlu1 %v1261_v5, %s1195_s25 }
  0x83   : > { %v337_v13 = vpop.permute.xlu0 %336  ;;  %v335_v14 = vpop.permute.xlu1 %334 }
  0x84   : > { %v1345_v29 = vsel %vm340_vm0, %v335_v14, %v337_v13 }
  0x87   : > { %v1309_v15 = vpop.permute.xlu0 %338  ;;  %v331_v16 = vpop.permute.xlu1 %330 }
  0x88   : > { %465 = vrot.lane.b32.xlu1 %v1309_v15, %s1195_s25  ;;  %v1338_v27 = vsel %vm340_vm0, %v337_v13, %v1309_v15 }
  0x8b   : > { %v1313_v17 = vpop.permute.xlu0 %332  ;;  %v329_v18 = vpop.permute.xlu1 %328 }
  0x8c   : > { %459 = vrot.lane.b32.xlu0 %v1313_v17, %s1195_s25  ;;  %v1323_v22 = vsel %vm340_vm0, %v331_v16, %v1313_v17  ;;  %v1332_v25 = vsel %vm340_vm0, %v329_v18, %v331_v16 }
  0x8f   : > { %v325_v19 = vpop.permute.xlu0 %324  ;;  %v1317_v20 = vpop.permute.xlu1 %326 }
  0x90   : > { %453 = vrot.lane.b32.xlu1 %v1317_v20, %s1195_s25  ;;  %v1362_v33 = vsel %vm340_vm0, %v325_v19, %v1317_v20 }
  0x93   : > { %v323_v21 = vpop.permute.xlu0 %322  ;;  %v319_v23 = vpop.permute.xlu1 %318 }
  0x94   : > { %457 = vrot.lane.b32.xlu1 %v1323_v22, %s1195_s25  ;;  %v1369_v36 = vsel %vm340_vm0, %v323_v21, %v325_v19 }
  0x97   : > { %v1327_v24 = vpop.permute.xlu0 %320  ;;  %v317_v26 = vpop.permute.xlu1 %316 }
  0x98   : > { %447 = vrot.lane.b32.xlu0 %v1327_v24, %s1195_s25  ;;  %455 = vrot.lane.b32.xlu1 %v1332_v25, %s1195_s25  ;;  %v1351_v30 = vsel %vm340_vm0, %v319_v23, %v1327_v24  ;;  %v1358_v32 = vsel %vm340_vm0, %v317_v26, %v319_v23 }
  0x9b   : > { %v382_v28 = vpop.permute.xlu0 %381  ;;  %v1353_v31 = vpop.permute.xlu1 %383 }
  0x9c   : > { %463 = vrot.lane.b32.xlu0 %v1338_v27, %s1195_s25  ;;  %429 = vrot.lane.b32.xlu1 %v1267_v7, %s1195_s25  ;;  %v1401_v44 = vsel %vm385_vm1, %v382_v28, %v1353_v31 }
  0x9f   : > { %v380_v34 = vpop.permute.xlu0 %379  ;;  %v376_v35 = vpop.permute.xlu1 %375 }
  0xa0   : > { %461 = vrot.lane.b32.xlu0 %v1345_v29, %s1195_s25  ;;  %445 = vrot.lane.b32.xlu1 %v1351_v30, %s1195_s25  ;;  %v1417_v48 = vsel %vm385_vm1, %v380_v34, %v382_v28 }
  0xa3   : > { %v1375_v37 = vpop.permute.xlu0 %377  ;;  %v374_v38 = vpop.permute.xlu1 %373 }
  0xa4   : > { %451 = vrot.lane.b32.xlu0 %v1362_v33, %s1195_s25  ;;  %443 = vrot.lane.b32.xlu1 %v1358_v32, %s1195_s25  ;;  %v1395_v42 = vsel %vm385_vm1, %v376_v35, %v1375_v37  ;;  %v1408_v46 = vsel %vm385_vm1, %v374_v38, %v376_v35 }
  0xa7   : > { %v370_v39 = vpop.permute.xlu0 %369  ;;  %v1385_v40 = vpop.permute.xlu1 %371 }
  0xa8   : > { %449 = vrot.lane.b32.xlu0 %v1369_v36, %s1195_s25  ;;  %421 = vrot.lane.b32.xlu1 %v1273_v9, %s1195_s25  ;;  %v1435_v53 = vsel %vm385_vm1, %v370_v39, %v1385_v40 }
  0xab   : > { %v368_v41 = vpop.permute.xlu0 %367  ;;  %v364_v43 = vpop.permute.xlu1 %363 }
  0xac   : > { %427 = vrot.lane.b32.xlu0 %v1264_v6, %s1195_s25  ;;  %419 = vrot.lane.b32.xlu1 %v1279_v11, %s1195_s25  ;;  %v1444_v54 = vsel %vm385_vm1, %v368_v41, %v370_v39 }
  0xaf   : > { %v1403_v45 = vpop.permute.xlu0 %365  ;;  %v362_v49 = vpop.permute.xlu1 %361 }
  0xb0   : > { %425 = vrot.lane.b32.xlu0 %v1270_v8, %s1195_s25  ;;  %489 = vrot.lane.b32.xlu1 %v1353_v31, %s1195_s25  ;;  %v1414_v47 = vsel %vm385_vm1, %v364_v43, %v1403_v45  ;;  %v1431_v52 = vsel %vm385_vm1, %v362_v49, %v364_v43 }
  0xb3   : > { %v1480_v55 = vpop.permute.xlu1 %441  ;;  %v1486_v56 = vpop.permute.xlu0 %439 }
  0xb4   : > { %423 = vrot.lane.b32.xlu0 %v1276_v10, %s1195_s25  ;;  %477 = vrot.lane.b32.xlu1 %v1385_v40, %s1195_s25 }
  0xb7   : > { %v1490_v57 = vpop.permute.xlu1 %433  ;;  %v1496_v58 = vpop.permute.xlu0 %437 }
  0xb8   : > { %483 = vrot.lane.b32.xlu0 %v1375_v37, %s1195_s25  ;;  %481 = vrot.lane.b32.xlu1 %v1395_v42, %s1195_s25 }
  0xbb   : > { %v1500_v59 = vpop.permute.xlu1 %431  ;;  %v1506_v60 = vpop.permute.xlu0 %435 }
  0xbc   : > { %487 = vrot.lane.b32.xlu0 %v1401_v44, %s1195_s25  ;;  %479 = vrot.lane.b32.xlu1 %v1408_v46, %s1195_s25 }
  0xc0   : > { %485 = vrot.lane.b32.xlu0 %v1417_v48, %s1195_s25  ;;  %469 = vrot.lane.b32.xlu1 %v1414_v47, %s1195_s25 }
  0xc4   : > { %475 = vrot.lane.b32.xlu0 %v1435_v53, %s1195_s25  ;;  %467 = vrot.lane.b32.xlu1 %v1431_v52, %s1195_s25 }
  0xc8   : > { %473 = vrot.lane.b32.xlu0 %v1444_v54, %s1195_s25  ;;  %789 = vrot.lane.b32.xlu1 %v1309_v15, %s1197_s28 }
  0xcc   : > { %471 = vrot.lane.b32.xlu0 %v1403_v45, %s1195_s25  ;;  %781 = vrot.lane.b32.xlu1 %v1323_v22, %s1197_s28 }
  0xd0   : > { %787 = vrot.lane.b32.xlu0 %v1338_v27, %s1197_s28  ;;  %779 = vrot.lane.b32.xlu1 %v1332_v25, %s1197_s28 }
  0xd4   : > { %785 = vrot.lane.b32.xlu0 %v1345_v29, %s1197_s28  ;;  %777 = vrot.lane.b32.xlu1 %v1317_v20, %s1197_s28 }
  0xd8   : > { %783 = vrot.lane.b32.xlu0 %v1313_v17, %s1197_s28  ;;  %769 = vrot.lane.b32.xlu1 %v1351_v30, %s1197_s28 }
  0xdc   : > { %775 = vrot.lane.b32.xlu0 %v1362_v33, %s1197_s28  ;;  %767 = vrot.lane.b32.xlu1 %v1358_v32, %s1197_s28 }
  0xe0   : > { %773 = vrot.lane.b32.xlu0 %v1369_v36, %s1197_s28  ;;  %765 = vrot.lane.b32.xlu1 %v1252_v2, %s1197_s28 }
  0xe4   : > { %771 = vrot.lane.b32.xlu0 %v1327_v24, %s1197_s28  ;;  %757 = vrot.lane.b32.xlu1 %v1255_v3, %s1197_s28 }
  0xe8   : > { %763 = vrot.lane.b32.xlu0 %v1247_v0, %s1197_s28  ;;  %755 = vrot.lane.b32.xlu1 %v1261_v5, %s1197_s28 }
  0xec   : > { %761 = vrot.lane.b32.xlu0 %v1249_v1, %s1197_s28  ;;  %753 = vrot.lane.b32.xlu1 %v1267_v7, %s1197_s28 }
  0xf0   : > { %759 = vrot.lane.b32.xlu0 %v1258_v4, %s1197_s28  ;;  %745 = vrot.lane.b32.xlu1 %v1273_v9, %s1197_s28 }
  0xf4   : > { %751 = vrot.lane.b32.xlu0 %v1264_v6, %s1197_s28  ;;  %743 = vrot.lane.b32.xlu1 %v1279_v11, %s1197_s28 }
  0xf8   : > { %749 = vrot.lane.b32.xlu0 %v1270_v8, %s1197_s28  ;;  %813 = vrot.lane.b32.xlu1 %v1353_v31, %s1197_s28 }
  0xfa   : > { %v466_v61 = vpop.permute.xlu1 %465 }
  0xfb   : > { %598 = vmatpush1.bf16.msra.mxu1 %v466_v61 }
  0xfc   : > { %747 = vrot.lane.b32.xlu0 %v1276_v10, %s1197_s28  ;;  %599 = vmatprep.subr.bf16.mxu1 %v1196_v12 }
  0xfd   : > { %805 = vrot.lane.b32.xlu1 %v1395_v42, %s1197_s28 }
  0xfe   : > { %v460_v62 = vpop.permute.xlu0 %459 }
  0xff   : > { %600 = vmatpush1.bf16.msra.mxu1 %v460_v62 }
 0x100   : > { %811 = vrot.lane.b32.xlu0 %v1401_v44, %s1197_s28  ;;  %601 = vmatprep.subr.bf16.mxu1 %v1196_v12 }
 0x101   : > { %803 = vrot.lane.b32.xlu1 %v1408_v46, %s1197_s28 }
 0x102   : > { %v454_v63 = vpop.permute.xlu1 %453 }
 0x103   : > { %602 = vmatpush1.bf16.msra.mxu1 %v454_v63 }
 0x104   : > { %809 = vrot.lane.b32.xlu0 %v1417_v48, %s1197_s28  ;;  %603 = vmatprep.subr.bf16.mxu1 %v1196_v12 }
 0x105   : > { %801 = vrot.lane.b32.xlu1 %v1385_v40, %s1197_s28 }
 0x106   : > { %v458_v13 = vpop.permute.xlu1 %457 }
 0x107   : > { %v505_v34 = vsel %vm491_vm3, %v458_v13, %v460_v62 }
 0x108   : > { %807 = vrot.lane.b32.xlu0 %v1375_v37, %s1197_s28 }
 0x109   : > { %793 = vrot.lane.b32.xlu1 %v1414_v47, %s1197_s28 }
 0x10a   : > { %v448_v14 = vpop.permute.xlu0 %447  ;;  %v456_v16 = vpop.permute.xlu1 %455 }
 0x10b   : > { %604 = vmatpush1.bf16.msra.mxu1 %v448_v14  ;;  %v504_v39 = vsel %vm491_vm3, %v456_v16, %v458_v13 }
 0x10c   : > { %799 = vrot.lane.b32.xlu0 %v1435_v53, %s1197_s28  ;;  %605 = vmatprep.subr.bf16.mxu1 %v1196_v12 }
 0x10d   : > { %791 = vrot.lane.b32.xlu1 %v1431_v52, %s1197_s28 }
 0x10e   : > { %v464_v18 = vpop.permute.xlu0 %463  ;;  %v430_v19 = vpop.permute.xlu1 %429 }
 0x10f   : > { %606 = vmatpush1.bf16.msra.mxu1 %v1480_v55  ;;  %v507_v21 = vsel %vm491_vm3, %v464_v18, %v466_v61 }
 0x110   : > { %797 = vrot.lane.b32.xlu0 %v1444_v54, %s1197_s28  ;;  %556 = vmatprep.subr.bf16.mxu0 %v507_v21 }
 0x111   : > { %607 = vmatprep.subr.bf16.mxu1 %v1196_v12 }
 0x112   : > { %v462_v23 = vpop.permute.xlu0 %461  ;;  %v446_v26 = vpop.permute.xlu1 %445 }
 0x113   : > { %608 = vmatpush1.bf16.msra.mxu1 %v1506_v60  ;;  %v506_v28 = vsel %vm491_vm3, %v462_v23, %v464_v18  ;;  %v501_v61 = vsel %vm491_vm3, %v446_v26, %v448_v14  ;;  %v498_v23 = vsel %vm491_vm3, %v1496_v58, %v1486_v56  ;;  %v497_v14 = vsel %vm491_vm3, %v1490_v57, %v1506_v60 }
 0x114   : > { %795 = vrot.lane.b32.xlu0 %v1403_v45, %s1197_s28  ;;  %557 = vmatpush1.bf16.msra.mxu0 %v506_v28 }
 0x115   : > { %558 = vmatprep.subr.bf16.mxu0 %v505_v34  ;;  %609 = vmatprep.subr.bf16.mxu1 %v1196_v12  ;;  %v496_v34 = vsel %vm491_vm3, %v1500_v59, %v1490_v57 }
 0x116   : > { %v452_v35 = vpop.permute.xlu0 %451  ;;  %v444_v38 = vpop.permute.xlu1 %443 }
 0x117   : > { %610 = vmatpush1.bf16.msra.mxu1 %v430_v19  ;;  %v503_v41 = vsel %vm491_vm3, %v452_v35, %v454_v63  ;;  %v500_v21 = vsel %vm491_vm3, %v444_v38, %v446_v26  ;;  %v499_v63 = vsel %vm491_vm3, %v1486_v56, %v1480_v55  ;;  %v963_v26 = vld [vmem:[%s1778_s2] sm:$0x7] }
 0x118   : > { %559 = vmatpush1.bf16.msra.mxu0 %v504_v39  ;;  %611 = vmatprep.subr.bf16.mxu1 %v1196_v12 }
 0x119   : > { %560 = vmatprep.subr.bf16.mxu0 %v503_v41  ;;  %966 = vperm.xlu0 %1152, %v963_v26  }
 0x11a   : > { %v450_v43 = vpop.permute.xlu0 %449  ;;  %v422_v49 = vpop.permute.xlu1 %421 }
 0x11b   : > { %v502_v51 = vsel %vm491_vm3, %v450_v43, %v452_v35 }
 0x11c   : > { %561 = vmatpush1.bf16.msra.mxu0 %v502_v51 }
 0x11d   : > { %562 = vmatprep.subr.bf16.mxu0 %v501_v61 }
 0x11e   : > { %v428_v62 = vpop.permute.xlu0 %427  ;;  %v420_v18 = vpop.permute.xlu1 %419 }
 0x11f   : > { %v495_v56 = vsel %vm491_vm3, %v428_v62, %v430_v19  ;;  %v492_v57 = vsel %vm491_vm3, %v420_v18, %v422_v49 }
 0x120   : > { %563 = vmatpush1.bf16.msra.mxu0 %v500_v21 }
 0x121   : > { %564 = vmatprep.subr.bf16.mxu0 %v499_v63 }
 0x122   : > { %v426_v13 = vpop.permute.xlu0 %425  ;;  %v490_v16 = vpop.permute.xlu1 %489 }
 0x123   : > { %v494_v35 = vsel %vm491_vm3, %v426_v13, %v428_v62 }
 0x124   : > { %565 = vmatpush1.bf16.msra.mxu0 %v498_v23  ;;  %v1585_v23 = vld.sshfl [vmem:[%s1777_s1] sm:$0x33 pattern:$0x76325410] }
 0x125   : > { %566 = vmatprep.subr.bf16.mxu0 %v497_v14 }
 0x126   : > { %v424_v28 = vpop.permute.xlu0 %423  ;;  %v478_v55 = vpop.permute.xlu1 %477 }
 0x127   : > { %612 = vmatpush1.bf16.msra.mxu1 %v424_v28  ;;  %v493_v38 = vsel %vm491_vm3, %v422_v49, %v424_v28 }
 0x128   : > { %567 = vmatpush1.bf16.msra.mxu0 %v496_v34  ;;  %621 = vmatprep.subr.bf16.mxu1 %v1196_v12 }
 0x129   : > { %568 = vmatprep.subr.bf16.mxu0 %v495_v56 }
 0x12a   : > { %v484_v58 = vpop.permute.xlu0 %483  ;;  %v482_v60 = vpop.permute.xlu1 %481 }
 0x12b   : > { %622 = vmatpush2.bf16.msra.mxu1 %v490_v16  ;;  %v513_v61 = vsel %vm491_vm3, %v482_v60, %v484_v58 }
 0x12c   : > { %569 = vmatpush1.bf16.msra.mxu0 %v494_v35  ;;  %623 = vmatprep.subr.bf16.mxu1 %v1196_v12 }
 0x12d   : > { %570 = vmatprep.subr.bf16.mxu0 %v493_v38 }
 0x12e   : > { %v488_v39 = vpop.permute.xlu0 %487  ;;  %v480_v41 = vpop.permute.xlu1 %479 }
 0x12f   : > { %624 = vmatpush2.bf16.msra.mxu1 %v484_v58  ;;  %v515_v59 = vsel %vm491_vm3, %v488_v39, %v490_v16  ;;  %v512_v49 = vsel %vm491_vm3, %v480_v41, %v482_v60 }
 0x130   : > { %571 = vmatpush1.bf16.msra.mxu0 %v492_v57  ;;  %625 = vmatprep.subr.bf16.mxu1 %v1196_v12 }
 0x131   : > { %580 = vmatprep.subr.bf16.mxu0 %v515_v59 }
 0x132   : > { %v486_v19 = vpop.permute.xlu0 %485  ;;  %v470_v43 = vpop.permute.xlu1 %469 }
 0x133   : > { %626 = vmatpush2.bf16.msra.mxu1 %v478_v55  ;;  %v514_v51 = vsel %vm491_vm3, %v486_v19, %v488_v39 }
 0x134   : > { %581 = vmatpush2.bf16.msra.mxu0 %v514_v51  ;;  %627 = vmatprep.subr.bf16.mxu1 %v1196_v12 }
 0x135   : > { %582 = vmatprep.subr.bf16.mxu0 %v513_v61 }
 0x136   : > { %v476_v62 = vpop.permute.xlu0 %475  ;;  %v468_v21 = vpop.permute.xlu1 %467 }
 0x137   : > { %v511_v18 = vsel %vm491_vm3, %v476_v62, %v478_v55  ;;  %v645_v55 = vcombine.high %v1585_v23, %v1585_v23  ;;  %v508_v34 = vsel %vm491_vm3, %v468_v21, %v470_v43 }
 0x138   : > { %583 = vmatpush2.bf16.msra.mxu0 %v512_v49 }
 0x139   : > { %584 = vmatprep.subr.bf16.mxu0 %v511_v18 }
 0x13a   : > { %v474_v63 = vpop.permute.xlu0 %473  ;;  %v1579_v13 = vpop.permute.xlu1 %789 }
 0x13b   : > { %v510_v16 = vsel %vm491_vm3, %v474_v63, %v476_v62 }
 0x13c   : > { %585 = vmatpush2.bf16.msra.mxu0 %v510_v16 }
 0x13e   : > { %v472_v14 = vpop.permute.xlu0 %471  ;;  %v1587_v26 = vpop.permute.xlu1 %781 }
 0x13f   : > { %628 = vmatpush2.bf16.msra.mxu1 %v472_v14  ;;  %v509_v28 = vsel %vm491_vm3, %v470_v43, %v472_v14 }
 0x140   : > { %586 = vmatprep.subr.bf16.mxu0 %v509_v28  ;;  %691 = vmatprep.subr.bf16.mxu1 %v1196_v12 }
 0x141   : > { %587 = vmatpush2.bf16.msra.mxu0 %v508_v34 }
 0x142   : > { %v1594_v56 = vpop.permute.xlu0 %787  ;;  %650 = vmatprep.subr.bf16.mxu0 %v1338_v27  ;;  %630 = vmatmul.mubr.bf16.vlgmr.msra.gmra.mxu1 %v1424_v50  ;;  %v1598_v58 = vpop.permute.xlu1 %779 }
 0x143   : > { %692 = vmatpush1.bf16.msra.mxu1 %v1309_v15  ;;  %1114 = vmatprep.mubr.msk.bf16.mxu1 %vm552_vm2, %v645_v55 }
 0x144   : > { %589 = vmatmul.mubr.bf16.vlgmr.msra.gmra.mxu0 %v1424_v50  ;;  %693 = vmatprep.subr.bf16.mxu1 %v1196_v12 }
 0x145   : > { %651 = vmatpush1.bf16.msra.mxu0 %v1345_v29  ;;  %1113 = vmatprep.mubr.msk.bf16.mxu0 %vm552_vm2, %v645_v55 }
 0x146   : > { %v1606_v60 = vpop.permute.xlu0 %785  ;;  %652 = vmatprep.subr.bf16.mxu0 %v1323_v22  ;;  %v1611_v27 = vpop.permute.xlu1 %777 }
 0x147   : > { %694 = vmatpush1.bf16.msra.mxu1 %v1313_v17 }
 0x148   : > { %695 = vmatprep.subr.bf16.mxu1 %v1196_v12 }
 0x149   : > { %653 = vmatpush1.bf16.msra.mxu0 %v1332_v25 }
 0x14a   : > { %v1614_v15 = vpop.permute.xlu0 %783  ;;  %654 = vmatprep.subr.bf16.mxu0 %v1362_v33  ;;  %v1623_v17 = vpop.permute.xlu1 %769  ;;  %v828_v33 = vsel %vm815_vm4, %v1598_v58, %v1587_v26 }
 0x14b   : > { %696 = vmatpush1.bf16.msra.mxu1 %v1317_v20 }
 0x14c   : > { %697 = vmatprep.subr.bf16.mxu1 %v1196_v12 }
 0x14d   : > { %655 = vmatpush1.bf16.msra.mxu0 %v1369_v36 }
 0x14e   : > { %v1620_v29 = vpop.permute.xlu0 %775  ;;  %656 = vmatprep.subr.bf16.mxu0 %v1351_v30  ;;  %v1633_v20 = vpop.permute.xlu1 %767  ;;  %v830_v30 = vsel %vm815_vm4, %v1606_v60, %v1594_v56 }
 0x14f   : > { %698 = vmatpush1.bf16.msra.mxu1 %v1327_v24 }
 0x150   : > { %699 = vmatprep.subr.bf16.mxu1 %v1196_v12 }
 0x151   : > { %657 = vmatpush1.bf16.msra.mxu0 %v1358_v32 }
 0x152   : > { %v1628_v22 = vpop.permute.xlu0 %773  ;;  %658 = vmatprep.subr.bf16.mxu0 %v1247_v0  ;;  %v1645_v0 = vpop.permute.xlu1 %765 }
 0x153   : > { %700 = vmatpush1.bf16.msra.mxu1 %v1252_v2 }
 0x154   : > { %701 = vmatprep.subr.bf16.mxu1 %v1196_v12 }
 0x155   : > { %659 = vmatpush1.bf16.msra.mxu0 %v1249_v1 }
 0x156   : > { %v1636_v25 = vpop.permute.xlu0 %771  ;;  %660 = vmatprep.subr.bf16.mxu0 %v1255_v3  ;;  %v1655_v2 = vpop.permute.xlu1 %757 }
 0x157   : > { %702 = vmatpush1.bf16.msra.mxu1 %v1258_v4 }
 0x158   : > { %703 = vmatprep.subr.bf16.mxu1 %v1196_v12 }
 0x159   : > { %661 = vmatpush1.bf16.msra.mxu0 %v1261_v5 }
 0x15a   : > { %v1642_v24 = vpop.permute.xlu0 %763  ;;  %662 = vmatprep.subr.bf16.mxu0 %v1264_v6  ;;  %v1665_v4 = vpop.permute.xlu1 %755  ;;  %v1678_v6 = vld.sshfl [vmem:[%s1777_s1 + $0x8] sm:$0x33 pattern:$0x76325410] }
 0x15b   : > { %704 = vmatpush1.bf16.msra.mxu1 %v1267_v7 }
 0x15c   : > { %705 = vmatprep.subr.bf16.mxu1 %v1196_v12 }
 0x15d   : > { %663 = vmatpush1.bf16.msra.mxu0 %v1270_v8  ;;  %v741_v8 = vcombine.high %v1678_v6, %v1678_v6 }
 0x15e   : > { %v1650_v1 = vpop.permute.xlu0 %761  ;;  %664 = vmatprep.subr.bf16.mxu0 %v1273_v9  ;;  %v754_v7 = vpop.permute.xlu1 %753 }
 0x15f   : > { %706 = vmatpush1.bf16.msra.mxu1 %v1276_v10  ;;  %v831_v10 = vsel %vm815_vm4, %v1594_v56, %v1579_v13  ;;  %v822_v50 = vsel %vm815_vm4, %v1650_v1, %v1642_v24  ;;  %v974_v1 = vlaneseq }
 0x160   : > { %715 = vmatprep.subr.bf16.mxu1 %v1196_v12 }
 0x161   : > { %665 = vmatpush1.bf16.msra.mxu0 %v1279_v11 }
 0x162   : > { %674 = vmatprep.subr.bf16.mxu0 %v1401_v44  ;;  %v1660_v3 = vpop.permute.xlu0 %759  ;;  %v746_v11 = vpop.permute.xlu1 %745  ;;  %v825_v44 = vsel %vm815_vm4, %v1623_v17, %v1636_v25 }
 0x163   : > { %716 = vmatpush2.bf16.msra.mxu1 %v1353_v31  ;;  %v829_v31 = vsel %vm815_vm4, %v1587_v26, %v1614_v15 }
 0x164   : > { %717 = vmatprep.subr.bf16.mxu1 %v1196_v12 }
 0x165   : > { %675 = vmatpush2.bf16.msra.mxu0 %v1417_v48 }
 0x166   : > { %676 = vmatprep.subr.bf16.mxu0 %v1395_v42  ;;  %v1670_v5 = vpop.permute.xlu0 %751  ;;  %v744_v36 = vpop.permute.xlu1 %743 }
 0x167   : > { %718 = vmatpush2.bf16.msra.mxu1 %v1375_v37  ;;  %v827_v37 = vsel %vm815_vm4, %v1620_v29, %v1611_v27  ;;  %v819_v38 = vsel %vm815_vm4, %v1670_v5, %v754_v7  ;;  %v816_v19 = vsel %vm815_vm4, %v744_v36, %v746_v11 }
 0x168   : > { %719 = vmatprep.subr.bf16.mxu1 %v1196_v12 }
 0x169   : > { %677 = vmatpush2.bf16.msra.mxu0 %v1408_v46  ;;  %v824_v46 = vsel %vm815_vm4, %v1633_v20, %v1623_v17 }
 0x16a   : > { %678 = vmatprep.subr.bf16.mxu0 %v1435_v53  ;;  %v750_v9 = vpop.permute.xlu0 %749  ;;  %v821_v53 = vsel %vm815_vm4, %v1655_v2, %v1660_v3 }
 0x16b   : > { %720 = vmatpush2.bf16.msra.mxu1 %v1385_v40  ;;  %v826_v40 = vsel %vm815_vm4, %v1628_v22, %v1620_v29  ;;  %v818_v41 = vsel %vm815_vm4, %v750_v9, %v1670_v5 }
 0x16c   : > { %721 = vmatprep.subr.bf16.mxu1 %v1196_v12 }
 0x16d   : > { %679 = vmatpush2.bf16.msra.mxu0 %v1444_v54  ;;  %v820_v54 = vsel %vm815_vm4, %v1665_v4, %v1655_v2  ;;  %v975_v2 = vshrl.u32 %v974_v1, 7  ;;  %v972_v4 = vld [vmem:[%s1779_s3] sm:$0x7] }
 0x16e   : > { %680 = vmatprep.subr.bf16.mxu0 %v1414_v47  ;;  %v748_v32 = vpop.permute.xlu0 %747  ;;  %v823_v47 = vsel %vm815_vm4, %v1642_v24, %v1645_v0 }
 0x16f   : > { %722 = vmatpush2.bf16.msra.mxu1 %v1403_v45  ;;  %v814_v45 = vpop.permute.xlu1 %813  ;;  %v817_v57 = vsel %vm815_vm4, %v746_v11, %v748_v32 }
 0x170   : > { %920 = vmatprep.subr.bf16.mxu1 %v1196_v12 }
 0x171   : > { %681 = vmatpush2.bf16.msra.mxu0 %v1431_v52 }
 0x172   : > { %724 = vmatmul.mubr.bf16.vlgmr.msra.gmra.mxu1 %v1585_v23  ;;  %879 = vmatprep.subr.bf16.mxu0 %v831_v10  ;;  %v812_v42 = vpop.permute.xlu0 %811 }
 0x173   : > { %921 = vmatpush1.bf16.msra.mxu1 %v1579_v13  ;;  %1118 = vmatprep.mubr.msk.bf16.mxu1 %vm552_vm2, %v741_v8  ;;  %v806_v52 = vpop.permute.xlu1 %805  ;;  %v839_v51 = vsel %vm815_vm4, %v812_v42, %v814_v45 }
 0x174   : > { %683 = vmatmul.mubr.bf16.vlgmr.msra.gmra.mxu0 %v1585_v23  ;;  %922 = vmatprep.subr.bf16.mxu1 %v1196_v12 }
 0x175   : > { %880 = vmatpush1.bf16.msra.mxu0 %v830_v30  ;;  %1117 = vmatprep.mubr.msk.bf16.mxu0 %vm552_vm2, %v741_v8  ;;  %v976_v8 = vsub.s32 0, %v975_v2  ;;  %v980_v30 = vsub.s32 1, %v975_v2 }
 0x176   : > { %881 = vmatprep.subr.bf16.mxu0 %v829_v31  ;;  %v810_v48 = vpop.permute.xlu0 %809 }
 0x177   : > { %923 = vmatpush1.bf16.msra.mxu1 %v1614_v15  ;;  %v804_v39 = vpop.permute.xlu1 %803  ;;  %v838_v61 = vsel %vm815_vm4, %v810_v48, %v812_v42  ;;  %v981_v48 = vrot.slane %v972_v4, %v980_v30 }
 0x178   : > { %924 = vmatprep.subr.bf16.mxu1 %v1196_v12  ;;  %v836_v18 = vsel %vm815_vm4, %v804_v39, %v806_v52 }
 0x179   : > { %882 = vmatpush1.bf16.msra.mxu0 %v828_v33 }
 0x17a   : > { %883 = vmatprep.subr.bf16.mxu0 %v827_v37  ;;  %v808_v35 = vpop.permute.xlu0 %807 }
 0x17b   : > { %925 = vmatpush1.bf16.msra.mxu1 %v1611_v27  ;;  %v802_v43 = vpop.permute.xlu1 %801  ;;  %v837_v21 = vsel %vm815_vm4, %v806_v52, %v808_v35 }
 0x17c   : > { %926 = vmatprep.subr.bf16.mxu1 %v1196_v12 }
 0x17d   : > { %884 = vmatpush1.bf16.msra.mxu0 %v826_v40  ;;  %v977_v40 = vrot.slane %v972_v4, %v976_v8 }
 0x17e   : > { %885 = vmatprep.subr.bf16.mxu0 %v825_v44  ;;  %v800_v59 = vpop.permute.xlu0 %799 }
 0x17f   : > { %927 = vmatpush1.bf16.msra.mxu1 %v1636_v25  ;;  %v794_v49 = vpop.permute.xlu1 %793  ;;  %v835_v63 = vsel %vm815_vm4, %v800_v59, %v802_v43 }
 0x180   : > { %928 = vmatprep.subr.bf16.mxu1 %v1196_v12 }
 0x181   : > { %886 = vmatpush1.bf16.msra.mxu0 %v824_v46 }
 0x182   : > { %887 = vmatprep.subr.bf16.mxu0 %v823_v47  ;;  %v798_v62 = vpop.permute.xlu0 %797 }
 0x183   : > { %929 = vmatpush1.bf16.msra.mxu1 %v1645_v0  ;;  %v834_v16 = vsel %vm815_vm4, %v798_v62, %v800_v59  ;;  %v792_v23 = vpop.permute.xlu1 %791 }
 0x184   : > { %930 = vmatprep.subr.bf16.mxu1 %v1196_v12  ;;  %v832_v26 = vsel %vm815_vm4, %v792_v23, %v794_v49 }
 0x185   : > { %888 = vmatpush1.bf16.msra.mxu0 %v822_v50 }
 0x186   : > { %889 = vmatprep.subr.bf16.mxu0 %v821_v53  ;;  %v796_v13 = vpop.permute.xlu0 %795 }
 0x187   : > { %931 = vmatpush1.bf16.msra.mxu1 %v1660_v3  ;;  %v833_v14 = vsel %vm815_vm4, %v794_v49, %v796_v13  ;;  %v984_v3 = vsub.s32 2, %v975_v2 }
 0x188   : > { %932 = vmatprep.subr.bf16.mxu1 %v1196_v12 }
 0x189   : > { %890 = vmatpush1.bf16.msra.mxu0 %v820_v54  ;;  %v985_v11 = vrot.slane %v972_v4, %v984_v3 }
 0x18a   : > { %891 = vmatprep.subr.bf16.mxu0 %v819_v38 }
 0x18b   : > { %933 = vmatpush1.bf16.msra.mxu1 %v754_v7 }
 0x18c   : > { %934 = vmatprep.subr.bf16.mxu1 %v1196_v12 }
 0x18d   : > { %892 = vmatpush1.bf16.msra.mxu0 %v818_v41 }
 0x18e   : > { %893 = vmatprep.subr.bf16.mxu0 %v817_v57 }
 0x18f   : > { %935 = vmatpush1.bf16.msra.mxu1 %v748_v32 }
 0x190   : > { %944 = vmatprep.subr.bf16.mxu1 %v1196_v12 }
 0x191   : > { %894 = vmatpush1.bf16.msra.mxu0 %v816_v19 }
 0x192   : > { %903 = vmatprep.subr.bf16.mxu0 %v839_v51 }
 0x193   : > { %945 = vmatpush2.bf16.msra.mxu1 %v814_v45 }
 0x194   : > { %946 = vmatprep.subr.bf16.mxu1 %v1196_v12  ;;  %v967_v7 = vpop.permute.xlu0 %966 }
 0x195   : > { %904 = vmatpush2.bf16.msra.mxu0 %v838_v61 }
 0x196   : > { %905 = vmatprep.subr.bf16.mxu0 %v837_v21 }
 0x197   : > { %947 = vmatpush2.bf16.msra.mxu1 %v808_v35 }
 0x198   : > { %948 = vmatprep.subr.bf16.mxu1 %v1196_v12 }
 0x199   : > { %906 = vmatpush2.bf16.msra.mxu0 %v836_v18 }
 0x19a   : > { %907 = vmatprep.subr.bf16.mxu0 %v835_v63 }
 0x19b   : > { %949 = vmatpush2.bf16.msra.mxu1 %v802_v43 }
 0x19c   : > { %950 = vmatprep.subr.bf16.mxu1 %v1196_v12 }
 0x19d   : > { %908 = vmatpush2.bf16.msra.mxu0 %v834_v16 }
 0x19e   : > { %909 = vmatprep.subr.bf16.mxu0 %v833_v14 }
 0x19f   : > { %951 = vmatpush2.bf16.msra.mxu1 %v796_v13 }
 0x1a1   : > { %910 = vmatpush2.bf16.msra.mxu0 %v832_v26 }
 0x1a2   : > { %953 = vmatmul.mubr.bf16.vlgmr.msra.gmra.mxu1 %v1678_v6 }
 0x1a4   : > { %912 = vmatmul.mubr.bf16.vlgmr.msra.gmra.mxu0 %v1678_v6 }
 0x202   : > { %v631_v28 = vpop.f32.mrf.mxu1 }
 0x204   : > { %v590_v55 = vpop.f32.mrf.mxu0  ;;  %v633_v34 = vpop.f32.mrf.mxu1 }
 0x206   : > { %v592_v56 = vpop.f32.mrf.mxu0  ;;  %v634_v58 = vpop.f32.mrf.mxu1 }
 0x208   : > { %v594_v60 = vpop.f32.mrf.mxu0  ;;  %v635_v12 = vpop.f32.mrf.mxu1 }
 0x20a   : > { %v595_v27 = vpop.f32.mrf.mxu0 }
 0x232   : > { %v725_v15 = vpop.f32.mrf.mxu1 }
 0x233   : > { %v726_v5 = vadd.f32 %v725_v15, %v631_v28 }
 0x234   : > { %v684_v29 = vpop.f32.mrf.mxu0  ;;  %v727_v17 = vpop.f32.mrf.mxu1 }
 0x235   : > { %v685_v9 = vadd.f32 %v684_v29, %v590_v55 }
 0x236   : > { %v686_v22 = vpop.f32.mrf.mxu0  ;;  %v728_v20 = vpop.f32.mrf.mxu1 }
 0x237   : > { %v687_v33 = vadd.f32 %v686_v22, %v592_v56 }
 0x238   : > { %v688_v25 = vpop.f32.mrf.mxu0  ;;  %v729_v24 = vpop.f32.mrf.mxu1 }
 0x23a   : > { %v689_v0 = vpop.f32.mrf.mxu0 }
 0x262   : > { %v954_v6 = vpop.f32.mrf.mxu1 }
 0x263   : > { %v962_v10 = vadd.f32 %v954_v6, %v726_v5 }
 0x264   : > { %v913_v31 = vpop.f32.mrf.mxu0  ;;  %v956_v32 = vpop.f32.mrf.mxu1 }
 0x265   : > { %v971_v36 = vadd.f32 %v967_v7, %v962_v10  ;;  %v960_v37 = vadd.f32 %v913_v31, %v685_v9 }
 0x266   : > { %v915_v42 = vpop.f32.mrf.mxu0  ;;  %v957_v44 = vpop.f32.mrf.mxu1 }
 0x267   : > { %v991_v45 = vmul.f32 %v985_v11, %v971_v36  ;;  %v969_v46 = vadd.f32 %v967_v7, %v960_v37  ;;  %v961_v47 = vadd.f32 %v915_v42, %v687_v33 }
 0x268   : > { %v917_v50 = vpop.f32.mrf.mxu0  ;;  %v958_v52 = vpop.f32.mrf.mxu1 }
 0x269   : > { %998 = vst.msk [vmem:[%s233_s14 + $0x8] sm:$0x7] %vm997_vm5, %v991_v45  ;;  %v970_v53 = vadd.f32 %v967_v7, %v961_v47  ;;  %v989_v35 = vmul.f32 %v977_v40, %v969_v46 }
 0x26a   : > { %v918_v54 = vpop.f32.mrf.mxu0 }
 0x26b   : > { %v990_v38 = vmul.f32 %v981_v48, %v970_v53 }
 0x26d   : > { %v994_v39 = vcombine.low %v989_v35, %v990_v38 }
 0x26f   : > { %996 = vst [vmem:[%s233_s14] sm:$0x77] %v994_v39 }
 0x270 PF: > { %s14_s17 = sadd.s32 1, %s1191_s17   ;;  %s1781_s15 = smov %s1187_s16 }
 0x271   : > { %p11_p5 = scmp.ge.s32.totalorder %s14_s17, 4   ;;  %s1782_s16 = smov %s1784_s18 }
 0x273   :  { %13 = sbr.rel (!%p11_p5) target bundleno = 2 (0x2), region = 68 }

</bundles_post_ra>
